<compile_context>
chip_gen: v7x
topology: tpu7x:2x2x1
jax: 0.10.0
libtpu: 0.0.40
codegen_flags: <defaults>
</compile_context>

<pallas_src>
import numpy as np

import jax
import jax.numpy as jnp
from jax.experimental import pallas as pl
from jax.experimental.pallas import tpu as pltpu

_HIGHEST = jax.lax.Precision.HIGHEST
MM_DTYPE = jnp.bfloat16   # MXU operand dtype; set to jnp.float32 for bit-tighter results.


# ----------------------------------------------------------------------------
# Host-side weight preprocessing: fold the W (width) axis of every conv into the
# lane dimension so each layer is a few dense lane-aligned matmuls.
# ----------------------------------------------------------------------------
def _band_conv(w_kh, w_in, w_out, stride, pad):
    """w_kh: [Cout, Cin, KW] -> [Cin*w_in, Cout*w_out]; row=(ci*w_in+wi), col=(co*w_out+ow)."""
    c_out, c_in, kw_sz = w_kh.shape
    sel = np.zeros((kw_sz, w_in, w_out), np.float32)
    for kw in range(kw_sz):
        for ow in range(w_out):
            wi = stride * ow - pad + kw
            if 0 <= wi < w_in:
                sel[kw, wi, ow] = 1.0
    bw = jnp.einsum("kwx,ock->cwox", sel, w_kh, precision=_HIGHEST)
    return bw.reshape(c_in * w_in, c_out * w_out)


def _band_deconv(w_kh, w_in, w_out, stride, pad):
    """w_kh: [Cin, Cout, KW] (ConvTranspose layout) -> [Cin*w_in, Cout*w_out]."""
    c_in, c_out, kw_sz = w_kh.shape
    sel = np.zeros((kw_sz, w_in, w_out), np.float32)
    for kw in range(kw_sz):
        for wi in range(w_in):
            ox = stride * wi - pad + kw
            if 0 <= ox < w_out:
                sel[kw, wi, ox] = 1.0
    bw = jnp.einsum("kwx,cok->cwox", sel, w_kh, precision=_HIGHEST)
    return bw.reshape(c_in * w_in, c_out * w_out)


def _pad_to(x, shape):
    return jnp.pad(x, [(0, t - s) for s, t in zip(x.shape, shape)])


def _remap_k448(m):
    """Map 448 concat-K rows (32ch | 32ch) onto the 512-lane scratch layout (0:224 | 256:480)."""
    z = jnp.zeros((32, m.shape[1]), jnp.float32)
    return jnp.concatenate([m[0:224], z, m[224:448], z], axis=0)


def _precompute_operands(p, mm_dtype):
    f32 = jnp.float32

    # conv1: 3->16, k3, s2, p1 (28 -> 14).  K folds (kh, ci, wi); N = co*14 + ow.
    bw1 = jnp.concatenate(
        [_band_conv(p["conv1_w"][:, :, kh, :], 28, 14, 2, 1) for kh in range(3)], axis=0)
    bw1 = _pad_to(bw1, (256, 256)).astype(mm_dtype)                    # (256, 256)
    b1 = _pad_to(jnp.repeat(p["conv1_b"], 14)[None, :], (1, 256)).astype(f32)

    # conv2: 16->32, k3, s2, p1 (14 -> 7).  One (256, 256) tap per kh.
    bw2 = jnp.stack(
        [_pad_to(_band_conv(p["conv2_w"][:, :, kh, :], 14, 7, 2, 1), (256, 256))
         for kh in range(3)]).astype(mm_dtype)                          # (3, 256, 256)
    b2 = _pad_to(jnp.repeat(p["conv2_b"], 7)[None, :], (1, 256)).astype(f32)

    # conv3: 32->64, k7, valid (7x7 -> 1x1).  Per-kh block padded to 128 lanes.
    bw3c = jnp.concatenate(
        [_pad_to(_band_conv(p["conv3_w"][:, :, kh, :], 7, 1, 1, 0), (256, 128))
         for kh in range(7)], axis=1).astype(mm_dtype)                  # (256, 896)
    b3c = _pad_to(p["conv3_b"][None, :], (1, 128)).astype(f32)

    # deconv1: 64->32, k7 (1x1 -> 7x7) == dense layer; column = oy*256 + co*7 + ox.
    w1d = jnp.transpose(p["deconv1_w"], (0, 2, 1, 3)).reshape(64, 7, 32 * 7)
    w1d = jnp.pad(w1d, ((0, 64), (0, 0), (0, 32))).reshape(128, 7 * 256).astype(mm_dtype)
    b1d = jnp.tile(_pad_to(jnp.repeat(p["deconv1_b"], 7)[None, :], (1, 256)),
                   (1, 7)).astype(f32)                                  # (1, 1792)

    # deconv2: 64->16, k3, s2, p1, op1 (7 -> 14); sub-pixel taps on the 512-lane cat1.
    taps2 = [_pad_to(_remap_k448(_band_deconv(p["deconv2_w"][:, :, kh, :], 7, 14, 2, 1)),
                     (512, 256)) for kh in range(3)]
    bw2dx = jnp.concatenate([taps2[1], taps2[2]], axis=1).astype(mm_dtype)   # (512, 512)
    bw2dn = taps2[0].astype(mm_dtype)                                         # (512, 256)
    b2d = _pad_to(jnp.repeat(p["deconv2_b"], 14)[None, :], (1, 256)).astype(f32)

    # deconv3: 32->1, k3, s2, p1, op1 (14 -> 28); outputs land at their final lane offsets
    # (row-class q at lanes q*28 .. q*28+27), so assembly is pure adds + one store.
    taps3 = [_remap_k448(_band_deconv(p["deconv3_w"][:, :, kh, :], 14, 28, 2, 1))
             for kh in range(3)]                                              # (512, 28) each
    z28 = jnp.zeros((512, 28), f32)
    z16 = jnp.zeros((512, 16), f32)
    w3d = jnp.stack([
        jnp.concatenate([taps3[1], taps3[2], z28, z28, z16], axis=1),        # LHS = u_e
        jnp.concatenate([z28, taps3[0], taps3[1], taps3[2], z16], axis=1),   # LHS = u_o
        jnp.concatenate([z28, z28, z28, taps3[0], z16], axis=1),             # LHS = u_en
    ]).astype(mm_dtype)                                                       # (3, 512, 128)
    b3d = jnp.concatenate([jnp.full((1, 112), p["deconv3_b"][0], f32),
                           jnp.zeros((1, 16), f32)], axis=1)                  # (1, 128)

    return (bw1, b1, bw2, b2, bw3c, b3c, w1d, b1d, bw2dx, bw2dn, b2d, w3d, b3d)


# ----------------------------------------------------------------------------
# Host-side input slab: conv1's stride-2/pad-1 row windows, kh folded into lanes,
# both parities stacked, BB samples interleaved (row-major, sample-minor).
# ----------------------------------------------------------------------------
def _prep_input_slabs(img_nchw, bb, mm_dtype):
    n = img_nchw.shape[0]
    steps = -(-n // bb)
    n_pad = steps * bb
    x = jnp.transpose(img_nchw, (0, 2, 1, 3)).reshape(n, 28, 84)       # [N, H, ci*28+w]
    if n_pad != n:
        x = jnp.pad(x, ((0, n_pad - n), (0, 0), (0, 0)))
    xp = jnp.pad(x, ((0, 0), (1, 1), (0, 0)))                           # pad H by 1
    # Row oh's 3-tap window folded into lanes: lane = kh*84 + ci*28 + w.
    rows = jnp.concatenate([xp[:, kh:kh + 28:2, :] for kh in range(3)], axis=-1)
    rows = jnp.pad(rows, ((0, 0), (0, 0), (0, 4)))                      # (N, 14, 256)
    rows = rows.reshape(steps, bb, 14, 256)
    slab = jnp.concatenate([rows[:, :, 0::2, :], rows[:, :, 1::2, :]], axis=2)
    slab = jnp.transpose(slab, (0, 2, 1, 3)).reshape(steps, 14 * bb, 256)
    return slab.astype(mm_dtype), steps, n_pad


# ----------------------------------------------------------------------------
# The fused kernel: one grid step == BB batch samples.
# ----------------------------------------------------------------------------
def _make_kernel(bb):
    r7, r8, r14 = 7 * bb, 8 * bb, 14 * bb

    def kernel(xslab_ref, bw1_ref, b1_ref, bw2_ref, b2_ref, bw3c_ref, b3c_ref,
               w1d_ref, b1d_ref, bw2dx_ref, bw2dn_ref, b2d_ref, w3d_ref, b3d_ref,
               out_ref, cat1, c2e, c2o):
        # Scratch (per step, BB samples, sample index minor on the sublane axis):
        #   cat1 [8bb, 512]: row m -> lanes 0:224 deconv1 out (c*7+w), 256:480 conv2 out e2
        #   c2e  [8bb, 512]: row a -> cat2 row 2a   (lanes 0:224 deconv2 out, 256:480 conv1 out e1)
        #   c2o  [8bb, 512]: row a -> cat2 row 2a-1 (row 0 == 0); layout like c2e
        def mm(a, b):
            return jnp.dot(a.astype(b.dtype), b, preferred_element_type=jnp.float32)

        # Only the boundary row-blocks that are read as zeros need clearing.
        zrow = jnp.zeros((bb, 512), jnp.float32)
        cat1[r7:r8, :] = zrow     # cat1 "row 7"  (deconv2's x1n tail)
        c2e[r7:r8, :] = zrow      # cat2 "row 14" (deconv3's u_en tail)
        c2o[0:bb, :] = zrow       # cat2 "row -1" (conv2's kh=0 tap)

        # ---- conv1 (3->16, k3, s2, p1) + ReLU: both parities, one M=14*bb matmul ----
        e1 = jnp.maximum(mm(xslab_ref[0], bw1_ref[...]) + b1_ref[...], 0.0)   # (14bb, 256)
        c2e[0:r7, 256:512] = e1[0:r7]         # e1 rows 0,2,...,12
        c2o[bb:r8, 256:512] = e1[r7:r14]      # e1 rows 1,3,...,13

        # ---- conv2 (16->32, k3, s2, p1) + ReLU ----
        acc = mm(c2o[0:r7, 256:512], bw2_ref[0])            # e1 rows 2*oh-1 (row -1 == 0)
        acc = acc + mm(c2e[0:r7, 256:512], bw2_ref[1])      # e1 rows 2*oh
        acc = acc + mm(c2o[bb:r8, 256:512], bw2_ref[2])     # e1 rows 2*oh+1
        e2 = jnp.maximum(acc + b2_ref[...], 0.0)            # (7bb, 256)
        cat1[0:r7, 256:512] = e2

        # ---- conv3 (32->64, k7, valid) + ReLU: lane-tile aligned partial extracts ----
        r = mm(cat1[0:r7, 256:512], bw3c_ref[...])          # (7bb, 896)
        acc3 = r[0:bb, 0:128]
        for kh in range(1, 7):
            acc3 = acc3 + r[kh * bb:(kh + 1) * bb, kh * 128:(kh + 1) * 128]
        e3 = jnp.maximum(acc3 + b3c_ref[...], 0.0)          # (bb, 128), lanes 64:128 == 0

        # ---- deconv1 (64->32, k7) + ReLU: dense; aligned (bb, 256) row stores ----
        d1 = jnp.maximum(mm(e3, w1d_ref[...]) + b1d_ref[...], 0.0)    # (bb, 1792)
        for oy in range(7):
            cat1[oy * bb:(oy + 1) * bb, 0:256] = d1[:, oy * 256:(oy + 1) * 256]

        # ---- deconv2 (64->16, k3, s2, p1, op1) + ReLU, sub-pixel, even|odd merged N ----
        x1 = cat1[0:r7, :]                                   # cat1 rows m
        x1n = cat1[bb:r8, :]                                 # cat1 rows m+1 (row 7 == 0)
        t = mm(x1, bw2dx_ref[...])                           # (7bb, 512)
        b2d = b2d_ref[...]
        d2e = jnp.maximum(t[:, 0:256] + b2d, 0.0)                              # out rows 2m
        d2o = jnp.maximum(t[:, 256:512] + mm(x1n, bw2dn_ref[...]) + b2d, 0.0)  # rows 2m+1
        c2e[0:r7, 0:256] = d2e
        c2o[bb:r8, 0:256] = d2o

        # ---- deconv3 (32->1, k3, s2, p1, op1), no ReLU, sub-pixel; single store ----
        o = mm(c2e[0:r7, :], w3d_ref[0])           # row classes 4a, 4a+1
        o = o + mm(c2o[bb:r8, :], w3d_ref[1])      # row classes 4a+1, 4a+2, 4a+3
        o = o + mm(c2e[bb:r8, :], w3d_ref[2])      # row class  4a+3
        out_ref[0] = o + b3d_ref[...]              # (7bb, 128); lanes 112:128 are padding

    return kernel


def _pick_bb(n):
    if n >= 32:
        return 16
    if n >= 16:
        return 8
    return max(1, (n + 1) // 2)    # keep >= 2 grid steps for small batches (v7x dual TC)


# ----------------------------------------------------------------------------
# Public forward (PyTorch layout in/out: NCHW).  Weight prep hoisted out of jit.
# ----------------------------------------------------------------------------
def make_forward(params, mm_dtype=MM_DTYPE):
    ops = _precompute_operands(params, mm_dtype)    # runs once per parameter set

    def forward(img_nchw):
        n = img_nchw.shape[0]
        bb = _pick_bb(n)
        slab, steps, n_pad = _prep_input_slabs(img_nchw.astype(jnp.float32), bb, mm_dtype)
        const2 = lambda g: (0, 0)
        const3 = lambda g: (0, 0, 0)
        out = pl.pallas_call(
            _make_kernel(bb),
            out_shape=jax.ShapeDtypeStruct((steps, 7 * bb, 128), jnp.float32),
            grid=(steps,),
            in_specs=[
                pl.BlockSpec((1, 14 * bb, 256), lambda g: (g, 0, 0)),   # conv1 input slabs
                pl.BlockSpec((256, 256), const2),        # bw1
                pl.BlockSpec((1, 256), const2),          # b1
                pl.BlockSpec((3, 256, 256), const3),     # bw2
                pl.BlockSpec((1, 256), const2),          # b2
                pl.BlockSpec((256, 896), const2),        # bw3c
                pl.BlockSpec((1, 128), const2),          # b3c
                pl.BlockSpec((128, 1792), const2),       # w1d
                pl.BlockSpec((1, 1792), const2),         # b1d
                pl.BlockSpec((512, 512), const2),        # bw2dx (taps 1|2)
                pl.BlockSpec((512, 256), const2),        # bw2dn (tap 0)
                pl.BlockSpec((1, 256), const2),          # b2d
                pl.BlockSpec((3, 512, 128), const3),     # w3d (u_e / u_o / u_en)
                pl.BlockSpec((1, 128), const2),          # b3d
            ],
            out_specs=pl.BlockSpec((1, 7 * bb, 128), lambda g: (g, 0, 0)),
            scratch_shapes=[
                pltpu.VMEM((8 * bb, 512), jnp.float32),  # cat1 = [deconv1_out | conv2_out]
                pltpu.VMEM((8 * bb, 512), jnp.float32),  # cat2 even rows
                pltpu.VMEM((8 * bb, 512), jnp.float32),  # cat2 odd rows
            ],
            compiler_params=pltpu.CompilerParams(
                dimension_semantics=("parallel",)),
        )(slab, *ops)
        # out[g, a*bb+s, q*28+ox] == sample g*bb+s, output pixel (4a+q, ox).
        out = out[:, :, :112].reshape(steps, 7, bb, 4, 28)
        out = jnp.transpose(out, (0, 2, 1, 3, 4)).reshape(n_pad, 28, 28)
        return out[:n, None, :, :]

    return forward


# ----------------------------------------------------------------------------
# Pure-JAX reference (lax conv) for the correctness check.
# ----------------------------------------------------------------------------
def _ref_forward(img_nchw, params):
    dn = ("NHWC", "HWIO", "NHWC")
    prec = jax.lax.Precision.HIGHEST

    def conv(x, w, b, s, p, relu):
        y = jax.lax.conv_general_dilated(
            x, jnp.transpose(w, (2, 3, 1, 0)), (s, s), [(p, p), (p, p)],
            dimension_numbers=dn, precision=prec)
        y = y + b.reshape(1, 1, 1, -1)
        return jnp.maximum(y, 0.0) if relu else y

    def deconv(x, w, b, s, p, op, relu):
        k = w.shape[2]
        w_h = jnp.transpose(w[:, :, ::-1, ::-1], (2, 3, 0, 1))
        pad = (k - 1 - p, k - 1 - p + op)
        y = jax.lax.conv_general_dilated(
            x, w_h, (1, 1), [pad, pad], lhs_dilation=(s, s),
            dimension_numbers=dn, precision=prec)
        y = y + b.reshape(1, 1, 1, -1)
        return jnp.maximum(y, 0.0) if relu else y

    x = jnp.transpose(img_nchw, (0, 2, 3, 1))
    e1 = conv(x, params["conv1_w"], params["conv1_b"], 2, 1, True)
    e2 = conv(e1, params["conv2_w"], params["conv2_b"], 2, 1, True)
    e3 = conv(e2, params["conv3_w"], params["conv3_b"], 1, 0, True)
    d1 = deconv(e3, params["deconv1_w"], params["deconv1_b"], 1, 0, 0, True)
    d2 = deconv(jnp.concatenate([d1, e2], -1), params["deconv2_w"], params["deconv2_b"],
                2, 1, 1, True)
    d3 = deconv(jnp.concatenate([d2, e1], -1), params["deconv3_w"], params["deconv3_b"],
                2, 1, 1, False)
    return jnp.transpose(d3, (0, 3, 1, 2))


# ----------------------------------------------------------------------------
def init_params(key):
    shapes = {
        "conv1_w": (16, 3, 3, 3), "conv1_b": (16,),
        "conv2_w": (32, 16, 3, 3), "conv2_b": (32,),
        "conv3_w": (64, 32, 7, 7), "conv3_b": (64,),
        "deconv1_w": (64, 32, 7, 7), "deconv1_b": (32,),   # ConvTranspose: (Cin, Cout, kH, kW)
        "deconv2_w": (64, 16, 3, 3), "deconv2_b": (16,),
        "deconv3_w": (32, 1, 3, 3), "deconv3_b": (1,),
    }
    params = {}
    keys = jax.random.split(key, len(shapes))
    for k_sub, (name, shp) in zip(keys, sorted(shapes.items())):
        params[name] = 0.1 * jax.random.normal(k_sub, shp, jnp.float32)
    return params


if __name__ == "__main__":
    key = jax.random.PRNGKey(0)
    k_img, k_par = jax.random.split(key)
    img = jax.random.normal(k_img, (2, 3, 28, 28), jnp.float32)   # NCHW, like PyTorch
    params = init_params(k_par)

    fwd = jax.jit(make_forward(params))
    out = jax.block_until_ready(fwd(img))
    assert out.shape == (2, 1, 28, 28), out.shape

    ref = jax.block_until_ready(_ref_forward(img, params))
    max_err = float(jnp.max(jnp.abs(out - ref)))
    tol = 5e-2 if MM_DTYPE == jnp.bfloat16 else 2e-3   # bf16 MXU operands, f32 accumulation
    assert max_err < tol, max_err

    print("KERNEL_OK")
</pallas_src>

<mosaic_0001>
module attributes {stable_mosaic.version = 11 : i64} {
  func.func @kernel(%arg0: i32, %arg1: memref<1x14x256xbf16, #tpu.memory_space<vmem>>, %arg2: memref<256x256xbf16, #tpu.memory_space<vmem>>, %arg3: memref<1x256xf32, #tpu.memory_space<vmem>>, %arg4: memref<3x256x256xbf16, #tpu.memory_space<vmem>>, %arg5: memref<1x256xf32, #tpu.memory_space<vmem>>, %arg6: memref<256x896xbf16, #tpu.memory_space<vmem>>, %arg7: memref<1x128xf32, #tpu.memory_space<vmem>>, %arg8: memref<128x1792xbf16, #tpu.memory_space<vmem>>, %arg9: memref<1x1792xf32, #tpu.memory_space<vmem>>, %arg10: memref<512x512xbf16, #tpu.memory_space<vmem>>, %arg11: memref<512x256xbf16, #tpu.memory_space<vmem>>, %arg12: memref<1x256xf32, #tpu.memory_space<vmem>>, %arg13: memref<3x512x128xbf16, #tpu.memory_space<vmem>>, %arg14: memref<1x128xf32, #tpu.memory_space<vmem>>, %arg15: memref<1x7x128xf32, #tpu.memory_space<vmem>>, %arg16: memref<8x512xf32, #tpu.memory_space<vmem>>, %arg17: memref<8x512xf32, #tpu.memory_space<vmem>>, %arg18: memref<8x512xf32, #tpu.memory_space<vmem>>) attributes {dimension_semantics = [#tpu.dimension_semantics<parallel>], iteration_bounds = array<i64: 2>, scalar_prefetch = 0 : i64, scratch_operands = 3 : i64, tpu.core_type = #tpu.core_type<tc>, window_params = [{transform_indices = @transform_0, window_bounds = array<i64: 1, 14, 256>}, {pipeline_mode = #tpu.pipeline_mode<synchronous>, transform_indices = @transform_1, window_bounds = array<i64: 256, 256>}, {pipeline_mode = #tpu.pipeline_mode<synchronous>, transform_indices = @transform_2, window_bounds = array<i64: 1, 256>}, {pipeline_mode = #tpu.pipeline_mode<synchronous>, transform_indices = @transform_3, window_bounds = array<i64: 3, 256, 256>}, {pipeline_mode = #tpu.pipeline_mode<synchronous>, transform_indices = @transform_4, window_bounds = array<i64: 1, 256>}, {pipeline_mode = #tpu.pipeline_mode<synchronous>, transform_indices = @transform_5, window_bounds = array<i64: 256, 896>}, {pipeline_mode = #tpu.pipeline_mode<synchronous>, transform_indices = @transform_6, window_bounds = array<i64: 1, 128>}, {pipeline_mode = #tpu.pipeline_mode<synchronous>, transform_indices = @transform_7, window_bounds = array<i64: 128, 1792>}, {pipeline_mode = #tpu.pipeline_mode<synchronous>, transform_indices = @transform_8, window_bounds = array<i64: 1, 1792>}, {pipeline_mode = #tpu.pipeline_mode<synchronous>, transform_indices = @transform_9, window_bounds = array<i64: 512, 512>}, {pipeline_mode = #tpu.pipeline_mode<synchronous>, transform_indices = @transform_10, window_bounds = array<i64: 512, 256>}, {pipeline_mode = #tpu.pipeline_mode<synchronous>, transform_indices = @transform_11, window_bounds = array<i64: 1, 256>}, {pipeline_mode = #tpu.pipeline_mode<synchronous>, transform_indices = @transform_12, window_bounds = array<i64: 3, 512, 128>}, {pipeline_mode = #tpu.pipeline_mode<synchronous>, transform_indices = @transform_13, window_bounds = array<i64: 1, 128>}, {transform_indices = @transform_14, window_bounds = array<i64: 1, 7, 128>}]} {
    %cst = arith.constant 0.000000e+00 : f32
    %0 = vector.broadcast %cst : f32 to vector<1x512xf32>
    %c7 = arith.constant 7 : index
    %c0 = arith.constant 0 : index
    %1 = vector.load %arg16[%c7, %c0] : memref<8x512xf32, #tpu.memory_space<vmem>>, vector<1x512xf32>
    tpu.vector_store %arg16[%c7, %c0], %0 {strides = array<i32>} : memref<8x512xf32, #tpu.memory_space<vmem>>, vector<1x512xf32>,
    %c7_0 = arith.constant 7 : index
    %c0_1 = arith.constant 0 : index
    %2 = vector.load %arg17[%c7_0, %c0_1] : memref<8x512xf32, #tpu.memory_space<vmem>>, vector<1x512xf32>
    tpu.vector_store %arg17[%c7_0, %c0_1], %0 {strides = array<i32>} : memref<8x512xf32, #tpu.memory_space<vmem>>, vector<1x512xf32>,
    %c0_2 = arith.constant 0 : index
    %c0_3 = arith.constant 0 : index
    %3 = vector.load %arg18[%c0_2, %c0_3] : memref<8x512xf32, #tpu.memory_space<vmem>>, vector<1x512xf32>
    tpu.vector_store %arg18[%c0_2, %c0_3], %0 {strides = array<i32>} : memref<8x512xf32, #tpu.memory_space<vmem>>, vector<1x512xf32>,
    %c0_4 = arith.constant 0 : index
    %c0_5 = arith.constant 0 : index
    %c0_6 = arith.constant 0 : index
    %4 = vector.load %arg1[%c0_4, %c0_5, %c0_6] : memref<1x14x256xbf16, #tpu.memory_space<vmem>>, vector<1x14x256xbf16>
    %5 = vector.shape_cast %4 : vector<1x14x256xbf16> to vector<14x256xbf16>
    %c0_7 = arith.constant 0 : index
    %c0_8 = arith.constant 0 : index
    %6 = vector.load %arg2[%c0_7, %c0_8] : memref<256x256xbf16, #tpu.memory_space<vmem>>, vector<256x256xbf16>
    %cst_9 = arith.constant dense<0.000000e+00> : vector<14x256xf32>
    %7 = tpu.matmul %5, %6, %cst_9 {dimension_numbers = #tpu.dot_dimension_numbers<[1], [0], [0], [1], [0, 0, 1, 1], [], []>} : vector<14x256xbf16>, vector<256x256xbf16>, vector<14x256xf32> -> vector<14x256xf32>
    %c0_10 = arith.constant 0 : index
    %c0_11 = arith.constant 0 : index
    %8 = vector.load %arg3[%c0_10, %c0_11] : memref<1x256xf32, #tpu.memory_space<vmem>>, vector<1x256xf32>
    %9 = vector.broadcast %8 : vector<1x256xf32> to vector<14x256xf32>
    %10 = arith.addf %7, %9 : vector<14x256xf32>
    %cst_12 = arith.constant 0.000000e+00 : f32
    %11 = vector.broadcast %cst_12 : f32 to vector<14x256xf32>
    %12 = arith.maximumf %10, %11 : vector<14x256xf32>
    %13 = vector.extract_strided_slice %12 {offsets = [0, 0], sizes = [7, 256], strides = [1, 1]} : vector<14x256xf32> to vector<7x256xf32>
    %c0_13 = arith.constant 0 : index
    %c256 = arith.constant 256 : index
    %14 = vector.load %arg17[%c0_13, %c256] : memref<8x512xf32, #tpu.memory_space<vmem>>, vector<7x256xf32>
    tpu.vector_store %arg17[%c0_13, %c256], %13 {strides = array<i32>} : memref<8x512xf32, #tpu.memory_space<vmem>>, vector<7x256xf32>,
    %15 = vector.extract_strided_slice %12 {offsets = [7, 0], sizes = [7, 256], strides = [1, 1]} : vector<14x256xf32> to vector<7x256xf32>
    %c1 = arith.constant 1 : index
    %c256_14 = arith.constant 256 : index
    %16 = vector.load %arg18[%c1, %c256_14] : memref<8x512xf32, #tpu.memory_space<vmem>>, vector<7x256xf32>
    tpu.vector_store %arg18[%c1, %c256_14], %15 {strides = array<i32>} : memref<8x512xf32, #tpu.memory_space<vmem>>, vector<7x256xf32>,
    %c0_15 = arith.constant 0 : index
    %c256_16 = arith.constant 256 : index
    %17 = vector.load %arg18[%c0_15, %c256_16] : memref<8x512xf32, #tpu.memory_space<vmem>>, vector<7x256xf32>
    %c0_17 = arith.constant 0 : index
    %c0_18 = arith.constant 0 : index
    %c0_19 = arith.constant 0 : index
    %18 = vector.load %arg4[%c0_17, %c0_18, %c0_19] : memref<3x256x256xbf16, #tpu.memory_space<vmem>>, vector<1x256x256xbf16>
    %19 = vector.shape_cast %18 : vector<1x256x256xbf16> to vector<256x256xbf16>
    %20 = arith.truncf %17 : vector<7x256xf32> to vector<7x256xbf16>
    %cst_20 = arith.constant dense<0.000000e+00> : vector<7x256xf32>
    %21 = tpu.matmul %20, %19, %cst_20 {dimension_numbers = #tpu.dot_dimension_numbers<[1], [0], [0], [1], [0, 0, 1, 1], [], []>} : vector<7x256xbf16>, vector<256x256xbf16>, vector<7x256xf32> -> vector<7x256xf32>
    %c0_21 = arith.constant 0 : index
    %c256_22 = arith.constant 256 : index
    %22 = vector.load %arg17[%c0_21, %c256_22] : memref<8x512xf32, #tpu.memory_space<vmem>>, vector<7x256xf32>
    %c1_23 = arith.constant 1 : index
    %c0_24 = arith.constant 0 : index
    %c0_25 = arith.constant 0 : index
    %23 = vector.load %arg4[%c1_23, %c0_24, %c0_25] : memref<3x256x256xbf16, #tpu.memory_space<vmem>>, vector<1x256x256xbf16>
    %24 = vector.shape_cast %23 : vector<1x256x256xbf16> to vector<256x256xbf16>
    %25 = arith.truncf %22 : vector<7x256xf32> to vector<7x256xbf16>
    %cst_26 = arith.constant dense<0.000000e+00> : vector<7x256xf32>
    %26 = tpu.matmul %25, %24, %cst_26 {dimension_numbers = #tpu.dot_dimension_numbers<[1], [0], [0], [1], [0, 0, 1, 1], [], []>} : vector<7x256xbf16>, vector<256x256xbf16>, vector<7x256xf32> -> vector<7x256xf32>
    %27 = arith.addf %21, %26 : vector<7x256xf32>
    %c1_27 = arith.constant 1 : index
    %c256_28 = arith.constant 256 : index
    %28 = vector.load %arg18[%c1_27, %c256_28] : memref<8x512xf32, #tpu.memory_space<vmem>>, vector<7x256xf32>
    %c2 = arith.constant 2 : index
    %c0_29 = arith.constant 0 : index
    %c0_30 = arith.constant 0 : index
    %29 = vector.load %arg4[%c2, %c0_29, %c0_30] : memref<3x256x256xbf16, #tpu.memory_space<vmem>>, vector<1x256x256xbf16>
    %30 = vector.shape_cast %29 : vector<1x256x256xbf16> to vector<256x256xbf16>
    %31 = arith.truncf %28 : vector<7x256xf32> to vector<7x256xbf16>
    %cst_31 = arith.constant dense<0.000000e+00> : vector<7x256xf32>
    %32 = tpu.matmul %31, %30, %cst_31 {dimension_numbers = #tpu.dot_dimension_numbers<[1], [0], [0], [1], [0, 0, 1, 1], [], []>} : vector<7x256xbf16>, vector<256x256xbf16>, vector<7x256xf32> -> vector<7x256xf32>
    %33 = arith.addf %27, %32 : vector<7x256xf32>
    %c0_32 = arith.constant 0 : index
    %c0_33 = arith.constant 0 : index
    %34 = vector.load %arg5[%c0_32, %c0_33] : memref<1x256xf32, #tpu.memory_space<vmem>>, vector<1x256xf32>
    %35 = vector.broadcast %34 : vector<1x256xf32> to vector<7x256xf32>
    %36 = arith.addf %33, %35 : vector<7x256xf32>
    %cst_34 = arith.constant 0.000000e+00 : f32
    %37 = vector.broadcast %cst_34 : f32 to vector<7x256xf32>
    %38 = arith.maximumf %36, %37 : vector<7x256xf32>
    %c0_35 = arith.constant 0 : index
    %c256_36 = arith.constant 256 : index
    %39 = vector.load %arg16[%c0_35, %c256_36] : memref<8x512xf32, #tpu.memory_space<vmem>>, vector<7x256xf32>
    tpu.vector_store %arg16[%c0_35, %c256_36], %38 {strides = array<i32>} : memref<8x512xf32, #tpu.memory_space<vmem>>, vector<7x256xf32>,
    %c0_37 = arith.constant 0 : index
    %c256_38 = arith.constant 256 : index
    %40 = vector.load %arg16[%c0_37, %c256_38] : memref<8x512xf32, #tpu.memory_space<vmem>>, vector<7x256xf32>
    %c0_39 = arith.constant 0 : index
    %c0_40 = arith.constant 0 : index
    %41 = vector.load %arg6[%c0_39, %c0_40] : memref<256x896xbf16, #tpu.memory_space<vmem>>, vector<256x896xbf16>
    %42 = arith.truncf %40 : vector<7x256xf32> to vector<7x256xbf16>
    %cst_41 = arith.constant dense<0.000000e+00> : vector<7x896xf32>
    %43 = tpu.matmul %42, %41, %cst_41 {dimension_numbers = #tpu.dot_dimension_numbers<[1], [0], [0], [1], [0, 0, 1, 1], [], []>} : vector<7x256xbf16>, vector<256x896xbf16>, vector<7x896xf32> -> vector<7x896xf32>
    %44 = vector.extract_strided_slice %43 {offsets = [0, 0], sizes = [1, 128], strides = [1, 1]} : vector<7x896xf32> to vector<1x128xf32>
    %45 = vector.extract_strided_slice %43 {offsets = [1, 128], sizes = [1, 128], strides = [1, 1]} : vector<7x896xf32> to vector<1x128xf32>
    %46 = arith.addf %44, %45 : vector<1x128xf32>
    %47 = vector.extract_strided_slice %43 {offsets = [2, 256], sizes = [1, 128], strides = [1, 1]} : vector<7x896xf32> to vector<1x128xf32>
    %48 = arith.addf %46, %47 : vector<1x128xf32>
    %49 = vector.extract_strided_slice %43 {offsets = [3, 384], sizes = [1, 128], strides = [1, 1]} : vector<7x896xf32> to vector<1x128xf32>
    %50 = arith.addf %48, %49 : vector<1x128xf32>
    %51 = vector.extract_strided_slice %43 {offsets = [4, 512], sizes = [1, 128], strides = [1, 1]} : vector<7x896xf32> to vector<1x128xf32>
    %52 = arith.addf %50, %51 : vector<1x128xf32>
    %53 = vector.extract_strided_slice %43 {offsets = [5, 640], sizes = [1, 128], strides = [1, 1]} : vector<7x896xf32> to vector<1x128xf32>
    %54 = arith.addf %52, %53 : vector<1x128xf32>
    %55 = vector.extract_strided_slice %43 {offsets = [6, 768], sizes = [1, 128], strides = [1, 1]} : vector<7x896xf32> to vector<1x128xf32>
    %56 = arith.addf %54, %55 : vector<1x128xf32>
    %c0_42 = arith.constant 0 : index
    %c0_43 = arith.constant 0 : index
    %57 = vector.load %arg7[%c0_42, %c0_43] : memref<1x128xf32, #tpu.memory_space<vmem>>, vector<1x128xf32>
    %58 = arith.addf %56, %57 : vector<1x128xf32>
    %cst_44 = arith.constant 0.000000e+00 : f32
    %59 = vector.broadcast %cst_44 : f32 to vector<1x128xf32>
    %60 = arith.maximumf %58, %59 : vector<1x128xf32>
    %c0_45 = arith.constant 0 : index
    %c0_46 = arith.constant 0 : index
    %61 = vector.load %arg8[%c0_45, %c0_46] : memref<128x1792xbf16, #tpu.memory_space<vmem>>, vector<128x1792xbf16>
    %62 = arith.truncf %60 : vector<1x128xf32> to vector<1x128xbf16>
    %cst_47 = arith.constant dense<0.000000e+00> : vector<1x1792xf32>
    %63 = tpu.matmul %62, %61, %cst_47 {dimension_numbers = #tpu.dot_dimension_numbers<[1], [0], [0], [1], [0, 0, 1, 1], [], []>} : vector<1x128xbf16>, vector<128x1792xbf16>, vector<1x1792xf32> -> vector<1x1792xf32>
    %c0_48 = arith.constant 0 : index
    %c0_49 = arith.constant 0 : index
    %64 = vector.load %arg9[%c0_48, %c0_49] : memref<1x1792xf32, #tpu.memory_space<vmem>>, vector<1x1792xf32>
    %65 = arith.addf %63, %64 : vector<1x1792xf32>
    %cst_50 = arith.constant 0.000000e+00 : f32
    %66 = vector.broadcast %cst_50 : f32 to vector<1x1792xf32>
    %67 = arith.maximumf %65, %66 : vector<1x1792xf32>
    %68 = vector.extract_strided_slice %67 {offsets = [0, 0], sizes = [1, 256], strides = [1, 1]} : vector<1x1792xf32> to vector<1x256xf32>
    %c0_51 = arith.constant 0 : index
    %c0_52 = arith.constant 0 : index
    %69 = vector.load %arg16[%c0_51, %c0_52] : memref<8x512xf32, #tpu.memory_space<vmem>>, vector<1x256xf32>
    tpu.vector_store %arg16[%c0_51, %c0_52], %68 {strides = array<i32>} : memref<8x512xf32, #tpu.memory_space<vmem>>, vector<1x256xf32>,
    %70 = vector.extract_strided_slice %67 {offsets = [0, 256], sizes = [1, 256], strides = [1, 1]} : vector<1x1792xf32> to vector<1x256xf32>
    %c1_53 = arith.constant 1 : index
    %c0_54 = arith.constant 0 : index
    %71 = vector.load %arg16[%c1_53, %c0_54] : memref<8x512xf32, #tpu.memory_space<vmem>>, vector<1x256xf32>
    tpu.vector_store %arg16[%c1_53, %c0_54], %70 {strides = array<i32>} : memref<8x512xf32, #tpu.memory_space<vmem>>, vector<1x256xf32>,
    %72 = vector.extract_strided_slice %67 {offsets = [0, 512], sizes = [1, 256], strides = [1, 1]} : vector<1x1792xf32> to vector<1x256xf32>
    %c2_55 = arith.constant 2 : index
    %c0_56 = arith.constant 0 : index
    %73 = vector.load %arg16[%c2_55, %c0_56] : memref<8x512xf32, #tpu.memory_space<vmem>>, vector<1x256xf32>
    tpu.vector_store %arg16[%c2_55, %c0_56], %72 {strides = array<i32>} : memref<8x512xf32, #tpu.memory_space<vmem>>, vector<1x256xf32>,
    %74 = vector.extract_strided_slice %67 {offsets = [0, 768], sizes = [1, 256], strides = [1, 1]} : vector<1x1792xf32> to vector<1x256xf32>
    %c3 = arith.constant 3 : index
    %c0_57 = arith.constant 0 : index
    %75 = vector.load %arg16[%c3, %c0_57] : memref<8x512xf32, #tpu.memory_space<vmem>>, vector<1x256xf32>
    tpu.vector_store %arg16[%c3, %c0_57], %74 {strides = array<i32>} : memref<8x512xf32, #tpu.memory_space<vmem>>, vector<1x256xf32>,
    %76 = vector.extract_strided_slice %67 {offsets = [0, 1024], sizes = [1, 256], strides = [1, 1]} : vector<1x1792xf32> to vector<1x256xf32>
    %c4 = arith.constant 4 : index
    %c0_58 = arith.constant 0 : index
    %77 = vector.load %arg16[%c4, %c0_58] : memref<8x512xf32, #tpu.memory_space<vmem>>, vector<1x256xf32>
    tpu.vector_store %arg16[%c4, %c0_58], %76 {strides = array<i32>} : memref<8x512xf32, #tpu.memory_space<vmem>>, vector<1x256xf32>,
    %78 = vector.extract_strided_slice %67 {offsets = [0, 1280], sizes = [1, 256], strides = [1, 1]} : vector<1x1792xf32> to vector<1x256xf32>
    %c5 = arith.constant 5 : index
    %c0_59 = arith.constant 0 : index
    %79 = vector.load %arg16[%c5, %c0_59] : memref<8x512xf32, #tpu.memory_space<vmem>>, vector<1x256xf32>
    tpu.vector_store %arg16[%c5, %c0_59], %78 {strides = array<i32>} : memref<8x512xf32, #tpu.memory_space<vmem>>, vector<1x256xf32>,
    %80 = vector.extract_strided_slice %67 {offsets = [0, 1536], sizes = [1, 256], strides = [1, 1]} : vector<1x1792xf32> to vector<1x256xf32>
    %c6 = arith.constant 6 : index
    %c0_60 = arith.constant 0 : index
    %81 = vector.load %arg16[%c6, %c0_60] : memref<8x512xf32, #tpu.memory_space<vmem>>, vector<1x256xf32>
    tpu.vector_store %arg16[%c6, %c0_60], %80 {strides = array<i32>} : memref<8x512xf32, #tpu.memory_space<vmem>>, vector<1x256xf32>,
    %c0_61 = arith.constant 0 : index
    %c0_62 = arith.constant 0 : index
    %82 = vector.load %arg16[%c0_61, %c0_62] : memref<8x512xf32, #tpu.memory_space<vmem>>, vector<7x512xf32>
    %c1_63 = arith.constant 1 : index
    %c0_64 = arith.constant 0 : index
    %83 = vector.load %arg16[%c1_63, %c0_64] : memref<8x512xf32, #tpu.memory_space<vmem>>, vector<7x512xf32>
    %c0_65 = arith.constant 0 : index
    %c0_66 = arith.constant 0 : index
    %84 = vector.load %arg10[%c0_65, %c0_66] : memref<512x512xbf16, #tpu.memory_space<vmem>>, vector<512x512xbf16>
    %85 = arith.truncf %82 : vector<7x512xf32> to vector<7x512xbf16>
    %cst_67 = arith.constant dense<0.000000e+00> : vector<7x512xf32>
    %86 = tpu.matmul %85, %84, %cst_67 {dimension_numbers = #tpu.dot_dimension_numbers<[1], [0], [0], [1], [0, 0, 1, 1], [], []>} : vector<7x512xbf16>, vector<512x512xbf16>, vector<7x512xf32> -> vector<7x512xf32>
    %c0_68 = arith.constant 0 : index
    %c0_69 = arith.constant 0 : index
    %87 = vector.load %arg12[%c0_68, %c0_69] : memref<1x256xf32, #tpu.memory_space<vmem>>, vector<1x256xf32>
    %88 = vector.extract_strided_slice %86 {offsets = [0, 0], sizes = [7, 256], strides = [1, 1]} : vector<7x512xf32> to vector<7x256xf32>
    %89 = vector.broadcast %87 : vector<1x256xf32> to vector<7x256xf32>
    %90 = arith.addf %88, %89 : vector<7x256xf32>
    %cst_70 = arith.constant 0.000000e+00 : f32
    %91 = vector.broadcast %cst_70 : f32 to vector<7x256xf32>
    %92 = arith.maximumf %90, %91 : vector<7x256xf32>
    %93 = vector.extract_strided_slice %86 {offsets = [0, 256], sizes = [7, 256], strides = [1, 1]} : vector<7x512xf32> to vector<7x256xf32>
    %c0_71 = arith.constant 0 : index
    %c0_72 = arith.constant 0 : index
    %94 = vector.load %arg11[%c0_71, %c0_72] : memref<512x256xbf16, #tpu.memory_space<vmem>>, vector<512x256xbf16>
    %95 = arith.truncf %83 : vector<7x512xf32> to vector<7x512xbf16>
    %cst_73 = arith.constant dense<0.000000e+00> : vector<7x256xf32>
    %96 = tpu.matmul %95, %94, %cst_73 {dimension_numbers = #tpu.dot_dimension_numbers<[1], [0], [0], [1], [0, 0, 1, 1], [], []>} : vector<7x512xbf16>, vector<512x256xbf16>, vector<7x256xf32> -> vector<7x256xf32>
    %97 = arith.addf %93, %96 : vector<7x256xf32>
    %98 = vector.broadcast %87 : vector<1x256xf32> to vector<7x256xf32>
    %99 = arith.addf %97, %98 : vector<7x256xf32>
    %cst_74 = arith.constant 0.000000e+00 : f32
    %100 = vector.broadcast %cst_74 : f32 to vector<7x256xf32>
    %101 = arith.maximumf %99, %100 : vector<7x256xf32>
    %c0_75 = arith.constant 0 : index
    %c0_76 = arith.constant 0 : index
    %102 = vector.load %arg17[%c0_75, %c0_76] : memref<8x512xf32, #tpu.memory_space<vmem>>, vector<7x256xf32>
    tpu.vector_store %arg17[%c0_75, %c0_76], %92 {strides = array<i32>} : memref<8x512xf32, #tpu.memory_space<vmem>>, vector<7x256xf32>,
    %c1_77 = arith.constant 1 : index
    %c0_78 = arith.constant 0 : index
    %103 = vector.load %arg18[%c1_77, %c0_78] : memref<8x512xf32, #tpu.memory_space<vmem>>, vector<7x256xf32>
    tpu.vector_store %arg18[%c1_77, %c0_78], %101 {strides = array<i32>} : memref<8x512xf32, #tpu.memory_space<vmem>>, vector<7x256xf32>,
    %c0_79 = arith.constant 0 : index
    %c0_80 = arith.constant 0 : index
    %104 = vector.load %arg17[%c0_79, %c0_80] : memref<8x512xf32, #tpu.memory_space<vmem>>, vector<7x512xf32>
    %c0_81 = arith.constant 0 : index
    %c0_82 = arith.constant 0 : index
    %c0_83 = arith.constant 0 : index
    %105 = vector.load %arg13[%c0_81, %c0_82, %c0_83] : memref<3x512x128xbf16, #tpu.memory_space<vmem>>, vector<1x512x128xbf16>
    %106 = vector.shape_cast %105 : vector<1x512x128xbf16> to vector<512x128xbf16>
    %107 = arith.truncf %104 : vector<7x512xf32> to vector<7x512xbf16>
    %cst_84 = arith.constant dense<0.000000e+00> : vector<7x128xf32>
    %108 = tpu.matmul %107, %106, %cst_84 {dimension_numbers = #tpu.dot_dimension_numbers<[1], [0], [0], [1], [0, 0, 1, 1], [], []>} : vector<7x512xbf16>, vector<512x128xbf16>, vector<7x128xf32> -> vector<7x128xf32>
    %c1_85 = arith.constant 1 : index
    %c0_86 = arith.constant 0 : index
    %109 = vector.load %arg18[%c1_85, %c0_86] : memref<8x512xf32, #tpu.memory_space<vmem>>, vector<7x512xf32>
    %c1_87 = arith.constant 1 : index
    %c0_88 = arith.constant 0 : index
    %c0_89 = arith.constant 0 : index
    %110 = vector.load %arg13[%c1_87, %c0_88, %c0_89] : memref<3x512x128xbf16, #tpu.memory_space<vmem>>, vector<1x512x128xbf16>
    %111 = vector.shape_cast %110 : vector<1x512x128xbf16> to vector<512x128xbf16>
    %112 = arith.truncf %109 : vector<7x512xf32> to vector<7x512xbf16>
    %cst_90 = arith.constant dense<0.000000e+00> : vector<7x128xf32>
    %113 = tpu.matmul %112, %111, %cst_90 {dimension_numbers = #tpu.dot_dimension_numbers<[1], [0], [0], [1], [0, 0, 1, 1], [], []>} : vector<7x512xbf16>, vector<512x128xbf16>, vector<7x128xf32> -> vector<7x128xf32>
    %114 = arith.addf %108, %113 : vector<7x128xf32>
    %c1_91 = arith.constant 1 : index
    %c0_92 = arith.constant 0 : index
    %115 = vector.load %arg17[%c1_91, %c0_92] : memref<8x512xf32, #tpu.memory_space<vmem>>, vector<7x512xf32>
    %c2_93 = arith.constant 2 : index
    %c0_94 = arith.constant 0 : index
    %c0_95 = arith.constant 0 : index
    %116 = vector.load %arg13[%c2_93, %c0_94, %c0_95] : memref<3x512x128xbf16, #tpu.memory_space<vmem>>, vector<1x512x128xbf16>
    %117 = vector.shape_cast %116 : vector<1x512x128xbf16> to vector<512x128xbf16>
    %118 = arith.truncf %115 : vector<7x512xf32> to vector<7x512xbf16>
    %cst_96 = arith.constant dense<0.000000e+00> : vector<7x128xf32>
    %119 = tpu.matmul %118, %117, %cst_96 {dimension_numbers = #tpu.dot_dimension_numbers<[1], [0], [0], [1], [0, 0, 1, 1], [], []>} : vector<7x512xbf16>, vector<512x128xbf16>, vector<7x128xf32> -> vector<7x128xf32>
    %120 = arith.addf %114, %119 : vector<7x128xf32>
    %c0_97 = arith.constant 0 : index
    %c0_98 = arith.constant 0 : index
    %121 = vector.load %arg14[%c0_97, %c0_98] : memref<1x128xf32, #tpu.memory_space<vmem>>, vector<1x128xf32>
    %122 = vector.broadcast %121 : vector<1x128xf32> to vector<7x128xf32>
    %123 = arith.addf %120, %122 : vector<7x128xf32>
    %c0_99 = arith.constant 0 : index
    %c0_100 = arith.constant 0 : index
    %c0_101 = arith.constant 0 : index
    %124 = vector.load %arg15[%c0_99, %c0_100, %c0_101] : memref<1x7x128xf32, #tpu.memory_space<vmem>>, vector<1x7x128xf32>
    %125 = vector.shape_cast %124 : vector<1x7x128xf32> to vector<7x128xf32>
    %126 = vector.shape_cast %123 : vector<7x128xf32> to vector<1x7x128xf32>
    tpu.vector_store %arg15[%c0_99, %c0_100, %c0_101], %126 {strides = array<i32>} : memref<1x7x128xf32, #tpu.memory_space<vmem>>, vector<1x7x128xf32>,
    return
  }
  func.func @transform_0(%arg0: i32) -> (i32, i32, i32) {
    %c0_i32 = arith.constant 0 : i32
    %c0_i32_0 = arith.constant 0 : i32
    %c0_i32_1 = arith.constant 0 : i32
    return %arg0, %c0_i32, %c0_i32_0 : i32, i32, i32
  }
  func.func @transform_1(%arg0: i32) -> (i32, i32) {
    %c0_i32 = arith.constant 0 : i32
    %c0_i32_0 = arith.constant 0 : i32
    %c0_i32_1 = arith.constant 0 : i32
    return %c0_i32, %c0_i32_0 : i32, i32
  }
  func.func @transform_2(%arg0: i32) -> (i32, i32) {
    %c0_i32 = arith.constant 0 : i32
    %c0_i32_0 = arith.constant 0 : i32
    %c0_i32_1 = arith.constant 0 : i32
    return %c0_i32, %c0_i32_0 : i32, i32
  }
  func.func @transform_3(%arg0: i32) -> (i32, i32, i32) {
    %c0_i32 = arith.constant 0 : i32
    %c0_i32_0 = arith.constant 0 : i32
    %c0_i32_1 = arith.constant 0 : i32
    %c0_i32_2 = arith.constant 0 : i32
    return %c0_i32, %c0_i32_0, %c0_i32_1 : i32, i32, i32
  }
  func.func @transform_4(%arg0: i32) -> (i32, i32) {
    %c0_i32 = arith.constant 0 : i32
    %c0_i32_0 = arith.constant 0 : i32
    %c0_i32_1 = arith.constant 0 : i32
    return %c0_i32, %c0_i32_0 : i32, i32
  }
  func.func @transform_5(%arg0: i32) -> (i32, i32) {
    %c0_i32 = arith.constant 0 : i32
    %c0_i32_0 = arith.constant 0 : i32
    %c0_i32_1 = arith.constant 0 : i32
    return %c0_i32, %c0_i32_0 : i32, i32
  }
  func.func @transform_6(%arg0: i32) -> (i32, i32) {
    %c0_i32 = arith.constant 0 : i32
    %c0_i32_0 = arith.constant 0 : i32
    %c0_i32_1 = arith.constant 0 : i32
    return %c0_i32, %c0_i32_0 : i32, i32
  }
  func.func @transform_7(%arg0: i32) -> (i32, i32) {
    %c0_i32 = arith.constant 0 : i32
    %c0_i32_0 = arith.constant 0 : i32
    %c0_i32_1 = arith.constant 0 : i32
    return %c0_i32, %c0_i32_0 : i32, i32
  }
  func.func @transform_8(%arg0: i32) -> (i32, i32) {
    %c0_i32 = arith.constant 0 : i32
    %c0_i32_0 = arith.constant 0 : i32
    %c0_i32_1 = arith.constant 0 : i32
    return %c0_i32, %c0_i32_0 : i32, i32
  }
  func.func @transform_9(%arg0: i32) -> (i32, i32) {
    %c0_i32 = arith.constant 0 : i32
    %c0_i32_0 = arith.constant 0 : i32
    %c0_i32_1 = arith.constant 0 : i32
    return %c0_i32, %c0_i32_0 : i32, i32
  }
  func.func @transform_10(%arg0: i32) -> (i32, i32) {
    %c0_i32 = arith.constant 0 : i32
    %c0_i32_0 = arith.constant 0 : i32
    %c0_i32_1 = arith.constant 0 : i32
    return %c0_i32, %c0_i32_0 : i32, i32
  }
  func.func @transform_11(%arg0: i32) -> (i32, i32) {
    %c0_i32 = arith.constant 0 : i32
    %c0_i32_0 = arith.constant 0 : i32
    %c0_i32_1 = arith.constant 0 : i32
    return %c0_i32, %c0_i32_0 : i32, i32
  }
  func.func @transform_12(%arg0: i32) -> (i32, i32, i32) {
    %c0_i32 = arith.constant 0 : i32
    %c0_i32_0 = arith.constant 0 : i32
    %c0_i32_1 = arith.constant 0 : i32
    %c0_i32_2 = arith.constant 0 : i32
    return %c0_i32, %c0_i32_0, %c0_i32_1 : i32, i32, i32
  }
  func.func @transform_13(%arg0: i32) -> (i32, i32) {
    %c0_i32 = arith.constant 0 : i32
    %c0_i32_0 = arith.constant 0 : i32
    %c0_i32_1 = arith.constant 0 : i32
    return %c0_i32, %c0_i32_0 : i32, i32
  }
  func.func @transform_14(%arg0: i32) -> (i32, i32, i32) {
    %c0_i32 = arith.constant 0 : i32
    %c0_i32_0 = arith.constant 0 : i32
    %c0_i32_1 = arith.constant 0 : i32
    return %arg0, %c0_i32, %c0_i32_0 : i32, i32, i32
  }
}

</mosaic_0001>

<bundles_post_ra>
// kernel: forward.1
= control target key start
LH: loop header
LB: loop body
LE: loop exit
PB: predicated region body
PF: predicated region fallthrough
CT: control target
= control target key end

     0   :  { %s8245_s29 = smov 0   ;;  %s10376_s0 = inlined_call_operand.vmem [shape: bf16[2,14,256], index: 0, kind: input, shape index: {}]   ;;  %s10377_s1 = inlined_call_operand.vmem [shape: bf16[256,256], index: 1, kind: input, shape index: {}]   ;;  %s10378_s2 = inlined_call_operand.vmem [shape: f32[1,256], index: 2, kind: input, shape index: {}]   ;;  %s10379_s3 = inlined_call_operand.vmem [shape: bf16[3,256,256], index: 3, kind: input, shape index: {}]   ;;  %s10380_s4 = inlined_call_operand.vmem [shape: f32[1,256], index: 4, kind: input, shape index: {}]   ;;  %s10381_s5 = inlined_call_operand.vmem [shape: bf16[256,896], index: 5, kind: input, shape index: {}]   ;;  %s10382_s6 = inlined_call_operand.vmem [shape: f32[1,128], index: 6, kind: input, shape index: {}]   ;;  %s10383_s7 = inlined_call_operand.vmem [shape: bf16[128,1792], index: 7, kind: input, shape index: {}]   ;;  %s10384_s8 = inlined_call_operand.vmem [shape: f32[1,1792], index: 8, kind: input, shape index: {}]   ;;  %s10385_s9 = inlined_call_operand.vmem [shape: bf16[512,512], index: 9, kind: input, shape index: {}]   ;;  %s10386_s10 = inlined_call_operand.vmem [shape: bf16[512,256], index: 10, kind: input, shape index: {}]   ;;  %s10387_s11 = inlined_call_operand.vmem [shape: f32[1,256], index: 11, kind: input, shape index: {}]   ;;  %s10388_s12 = inlined_call_operand.vmem [shape: bf16[3,512,128], index: 12, kind: input, shape index: {}]   ;;  %s10389_s13 = inlined_call_operand.vmem [shape: f32[1,128], index: 13, kind: input, shape index: {}]   ;;  %s10390_s14 = inlined_call_operand.vmem [shape: f32[2,7,128], index: 14, kind: output, shape index: {}]  }
   0x1 LB: > { %s6241_s30 = sadd.s32 4294967295, %s8165_s29   ;;  %p6245_p0 = scmp.ge.s32.totalorder %s8165_s29, 1  ;;  %s8165_s29 = sphi %s8245_s29, %s24_s29  }
   0x2   : > { %p412_p1 = scmp.lt.s32.totalorder %s8165_s29, 3 }
   0x4   : > { %p413_p2 = pnand %p6245_p0, %p412_p1 }
   0x5   : > { %v7252_v0 = vld [vmem:[%s10377_s1 + $0x4] ss:$8 sps:$4 sm:$0xff] (!%p413_p2)   ;;  %v7254_v1 = vld [vmem:[%s10377_s1] ss:$8 sps:$4 sm:$0xff] (!%p413_p2)   ;;  %v7255_v2 = vld [vmem:[%s10377_s1 + $0x14] ss:$8 sps:$4 sm:$0xff] (!%p413_p2)  }
   0x6   : > { %416 = sbr.rel (%p413_p2) target bundleno = 1866 (0x74a), region = 76  ;;  %695 = vmatprep.subr.bf16.mxu0 (!%p413_p2), %v7252_v0  ;;  %v7257_v3 = vld [vmem:[%s10377_s1 + $0x10] ss:$8 sps:$4 sm:$0xff] (!%p413_p2)   ;;  %v7258_v4 = vld [vmem:[%s10377_s1 + $0x24] ss:$8 sps:$4 sm:$0xff] (!%p413_p2)   ;;  %p457_p3 = scmp.lt.s32.totalorder (!%p413_p2), %s6241_s30, 1 }
   0x7   : > { %696 = vmatpush1.bf16.msra.mxu0 (!%p413_p2), %v7254_v1  ;;  %v7260_v5 = vld [vmem:[%s10377_s1 + $0x20] ss:$8 sps:$4 sm:$0xff] (!%p413_p2)   ;;  %v7261_v6 = vld [vmem:[%s10377_s1 + $0x34] ss:$8 sps:$4 sm:$0xff] (!%p413_p2)   ;;  %v7263_v7 = vld [vmem:[%s10377_s1 + $0x30] ss:$8 sps:$4 sm:$0xff] (!%p413_p2)  }
   0x8   : > { %697 = vmatprep.subr.bf16.mxu0 (!%p413_p2), %v7255_v2  ;;  %v7264_v8 = vld [vmem:[%s10377_s1 + $0x44] ss:$8 sps:$4 sm:$0xff] (!%p413_p2)   ;;  %v7266_v9 = vld [vmem:[%s10377_s1 + $0x40] ss:$8 sps:$4 sm:$0xff] (!%p413_p2)   ;;  %v7267_v10 = vld [vmem:[%s10377_s1 + $0x54] ss:$8 sps:$4 sm:$0xff] (!%p413_p2)  }
   0x9   : > { %v7269_v11 = vld [vmem:[%s10377_s1 + $0x50] ss:$8 sps:$4 sm:$0xff] (!%p413_p2)   ;;  %v7270_v12 = vld [vmem:[%s10377_s1 + $0x64] ss:$8 sps:$4 sm:$0xff] (!%p413_p2)   ;;  %v7272_v13 = vld [vmem:[%s10377_s1 + $0x60] ss:$8 sps:$4 sm:$0xff] (!%p413_p2)  }
   0xa   : > { %v7273_v14 = vld [vmem:[%s10377_s1 + $0x74] ss:$8 sps:$4 sm:$0xff] (!%p413_p2)   ;;  %v7303_v16 = vld [vmem:[%s10379_s3 + $0x104] ss:$8 sps:$4 sm:$0xff] (!%p413_p2)   ;;  %v7305_v17 = vld [vmem:[%s10379_s3 + $0x100] ss:$8 sps:$4 sm:$0xff] (!%p413_p2)  }
   0xb   : > { %698 = vmatpush1.bf16.msra.mxu0 (!%p413_p2), %v7257_v3  ;;  %992 = vmatprep.subr.bf16.mxu1 (!%p413_p2), %v7303_v16  ;;  %v7306_v18 = vld [vmem:[%s10379_s3 + $0x114] ss:$8 sps:$4 sm:$0xff] (!%p413_p2)   ;;  %v7275_v19 = vld [vmem:[%s10377_s1 + $0x70] ss:$8 sps:$4 sm:$0xff] (!%p413_p2)   ;;  %v7312_v21 = vld [vmem:[%s10379_s3 + $0x124] ss:$8 sps:$4 sm:$0xff] (!%p413_p2)  }
   0xc   : > { %699 = vmatprep.subr.bf16.mxu0 (!%p413_p2), %v7258_v4  ;;  %993 = vmatpush1.bf16.msra.mxu1 (!%p413_p2), %v7305_v17  ;;  %v7308_v20 = vld [vmem:[%s10379_s3 + $0x110] ss:$8 sps:$4 sm:$0xff] (!%p413_p2)   ;;  %v7276_v22 = vld [vmem:[%s10377_s1 + $0x84] ss:$8 sps:$4 sm:$0xff] (!%p413_p2)   ;;  %v7278_v23 = vld [vmem:[%s10377_s1 + $0x80] ss:$8 sps:$4 sm:$0xff] (!%p413_p2)  }
   0xd   : > { %s10394_s30 = smov (!%p457_p3, %s6241_s30), 1  ;;  %994 = vmatprep.subr.bf16.mxu1 %v7306_v18  ;;  %v7314_v24 = vld [vmem:[%s10379_s3 + $0x120] ss:$8 sps:$4 sm:$0xff]   ;;  %v7318_v25 = vld [vmem:[%s10379_s3 + $0x134] ss:$8 sps:$4 sm:$0xff]   ;;  %vm748_vm1 = vcmask 1041408  }
   0xe   : > { %s7086_s23 = sshll.u32 %s10394_s30, 4  ;;  %v7279_v26 = vld [vmem:[%s10377_s1 + $0x94] ss:$8 sps:$4 sm:$0xff]   ;;  %v7281_v27 = vld [vmem:[%s10377_s1 + $0x90] ss:$8 sps:$4 sm:$0xff]  }
   0xf   : > { %700 = vmatpush1.bf16.msra.mxu0 %v7260_v5  ;;  %s8295_s28 = scalar_lea.vmem %s10376_s0, %s7086_s23  ;;  %v7320_v28 = vld [vmem:[%s10379_s3 + $0x130] ss:$8 sps:$4 sm:$0xff]   ;;  %v7324_v29 = vld [vmem:[%s10379_s3 + $0x144] ss:$8 sps:$4 sm:$0xff]   ;;  %v7284_v31 = vld [vmem:[%s10377_s1 + $0xa0] ss:$8 sps:$4 sm:$0xff]  }
  0x10   : > { %701 = vmatprep.subr.bf16.mxu0 %v7261_v6  ;;  %v7302_v15 = vld [vmem:[%s8295_s28 + $0x4] ss:$8 sps:$4 sm:$0x7f]   ;;  %995 = vmatpush1.bf16.msra.mxu1 %v7308_v20  ;;  %v7326_v32 = vld [vmem:[%s10379_s3 + $0x140] ss:$8 sps:$4 sm:$0xff]  }
  0x11   : > { %727 = vmatprep.mubr.bf16.mxu0 %v7302_v15  ;;  %996 = vmatprep.subr.bf16.mxu1 %v7312_v21  ;;  %v7282_v30 = vld [vmem:[%s10377_s1 + $0xa4] ss:$8 sps:$4 sm:$0xff]   ;;  %v7330_v33 = vld [vmem:[%s10379_s3 + $0x154] ss:$8 sps:$4 sm:$0xff]   ;;  %v7287_v35 = vld [vmem:[%s10377_s1 + $0xb0] ss:$8 sps:$4 sm:$0xff]   ;;  %v467_v21 = vlaneseq }
  0x12   : > { %v7285_v34 = vld [vmem:[%s10377_s1 + $0xb4] ss:$8 sps:$4 sm:$0xff]   ;;  %v7332_v36 = vld [vmem:[%s10379_s3 + $0x150] ss:$8 sps:$4 sm:$0xff]   ;;  %v7336_v37 = vld [vmem:[%s10379_s3 + $0x164] ss:$8 sps:$4 sm:$0xff]  }
  0x13   : > { %702 = vmatpush1.bf16.msra.mxu0 %v7263_v7  ;;  %v7288_v38 = vld [vmem:[%s10377_s1 + $0xc4] ss:$8 sps:$4 sm:$0xff]   ;;  %v7290_v39 = vld [vmem:[%s10377_s1 + $0xc0] ss:$8 sps:$4 sm:$0xff]   ;;  %v7342_v41 = vld [vmem:[%s10379_s3 + $0x174] ss:$8 sps:$4 sm:$0xff]  }
  0x14   : > { %703 = vmatprep.subr.bf16.mxu0 %v7264_v8  ;;  %997 = vmatpush1.bf16.msra.mxu1 %v7314_v24  ;;  %v7338_v40 = vld [vmem:[%s10379_s3 + $0x160] ss:$8 sps:$4 sm:$0xff]   ;;  %v7291_v42 = vld [vmem:[%s10377_s1 + $0xd4] ss:$8 sps:$4 sm:$0xff]   ;;  %v7293_v43 = vld [vmem:[%s10377_s1 + $0xd0] ss:$8 sps:$4 sm:$0xff]  }
  0x15   : > { %998 = vmatprep.subr.bf16.mxu1 %v7318_v25  ;;  %v7344_v44 = vld [vmem:[%s10379_s3 + $0x170] ss:$8 sps:$4 sm:$0xff]   ;;  %v7348_v45 = vld [vmem:[%s10379_s3 + $0x184] ss:$8 sps:$4 sm:$0xff]   ;;  %v7296_v47 = vld [vmem:[%s10377_s1 + $0xe0] ss:$8 sps:$4 sm:$0xff]  }
  0x16   : > { %v7294_v46 = vld [vmem:[%s10377_s1 + $0xe4] ss:$8 sps:$4 sm:$0xff]   ;;  %v7350_v48 = vld [vmem:[%s10379_s3 + $0x180] ss:$8 sps:$4 sm:$0xff]   ;;  %v7354_v49 = vld [vmem:[%s10379_s3 + $0x194] ss:$8 sps:$4 sm:$0xff]  }
  0x17   : > { %704 = vmatpush1.bf16.msra.mxu0 %v7266_v9  ;;  %v7297_v50 = vld [vmem:[%s10377_s1 + $0xf4] ss:$8 sps:$4 sm:$0xff]   ;;  %v7356_v51 = vld [vmem:[%s10379_s3 + $0x190] ss:$8 sps:$4 sm:$0xff]   ;;  %v7360_v53 = vld [vmem:[%s10379_s3 + $0x1a4] ss:$8 sps:$4 sm:$0xff]  }
  0x18   : > { %705 = vmatprep.subr.bf16.mxu0 %v7267_v10  ;;  %999 = vmatpush1.bf16.msra.mxu1 %v7320_v28  ;;  %v7299_v52 = vld [vmem:[%s10377_s1 + $0xf0] ss:$8 sps:$4 sm:$0xff]   ;;  %v7311_v54 = vld [vmem:[%s10379_s3 + $0x4] ss:$8 sps:$4 sm:$0xff]   ;;  %v7362_v56 = vld [vmem:[%s10379_s3 + $0x1a0] ss:$8 sps:$4 sm:$0xff]  }
  0x19   : > { %1000 = vmatprep.subr.bf16.mxu1 %v7324_v29  ;;  %v7300_v55 = vld [vmem:[%s8295_s28] ss:$8 sps:$4 sm:$0x7f]   ;;  %v7366_v58 = vld [vmem:[%s10379_s3 + $0x1b4] ss:$8 sps:$4 sm:$0xff]   ;;  %vm469_vm0 = vcmp.lt.s32.totalorder %v467_v21, 512 }
  0x1a   : > { %v7309_v57 = vld [vmem:[%s10379_s3] ss:$8 sps:$4 sm:$0xff]   ;;  %v7317_v59 = vld [vmem:[%s10379_s3 + $0x14] ss:$8 sps:$4 sm:$0xff]   ;;  %v7368_v60 = vld [vmem:[%s10379_s3 + $0x1b0] ss:$8 sps:$4 sm:$0xff]  }
  0x1b   : > { %706 = vmatpush1.bf16.msra.mxu0 %v7269_v11  ;;  %v7315_v61 = vld [vmem:[%s10379_s3 + $0x10] ss:$8 sps:$4 sm:$0xff]   ;;  %v7323_v62 = vld [vmem:[%s10379_s3 + $0x24] ss:$8 sps:$4 sm:$0xff]   ;;  %v7321_v63 = vld [vmem:[%s10379_s3 + $0x20] ss:$8 sps:$4 sm:$0xff]  }
  0x1c   : > { %707 = vmatprep.subr.bf16.mxu0 %v7270_v12  ;;  %1001 = vmatpush1.bf16.msra.mxu1 %v7326_v32  ;;  %v7329_v0 = vld [vmem:[%s10379_s3 + $0x34] ss:$8 sps:$4 sm:$0xff]   ;;  %v7327_v1 = vld [vmem:[%s10379_s3 + $0x30] ss:$8 sps:$4 sm:$0xff]   ;;  %v7335_v2 = vld [vmem:[%s10379_s3 + $0x44] ss:$8 sps:$4 sm:$0xff]  }
  0x1d   : > { %1002 = vmatprep.subr.bf16.mxu1 %v7330_v33  ;;  %v7333_v3 = vld [vmem:[%s10379_s3 + $0x40] ss:$8 sps:$4 sm:$0xff]   ;;  %v7341_v4 = vld [vmem:[%s10379_s3 + $0x54] ss:$8 sps:$4 sm:$0xff]   ;;  %v7339_v5 = vld [vmem:[%s10379_s3 + $0x50] ss:$8 sps:$4 sm:$0xff]  }
  0x1e   : > { %v7347_v6 = vld [vmem:[%s10379_s3 + $0x64] ss:$8 sps:$4 sm:$0xff]   ;;  %v7345_v7 = vld [vmem:[%s10379_s3 + $0x60] ss:$8 sps:$4 sm:$0xff]   ;;  %v7353_v8 = vld [vmem:[%s10379_s3 + $0x74] ss:$8 sps:$4 sm:$0xff]  }
  0x1f   : > { %708 = vmatpush1.bf16.msra.mxu0 %v7272_v13  ;;  %v7351_v9 = vld [vmem:[%s10379_s3 + $0x70] ss:$8 sps:$4 sm:$0xff]   ;;  %v7359_v10 = vld [vmem:[%s10379_s3 + $0x84] ss:$8 sps:$4 sm:$0xff]   ;;  %v7357_v11 = vld [vmem:[%s10379_s3 + $0x80] ss:$8 sps:$4 sm:$0xff]  }
  0x20   : > { %709 = vmatprep.subr.bf16.mxu0 %v7273_v14  ;;  %1003 = vmatpush1.bf16.msra.mxu1 %v7332_v36  ;;  %v7365_v12 = vld [vmem:[%s10379_s3 + $0x94] ss:$8 sps:$4 sm:$0xff]   ;;  %v7363_v13 = vld [vmem:[%s10379_s3 + $0x90] ss:$8 sps:$4 sm:$0xff]   ;;  %v7371_v14 = vld [vmem:[%s10379_s3 + $0xa4] ss:$8 sps:$4 sm:$0xff]  }
  0x21   : > { %1004 = vmatprep.subr.bf16.mxu1 %v7336_v37  ;;  %v7369_v15 = vld [vmem:[%s10379_s3 + $0xa0] ss:$8 sps:$4 sm:$0xff]   ;;  %v7372_v16 = vld [vmem:[%s10379_s3 + $0x1c4] ss:$8 sps:$4 sm:$0xff]   ;;  %v7377_v18 = vld [vmem:[%s10379_s3 + $0xb4] ss:$8 sps:$4 sm:$0xff]  }
  0x22   : > { %v7374_v17 = vld [vmem:[%s10379_s3 + $0x1c0] ss:$8 sps:$4 sm:$0xff]   ;;  %v7378_v20 = vld [vmem:[%s10379_s3 + $0x1d4] ss:$8 sps:$4 sm:$0xff]   ;;  %v7384_v25 = vld [vmem:[%s10379_s3 + $0x1e4] ss:$8 sps:$4 sm:$0xff]  }
  0x23   : > { %710 = vmatpush1.bf16.msra.mxu0 %v7275_v19  ;;  %v7375_v19 = vld [vmem:[%s10379_s3 + $0xb0] ss:$8 sps:$4 sm:$0xff]   ;;  %v7381_v24 = vld [vmem:[%s10379_s3 + $0xc0] ss:$8 sps:$4 sm:$0xff]   ;;  %v7389_v28 = vld [vmem:[%s10379_s3 + $0xd4] ss:$8 sps:$4 sm:$0xff]  }
  0x24   : > { %711 = vmatprep.subr.bf16.mxu0 %v7276_v22  ;;  %1005 = vmatpush1.bf16.msra.mxu1 %v7338_v40  ;;  %v7380_v22 = vld [vmem:[%s10379_s3 + $0x1d0] ss:$8 sps:$4 sm:$0xff]   ;;  %v7393_v32 = vld [vmem:[%s10379_s3 + $0xe0] ss:$8 sps:$4 sm:$0xff]   ;;  %v7395_v33 = vld [vmem:[%s10379_s3 + $0xe4] ss:$8 sps:$4 sm:$0xff]  }
  0x25   : > { %1006 = vmatprep.subr.bf16.mxu1 %v7342_v41  ;;  %v7387_v29 = vld [vmem:[%s10379_s3 + $0xd0] ss:$8 sps:$4 sm:$0xff]   ;;  %v8556_v37 = vshrl.u32 %v467_v21, 7  ;;  %v513_v40 = vld [vmem:[%s10378_s2] sm:$0x3]  ;;  %vm9688_vm2 = vcmp.lt.s32.totalorder %v467_v21, 256 }
  0x26   : > { %v7399_v36 = vld [vmem:[%s10379_s3 + $0xf0] ss:$8 sps:$4 sm:$0xff]   ;;  %s6248_s28 = sshll.u32 %s10394_s30, 3 }
  0x27   : > { %712 = vmatpush1.bf16.msra.mxu0 %v7278_v23  ;;  %v7383_v23 = vld [vmem:[%s10379_s3 + $0xc4] ss:$8 sps:$4 sm:$0xff]   ;;  %s465_s20 = scalar_lea.vmem %s10390_s14, %s6248_s28 }
  0x28   : > { %713 = vmatprep.subr.bf16.mxu0 %v7279_v26  ;;  %1007 = vmatpush1.bf16.msra.mxu1 %v7344_v44  ;;  %v8167_v26 = vmov 0.0  }
  0x29   : > { %1008 = vmatprep.subr.bf16.mxu1 %v7348_v45  ;;  %477 = vst.msk [vmem:[#allocation4] ss:$8 sm:$0xf] %vm469_vm0, %v8167_v26  ;;  %472 = vst.msk [vmem:[#allocation2 + $0x7] ss:$8 sm:$0xf] %vm469_vm0, %v8167_v26 }
  0x2a   : > { %475 = vst.msk [vmem:[#allocation3 + $0x7] ss:$8 sm:$0xf] %vm469_vm0, %v8167_v26  ;;  %v7420_v26 = vld [vmem:[%s10379_s3 + $0x270] ss:$8 sps:$4 sm:$0xff]  }
  0x2b   : > { %714 = vmatpush1.bf16.msra.mxu0 %v7281_v27  ;;  %v7386_v27 = vld [vmem:[%s10379_s3 + $0x1e0] ss:$8 sps:$4 sm:$0xff]  }
  0x2c   : > { %715 = vmatprep.subr.bf16.mxu0 %v7282_v30  ;;  %1009 = vmatpush1.bf16.msra.mxu1 %v7350_v48  ;;  %v7390_v30 = vld [vmem:[%s10379_s3 + $0x1f4] ss:$8 sps:$4 sm:$0xff]  }
  0x2d   : > { %1010 = vmatprep.subr.bf16.mxu1 %v7354_v49 }
  0x2f   : > { %716 = vmatpush1.bf16.msra.mxu0 %v7284_v31  ;;  %v7392_v31 = vld [vmem:[%s10379_s3 + $0x1f0] ss:$8 sps:$4 sm:$0xff]  }
  0x30   : > { %717 = vmatprep.subr.bf16.mxu0 %v7285_v34  ;;  %1011 = vmatpush1.bf16.msra.mxu1 %v7356_v51  ;;  %v7398_v34 = vld [vmem:[%s10379_s3 + $0x204] ss:$8 sps:$4 sm:$0xff]  }
  0x31   : > { %1012 = vmatprep.subr.bf16.mxu1 %v7360_v53 }
  0x33   : > { %718 = vmatpush1.bf16.msra.mxu0 %v7287_v35  ;;  %v7401_v35 = vld [vmem:[%s10379_s3 + $0xf4] ss:$8 sps:$4 sm:$0xff]  }
  0x34   : > { %719 = vmatprep.subr.bf16.mxu0 %v7288_v38  ;;  %1013 = vmatpush1.bf16.msra.mxu1 %v7362_v56  ;;  %v8559_v38 = vsub.s32 0, %v8556_v37 }
  0x35   : > { %1014 = vmatprep.subr.bf16.mxu1 %v7366_v58 }
  0x36   : > { %v518_v41 = vrot.slane %v513_v40, %v8559_v38 }
  0x37   : > { %720 = vmatpush1.bf16.msra.mxu0 %v7290_v39  ;;  %v8562_v39 = vsub.s32 1, %v8556_v37 }
  0x38   : > { %721 = vmatprep.subr.bf16.mxu0 %v7291_v42  ;;  %1015 = vmatpush1.bf16.msra.mxu1 %v7368_v60 }
  0x39   : > { %1016 = vmatprep.subr.bf16.mxu1 %v7372_v16  ;;  %v522_v42 = vrot.slane %v513_v40, %v8562_v39  ;;  %v7408_v16 = vld [vmem:[%s10379_s3 + $0x230] ss:$8 sps:$4 sm:$0xff]   ;;  %v7440_v40 = vld [vmem:[%s10379_s3 + $0x2d4] ss:$8 sps:$4 sm:$0xff]  }
  0x3b   : > { %722 = vmatpush1.bf16.msra.mxu0 %v7293_v43 }
  0x3c   : > { %723 = vmatprep.subr.bf16.mxu0 %v7294_v46  ;;  %1017 = vmatpush1.bf16.msra.mxu1 %v7374_v17 }
  0x3d   : > { %1018 = vmatprep.subr.bf16.mxu1 %v7378_v20  ;;  %v7416_v20 = vld [vmem:[%s10379_s3 + $0x254] ss:$8 sps:$4 sm:$0xff]  }
  0x3f   : > { %724 = vmatpush1.bf16.msra.mxu0 %v7296_v47 }
  0x40   : > { %725 = vmatprep.subr.bf16.mxu0 %v7297_v50  ;;  %1019 = vmatpush1.bf16.msra.mxu1 %v7380_v22  ;;  %v7414_v22 = vld [vmem:[%s10379_s3 + $0x250] ss:$8 sps:$4 sm:$0xff]  }
  0x41   : > { %1020 = vmatprep.subr.bf16.mxu1 %v7384_v25  ;;  %v7422_v25 = vld [vmem:[%s10379_s3 + $0x274] ss:$8 sps:$4 sm:$0xff]  }
  0x43   : > { %726 = vmatpush1.bf16.msra.mxu0 %v7299_v52 }
  0x44   : > { %1193 = vmatprep.subr.bf16.mxu0 %v7311_v54  ;;  %1021 = vmatpush1.bf16.msra.mxu1 %v7386_v27  ;;  %v7425_v27 = vld [vmem:[%s10379_s3 + $0x284] ss:$8 sps:$4 sm:$0xff]  }
  0x45   : > { %1022 = vmatprep.subr.bf16.mxu1 %v7390_v30  ;;  %v7426_v30 = vld [vmem:[%s10379_s3 + $0x290] ss:$8 sps:$4 sm:$0xff]  }
  0x46   : > { %728 = vmatmul.mubr.bf16.vlgmr.msra.gmra.mrb[0].mxu0 %v7300_v55 }
  0x47   : > { %1194 = vmatpush1.bf16.msra.mxu0 %v7309_v57 }
  0x48   : > { %1195 = vmatprep.subr.bf16.mxu0 %v7317_v59  ;;  %1023 = vmatpush1.bf16.msra.mxu1 %v7392_v31  ;;  %v7431_v31 = vld [vmem:[%s10379_s3 + $0x2a4] ss:$8 sps:$4 sm:$0xff]  }
  0x49   : > { %1447 = vmatprep.subr.bf16.mxu1 %v7398_v34  ;;  %v7432_v34 = vld [vmem:[%s10379_s3 + $0x2b0] ss:$8 sps:$4 sm:$0xff]  }
  0x4b   : > { %1196 = vmatpush1.bf16.msra.mxu0 %v7315_v61 }
  0x4c   : > { %1197 = vmatprep.subr.bf16.mxu0 %v7323_v62 }
  0x4f   : > { %1198 = vmatpush1.bf16.msra.mxu0 %v7321_v63  ;;  %v7396_v63 = vld [vmem:[%s10379_s3 + $0x200] ss:$8 sps:$4 sm:$0xff]  }
  0x50   : > { %1199 = vmatprep.subr.bf16.mxu0 %v7329_v0 }
  0x53   : > { %1200 = vmatpush1.bf16.msra.mxu0 %v7327_v1 }
  0x54   : > { %1201 = vmatprep.subr.bf16.mxu0 %v7335_v2  ;;  %v7404_v2 = vld [vmem:[%s10379_s3 + $0x214] ss:$8 sps:$4 sm:$0xff]  }
  0x57   : > { %1202 = vmatpush1.bf16.msra.mxu0 %v7333_v3 }
  0x58   : > { %1203 = vmatprep.subr.bf16.mxu0 %v7341_v4  ;;  %v7402_v4 = vld [vmem:[%s10379_s3 + $0x210] ss:$8 sps:$4 sm:$0xff]  }
  0x5b   : > { %1204 = vmatpush1.bf16.msra.mxu0 %v7339_v5 }
  0x5c   : > { %1205 = vmatprep.subr.bf16.mxu0 %v7347_v6 }
  0x5f   : > { %1206 = vmatpush1.bf16.msra.mxu0 %v7345_v7 }
  0x60   : > { %1207 = vmatprep.subr.bf16.mxu0 %v7353_v8  ;;  %v7407_v8 = vld [vmem:[%s10379_s3 + $0x224] ss:$8 sps:$4 sm:$0xff]  }
  0x63   : > { %1208 = vmatpush1.bf16.msra.mxu0 %v7351_v9 }
  0x64   : > { %1209 = vmatprep.subr.bf16.mxu0 %v7359_v10 }
  0x67   : > { %1210 = vmatpush1.bf16.msra.mxu0 %v7357_v11 }
  0x68   : > { %1211 = vmatprep.subr.bf16.mxu0 %v7365_v12  ;;  %v7405_v12 = vld [vmem:[%s10379_s3 + $0x220] ss:$8 sps:$4 sm:$0xff]  }
  0x6b   : > { %1212 = vmatpush1.bf16.msra.mxu0 %v7363_v13  ;;  %v7410_v13 = vld [vmem:[%s10379_s3 + $0x234] ss:$8 sps:$4 sm:$0xff]  }
  0x6c   : > { %1213 = vmatprep.subr.bf16.mxu0 %v7371_v14 }
  0x6f   : > { %1214 = vmatpush1.bf16.msra.mxu0 %v7369_v15 }
  0x70   : > { %1215 = vmatprep.subr.bf16.mxu0 %v7377_v18  ;;  %v7413_v18 = vld [vmem:[%s10379_s3 + $0x244] ss:$8 sps:$4 sm:$0xff]  }
  0x73   : > { %1216 = vmatpush1.bf16.msra.mxu0 %v7375_v19  ;;  %v7411_v19 = vld [vmem:[%s10379_s3 + $0x240] ss:$8 sps:$4 sm:$0xff]  }
  0x74   : > { %1217 = vmatprep.subr.bf16.mxu0 %v7383_v23  ;;  %v7419_v23 = vld [vmem:[%s10379_s3 + $0x264] ss:$8 sps:$4 sm:$0xff]  }
  0x77   : > { %1218 = vmatpush1.bf16.msra.mxu0 %v7381_v24  ;;  %v7417_v24 = vld [vmem:[%s10379_s3 + $0x260] ss:$8 sps:$4 sm:$0xff]  }
  0x78   : > { %1219 = vmatprep.subr.bf16.mxu0 %v7389_v28  ;;  %v7423_v28 = vld [vmem:[%s10379_s3 + $0x280] ss:$8 sps:$4 sm:$0xff]  }
  0x7b   : > { %1220 = vmatpush1.bf16.msra.mxu0 %v7387_v29  ;;  %v7428_v29 = vld [vmem:[%s10379_s3 + $0x294] ss:$8 sps:$4 sm:$0xff]  }
  0x7c   : > { %1221 = vmatprep.subr.bf16.mxu0 %v7395_v33  ;;  %v7434_v33 = vld [vmem:[%s10379_s3 + $0x2b4] ss:$8 sps:$4 sm:$0xff]  }
  0x7f   : > { %1222 = vmatpush1.bf16.msra.mxu0 %v7393_v32  ;;  %v7429_v32 = vld [vmem:[%s10379_s3 + $0x2a0] ss:$8 sps:$4 sm:$0xff]  }
  0x80   : > { %1223 = vmatprep.subr.bf16.mxu0 %v7401_v35  ;;  %v7437_v35 = vld [vmem:[%s10379_s3 + $0x2c4] ss:$8 sps:$4 sm:$0xff]  }
  0x83   : > { %1224 = vmatpush1.bf16.msra.mxu0 %v7399_v36  ;;  %v7435_v36 = vld [vmem:[%s10379_s3 + $0x2c0] ss:$8 sps:$4 sm:$0xff]  }
 0x119   : > { %v729_v43 = vpop.f32.mrb[0].mxu0 }
 0x11a   : > { %v730_v44 = vadd.f32 %v729_v43, %v518_v41  ;;  %v731_v45 = vpop.f32.mrb[1].mxu0  ;;  %v7443_v43 = vld [vmem:[%s10379_s3 + $0x2e4] ss:$8 sps:$4 sm:$0xff]  }
 0x11b   : > { %v732_v46 = vadd.f32 %v731_v45, %v522_v42  ;;  %v733_v47 = vpop.f32.mrb[2].mxu0  ;;  %v7441_v45 = vld [vmem:[%s10379_s3 + $0x2e0] ss:$8 sps:$4 sm:$0xff]  }
 0x11c   : > { %v738_v48 = vmax.f32 %v730_v44, 0.0  ;;  %v734_v49 = vadd.f32 %v733_v47, %v518_v41  ;;  %v735_v50 = vpop.f32.mrb[3].mxu0 }
 0x11d   : > { %v739_v51 = vmax.f32 %v732_v46, 0.0  ;;  %v736_v52 = vadd.f32 %v735_v50, %v522_v42  ;;  %v7438_v42 = vld [vmem:[%s10379_s3 + $0x2d0] ss:$8 sps:$4 sm:$0xff]   ;;  %v7446_v46 = vld [vmem:[%s10379_s3 + $0x2f4] ss:$8 sps:$4 sm:$0xff]  }
 0x11e   : > { %742 = vst [vmem:[#allocation3 + $0x10] sm:$0x7f] %v738_v48  ;;  %v740_v53 = vmax.f32 %v734_v49, 0.0  ;;  %v749_v55 = vrot.slane %v738_v48, 6  ;;  %v7444_v48 = vld [vmem:[%s10379_s3 + $0x2f0] ss:$8 sps:$4 sm:$0xff]  }
 0x11f   : > { %743 = vst [vmem:[#allocation3 + $0x18] sm:$0x7f] %v739_v51  ;;  %v741_v54 = vmax.f32 %v736_v52, 0.0  ;;  %v752_v57 = vrot.slane %v739_v51, 6  ;;  %v7447_v52 = vld [vmem:[%s10381_s5] ss:$28 sps:$4 sm:$0xff]  }
 0x120   : > { %v750_v56 = vrot.slane %v740_v53, 6  ;;  %v7449_v53 = vld [vmem:[%s10381_s5 + $0x4] ss:$28 sps:$4 sm:$0xff]  }
 0x121   : > { %v753_v58 = vrot.slane %v741_v54, 6  ;;  %v7450_v54 = vld [vmem:[%s10381_s5 + $0x8] ss:$28 sps:$4 sm:$0xff]   ;;  %2216 = vmatprep.subr.bf16.mxu0 %v7449_v53  ;;  %v7542_v53 = vld [vmem:[%s10381_s5 + $0x354] ss:$28 sps:$4 sm:$0xff]  }
 0x122   : > { %v751_v59 = vsel %vm748_vm1, %v749_v55, %v750_v56  ;;  %v7452_v55 = vld [vmem:[%s10381_s5 + $0xc] ss:$28 sps:$4 sm:$0xff]   ;;  %v7455_v56 = vld [vmem:[%s10381_s5 + $0x3c] ss:$28 sps:$4 sm:$0xff]  }
 0x123   : > { %757 = vst [vmem:[#allocation4 + $0x10] sm:$0xfe] %v751_v59  ;;  %v754_v60 = vsel %vm748_vm1, %v752_v57, %v753_v58  ;;  %v7458_v57 = vld [vmem:[%s10381_s5 + $0x44] ss:$28 sps:$4 sm:$0xff]   ;;  %v7453_v58 = vld [vmem:[%s10381_s5 + $0x38] ss:$28 sps:$4 sm:$0xff]  }
 0x124   : > { %758 = vst [vmem:[#allocation4 + $0x18] sm:$0xfe] %v754_v60  ;;  %v7456_v59 = vld [vmem:[%s10381_s5 + $0x40] ss:$28 sps:$4 sm:$0xff]   ;;  %v7461_v60 = vld [vmem:[%s10381_s5 + $0x74] ss:$28 sps:$4 sm:$0xff]  }
 0x125   : > { %v795_v61 = vld [vmem:[#allocation3 + $0x10] sm:$0x7f] }
 0x126   : > { %v796_v62 = vld [vmem:[#allocation3 + $0x18] sm:$0x7f]  ;;  %v830_v1 = vpack.c.bf16 %v795_v61, %v795_v61 }
 0x127   : > { %v831_v0 = vpack.c.bf16 %v796_v62, %v796_v62  ;;  %v7464_v61 = vld [vmem:[%s10381_s5 + $0x7c] ss:$28 sps:$4 sm:$0xff]   ;;  %v7459_v62 = vld [vmem:[%s10381_s5 + $0x70] ss:$28 sps:$4 sm:$0xff]  }
 0x129   : > { %1024 = vmatprep.mubr.bf16.mxu1 %v831_v0  ;;  %v7467_v0 = vld [vmem:[%s10381_s5 + $0xac] ss:$28 sps:$4 sm:$0xff]  }
 0x12a   : > { %1025 = vmatmul.mubr.bf16.vlgmr.msra.gmra.mrb[0].mxu1 %v830_v1  ;;  %v759_v3 = vld [vmem:[#allocation4 + $0x10] sm:$0x7f] }
 0x12b   : > { %1448 = vmatpush1.bf16.msra.mxu1 %v7396_v63  ;;  %v760_v5 = vld [vmem:[#allocation4 + $0x18] sm:$0x7f]  ;;  %v793_v10 = vpack.c.bf16 %v759_v3, %v759_v3  ;;  %v1234_v41 = vld [vmem:[#allocation4 + $0x10] sm:$0xfe] }
 0x12c   : > { %v1235_v6 = vld [vmem:[#allocation4 + $0x18] sm:$0xfe]  ;;  %1449 = vmatprep.subr.bf16.mxu1 %v7404_v2  ;;  %v794_v7 = vpack.c.bf16 %v760_v5, %v760_v5  ;;  %v1269_v44 = vpack.c.bf16 %v1234_v41, %v1234_v41  ;;  %v7470_v1 = vld [vmem:[%s10381_s5 + $0xb4] ss:$28 sps:$4 sm:$0xff]   ;;  %v7465_v2 = vld [vmem:[%s10381_s5 + $0xa8] ss:$28 sps:$4 sm:$0xff]  }
 0x12d   : > { %v1270_v9 = vpack.c.bf16 %v1235_v6, %v1235_v6  ;;  %v7462_v63 = vld [vmem:[%s10381_s5 + $0x78] ss:$28 sps:$4 sm:$0xff]   ;;  %v7468_v3 = vld [vmem:[%s10381_s5 + $0xb0] ss:$28 sps:$4 sm:$0xff]   ;;  %v7471_v6 = vld [vmem:[%s10381_s5 + $0xe0] ss:$28 sps:$4 sm:$0xff]  }
 0x12e   : > { %1225 = vmatprep.mubr.bf16.mxu0 %v794_v7  ;;  %v1274_v47 = vshll.u32 %v1269_v44, 16  ;;  %v1272_v50 = vshrl.u32 %v1269_v44, 16  ;;  %v7476_v5 = vld [vmem:[%s10381_s5 + $0xec] ss:$28 sps:$4 sm:$0xff]   ;;  %v7527_v44 = vld [vmem:[%s10381_s5 + $0x2dc] ss:$28 sps:$4 sm:$0xff]  }
 0x12f   : > { %v1281_v11 = vshll.u32 %v1270_v9, 16  ;;  %1450 = vmatpush1.bf16.msra.mxu1 %v7402_v4  ;;  %1226 = vmatmul.mubr.bf16.vlgmr.msra.gmra.mrb[4].mxu0 %v793_v10  ;;  %v1279_v14 = vshrl.u32 %v1270_v9, 16  ;;  %v7473_v4 = vld [vmem:[%s10381_s5 + $0xe4] ss:$28 sps:$4 sm:$0xff]   ;;  %v7477_v10 = vld [vmem:[%s10381_s5 + $0x118] ss:$28 sps:$4 sm:$0xff]  }
 0x130   : > { %1451 = vmatprep.subr.bf16.mxu1 %v7407_v8  ;;  %v1276_v49 = vrot.slane %v1274_v47, 1  ;;  %2217 = vmatpush1.bf16.msra.mxu0 %v7447_v52  ;;  %v7474_v7 = vld [vmem:[%s10381_s5 + $0xe8] ss:$28 sps:$4 sm:$0xff]   ;;  %v7479_v8 = vld [vmem:[%s10381_s5 + $0x11c] ss:$28 sps:$4 sm:$0xff]  }
 0x131   : > { %v1283_v15 = vrot.slane %v1281_v11, 1  ;;  %2218 = vmatprep.subr.bf16.mxu0 %v7455_v56  ;;  %v7482_v9 = vld [vmem:[%s10381_s5 + $0x124] ss:$28 sps:$4 sm:$0xff]   ;;  %v7524_v41 = vld [vmem:[%s10381_s5 + $0x2ac] ss:$28 sps:$4 sm:$0xff]  }
 0x132   : > { %v1277_v51 = vor.u32 %v1276_v49, %v1272_v50  ;;  %v7480_v11 = vld [vmem:[%s10381_s5 + $0x120] ss:$28 sps:$4 sm:$0xff]   ;;  %v7533_v49 = vld [vmem:[%s10381_s5 + $0x314] ss:$28 sps:$4 sm:$0xff]   ;;  %v7539_v52 = vld [vmem:[%s10381_s5 + $0x34c] ss:$28 sps:$4 sm:$0xff]  }
 0x133   : > { %v1284_v17 = vor.u32 %v1283_v15, %v1279_v14  ;;  %1452 = vmatpush1.bf16.msra.mxu1 %v7405_v12  ;;  %v7485_v12 = vld [vmem:[%s10381_s5 + $0x154] ss:$28 sps:$4 sm:$0xff]   ;;  %v7528_v47 = vld [vmem:[%s10381_s5 + $0x2e0] ss:$28 sps:$4 sm:$0xff]  }
 0x134   : > { %1453 = vmatprep.subr.bf16.mxu1 %v7410_v13  ;;  %2219 = vmatpush1.bf16.msra.mxu0 %v7453_v58  ;;  %v7488_v13 = vld [vmem:[%s10381_s5 + $0x15c] ss:$28 sps:$4 sm:$0xff]   ;;  %v7483_v14 = vld [vmem:[%s10381_s5 + $0x150] ss:$28 sps:$4 sm:$0xff]  }
 0x135   : > { %1479 = vmatprep.mubr.bf16.mxu1 %v1284_v17  ;;  %2220 = vmatprep.subr.bf16.mxu0 %v7461_v60  ;;  %v7486_v15 = vld [vmem:[%s10381_s5 + $0x158] ss:$28 sps:$4 sm:$0xff]  }
 0x136   : > { %v7494_v17 = vld [vmem:[%s10381_s5 + $0x194] ss:$28 sps:$4 sm:$0xff]  }
 0x137   : > { %1454 = vmatpush1.bf16.msra.mxu1 %v7408_v16  ;;  %v7491_v16 = vld [vmem:[%s10381_s5 + $0x18c] ss:$28 sps:$4 sm:$0xff]   ;;  %v7534_v50 = vld [vmem:[%s10381_s5 + $0x318] ss:$28 sps:$4 sm:$0xff]  }
 0x138   : > { %1455 = vmatprep.subr.bf16.mxu1 %v7413_v18  ;;  %2221 = vmatpush1.bf16.msra.mxu0 %v7459_v62  ;;  %v7489_v18 = vld [vmem:[%s10381_s5 + $0x188] ss:$28 sps:$4 sm:$0xff]   ;;  %v7545_v56 = vld [vmem:[%s10381_s5 + $0x14] ss:$28 sps:$4 sm:$0xff]  }
 0x139   : > { %2222 = vmatprep.subr.bf16.mxu0 %v7467_v0 }
 0x13b   : > { %1456 = vmatpush1.bf16.msra.mxu1 %v7411_v19  ;;  %v7492_v19 = vld [vmem:[%s10381_s5 + $0x190] ss:$28 sps:$4 sm:$0xff]  }
 0x13c   : > { %1457 = vmatprep.subr.bf16.mxu1 %v7416_v20  ;;  %2223 = vmatpush1.bf16.msra.mxu0 %v7465_v2  ;;  %v7497_v20 = vld [vmem:[%s10381_s5 + $0x1c4] ss:$28 sps:$4 sm:$0xff]  }
 0x13d   : > { %2224 = vmatprep.subr.bf16.mxu0 %v7473_v4  ;;  %v1490_v4 = vld [vmem:[%s10380_s4] sm:$0x3] }
 0x13f   : > { %1458 = vmatpush1.bf16.msra.mxu1 %v7414_v22  ;;  %v7500_v22 = vld [vmem:[%s10381_s5 + $0x1cc] ss:$28 sps:$4 sm:$0xff]  }
 0x140   : > { %1459 = vmatprep.subr.bf16.mxu1 %v7419_v23  ;;  %2225 = vmatpush1.bf16.msra.mxu0 %v7471_v6  ;;  %v7495_v23 = vld [vmem:[%s10381_s5 + $0x1c0] ss:$28 sps:$4 sm:$0xff]  }
 0x141   : > { %2226 = vmatprep.subr.bf16.mxu0 %v7479_v8 }
 0x143   : > { %1460 = vmatpush1.bf16.msra.mxu1 %v7417_v24  ;;  %v7498_v24 = vld [vmem:[%s10381_s5 + $0x1c8] ss:$28 sps:$4 sm:$0xff]  }
 0x144   : > { %1461 = vmatprep.subr.bf16.mxu1 %v7422_v25  ;;  %2227 = vmatpush1.bf16.msra.mxu0 %v7477_v10  ;;  %v7503_v25 = vld [vmem:[%s10381_s5 + $0x1fc] ss:$28 sps:$4 sm:$0xff]  }
 0x145   : > { %2228 = vmatprep.subr.bf16.mxu0 %v7485_v12 }
 0x147   : > { %1462 = vmatpush1.bf16.msra.mxu1 %v7420_v26  ;;  %v7506_v26 = vld [vmem:[%s10381_s5 + $0x204] ss:$28 sps:$4 sm:$0xff]  }
 0x148   : > { %1463 = vmatprep.subr.bf16.mxu1 %v7425_v27  ;;  %2229 = vmatpush1.bf16.msra.mxu0 %v7483_v14  ;;  %v7501_v27 = vld [vmem:[%s10381_s5 + $0x1f8] ss:$28 sps:$4 sm:$0xff]  }
 0x149   : > { %2230 = vmatprep.subr.bf16.mxu0 %v7491_v16 }
 0x14b   : > { %1464 = vmatpush1.bf16.msra.mxu1 %v7423_v28  ;;  %v7504_v28 = vld [vmem:[%s10381_s5 + $0x200] ss:$28 sps:$4 sm:$0xff]  }
 0x14c   : > { %1465 = vmatprep.subr.bf16.mxu1 %v7428_v29  ;;  %2231 = vmatpush1.bf16.msra.mxu0 %v7489_v18  ;;  %v7509_v29 = vld [vmem:[%s10381_s5 + $0x234] ss:$28 sps:$4 sm:$0xff]  }
 0x14d   : > { %2232 = vmatprep.subr.bf16.mxu0 %v7497_v20  ;;  %v7543_v20 = vld [vmem:[%s10381_s5 + $0x10] ss:$28 sps:$4 sm:$0xff]  }
 0x14f   : > { %1466 = vmatpush1.bf16.msra.mxu1 %v7426_v30  ;;  %v7512_v30 = vld [vmem:[%s10381_s5 + $0x23c] ss:$28 sps:$4 sm:$0xff]  }
 0x150   : > { %1467 = vmatprep.subr.bf16.mxu1 %v7431_v31  ;;  %2233 = vmatpush1.bf16.msra.mxu0 %v7495_v23  ;;  %v7507_v31 = vld [vmem:[%s10381_s5 + $0x230] ss:$28 sps:$4 sm:$0xff]  }
 0x151   : > { %2234 = vmatprep.subr.bf16.mxu0 %v7503_v25  ;;  %v7551_v25 = vld [vmem:[%s10381_s5 + $0x210] ss:$28 sps:$4 sm:$0xff]  }
 0x153   : > { %1468 = vmatpush1.bf16.msra.mxu1 %v7429_v32  ;;  %v7510_v32 = vld [vmem:[%s10381_s5 + $0x238] ss:$28 sps:$4 sm:$0xff]  }
 0x154   : > { %1469 = vmatprep.subr.bf16.mxu1 %v7434_v33  ;;  %2235 = vmatpush1.bf16.msra.mxu0 %v7501_v27  ;;  %v7515_v33 = vld [vmem:[%s10381_s5 + $0x26c] ss:$28 sps:$4 sm:$0xff]  }
 0x155   : > { %2236 = vmatprep.subr.bf16.mxu0 %v7509_v29  ;;  %v7552_v27 = vld [vmem:[%s10381_s5 + $0x50] ss:$28 sps:$4 sm:$0xff]   ;;  %v7556_v29 = vld [vmem:[%s10381_s5 + $0x248] ss:$28 sps:$4 sm:$0xff]  }
 0x157   : > { %1470 = vmatpush1.bf16.msra.mxu1 %v7432_v34  ;;  %v7518_v34 = vld [vmem:[%s10381_s5 + $0x274] ss:$28 sps:$4 sm:$0xff]  }
 0x158   : > { %1471 = vmatprep.subr.bf16.mxu1 %v7437_v35  ;;  %2237 = vmatpush1.bf16.msra.mxu0 %v7507_v31  ;;  %v7513_v35 = vld [vmem:[%s10381_s5 + $0x268] ss:$28 sps:$4 sm:$0xff]  }
 0x159   : > { %2238 = vmatprep.subr.bf16.mxu0 %v7515_v33  ;;  %v7557_v31 = vld [vmem:[%s10381_s5 + $0x88] ss:$28 sps:$4 sm:$0xff]   ;;  %v7561_v33 = vld [vmem:[%s10381_s5 + $0x280] ss:$28 sps:$4 sm:$0xff]  }
 0x15b   : > { %1472 = vmatpush1.bf16.msra.mxu1 %v7435_v36  ;;  %v7516_v36 = vld [vmem:[%s10381_s5 + $0x270] ss:$28 sps:$4 sm:$0xff]  }
 0x15c   : > { %1473 = vmatprep.subr.bf16.mxu1 %v7440_v40  ;;  %2239 = vmatpush1.bf16.msra.mxu0 %v7513_v35  ;;  %v7521_v40 = vld [vmem:[%s10381_s5 + $0x2a4] ss:$28 sps:$4 sm:$0xff]  }
 0x15d   : > { %2240 = vmatprep.subr.bf16.mxu0 %v7521_v40  ;;  %v7562_v35 = vld [vmem:[%s10381_s5 + $0xc0] ss:$28 sps:$4 sm:$0xff]   ;;  %v7566_v40 = vld [vmem:[%s10381_s5 + $0x2b8] ss:$28 sps:$4 sm:$0xff]  }
 0x15f   : > { %1474 = vmatpush1.bf16.msra.mxu1 %v7438_v42  ;;  %v7519_v42 = vld [vmem:[%s10381_s5 + $0x2a0] ss:$28 sps:$4 sm:$0xff]  }
 0x160   : > { %1475 = vmatprep.subr.bf16.mxu1 %v7443_v43  ;;  %v7522_v43 = vld [vmem:[%s10381_s5 + $0x2a8] ss:$28 sps:$4 sm:$0xff]   ;;  %2241 = vmatpush1.bf16.msra.mxu0 %v7519_v42  ;;  %v7567_v42 = vld [vmem:[%s10381_s5 + $0xf8] ss:$28 sps:$4 sm:$0xff]  }
 0x161   : > { %2242 = vmatprep.subr.bf16.mxu0 %v7527_v44  ;;  %v7571_v44 = vld [vmem:[%s10381_s5 + $0x2f0] ss:$28 sps:$4 sm:$0xff]  }
 0x163   : > { %1476 = vmatpush1.bf16.msra.mxu1 %v7441_v45  ;;  %v7530_v45 = vld [vmem:[%s10381_s5 + $0x2e4] ss:$28 sps:$4 sm:$0xff]  }
 0x164   : > { %1477 = vmatprep.subr.bf16.mxu1 %v7446_v46  ;;  %v7525_v46 = vld [vmem:[%s10381_s5 + $0x2d8] ss:$28 sps:$4 sm:$0xff]  }
 0x165   : > { %2243 = vmatpush1.bf16.msra.mxu0 %v7525_v46  ;;  %v7572_v46 = vld [vmem:[%s10381_s5 + $0x130] ss:$28 sps:$4 sm:$0xff]  }
 0x166   : > { %2244 = vmatprep.subr.bf16.mxu0 %v7533_v49  ;;  %v7573_v49 = vld [vmem:[%s10381_s5 + $0x160] ss:$28 sps:$4 sm:$0xff]  }
 0x167   : > { %1478 = vmatpush1.bf16.msra.mxu1 %v7444_v48  ;;  %v7531_v48 = vld [vmem:[%s10381_s5 + $0x310] ss:$28 sps:$4 sm:$0xff]  }
 0x168   : > { %2257 = vmatprep.subr.bf16.mxu1 %v7452_v55  ;;  %v7540_v55 = vld [vmem:[%s10381_s5 + $0x350] ss:$28 sps:$4 sm:$0xff]  }
 0x169   : > { %2245 = vmatpush1.bf16.msra.mxu0 %v7531_v48  ;;  %v7576_v48 = vld [vmem:[%s10381_s5 + $0x328] ss:$28 sps:$4 sm:$0xff]  }
 0x16a   : > { %1480 = vmatmul.mubr.bf16.vlgmr.msra.gmra.mrb[4].mxu1 %v1277_v51  ;;  %v7536_v51 = vld [vmem:[%s10381_s5 + $0x31c] ss:$28 sps:$4 sm:$0xff]   ;;  %2246 = vmatprep.subr.bf16.mxu0 %v7539_v52 }
 0x16b   : > { %2258 = vmatpush1.bf16.msra.mxu1 %v7450_v54  ;;  %v7537_v54 = vld [vmem:[%s10381_s5 + $0x348] ss:$28 sps:$4 sm:$0xff]   ;;  %v7581_v52 = vld [vmem:[%s10381_s5 + $0x360] ss:$28 sps:$4 sm:$0xff]  }
 0x16c   : > { %2259 = vmatprep.subr.bf16.mxu1 %v7458_v57  ;;  %v7546_v57 = vld [vmem:[%s10381_s5 + $0x1d8] ss:$28 sps:$4 sm:$0xff]  }
 0x16d   : > { %2247 = vmatpush1.bf16.msra.mxu0 %v7537_v54  ;;  %v7582_v54 = vld [vmem:[%s10381_s5 + $0x1a0] ss:$28 sps:$4 sm:$0xff]  }
 0x16e   : > { %2298 = vmatprep.subr.bf16.mxu0 %v7545_v56  ;;  %v7583_v56 = vld [vmem:[%s10381_s5 + $0x1d0] ss:$28 sps:$4 sm:$0xff]  }
 0x16f   : > { %2260 = vmatpush1.bf16.msra.mxu1 %v7456_v59 }
 0x170   : > { %2261 = vmatprep.subr.bf16.mxu1 %v7464_v61 }
 0x173   : > { %2262 = vmatpush1.bf16.msra.mxu1 %v7462_v63 }
 0x174   : > { %2263 = vmatprep.subr.bf16.mxu1 %v7470_v1 }
 0x177   : > { %2264 = vmatpush1.bf16.msra.mxu1 %v7468_v3 }
 0x178   : > { %2265 = vmatprep.subr.bf16.mxu1 %v7476_v5  ;;  %v1495_v5 = vrot.slane %v1490_v4, %v8559_v38 }
 0x17b   : > { %2266 = vmatpush1.bf16.msra.mxu1 %v7474_v7  ;;  %v1499_v7 = vrot.slane %v1490_v4, %v8562_v39  ;;  %v7601_v4 = vld [vmem:[%s10381_s5 + $0x320] ss:$28 sps:$4 sm:$0xff]  }
 0x17c   : > { %2267 = vmatprep.subr.bf16.mxu1 %v7482_v9 }
 0x17f   : > { %2268 = vmatpush1.bf16.msra.mxu1 %v7480_v11 }
 0x180   : > { %2269 = vmatprep.subr.bf16.mxu1 %v7488_v13 }
 0x183   : > { %2270 = vmatpush1.bf16.msra.mxu1 %v7486_v15 }
 0x184   : > { %2271 = vmatprep.subr.bf16.mxu1 %v7494_v17 }
 0x187   : > { %2272 = vmatpush1.bf16.msra.mxu1 %v7492_v19 }
 0x188   : > { %2273 = vmatprep.subr.bf16.mxu1 %v7500_v22  ;;  %v7547_v22 = vld [vmem:[%s10381_s5 + $0x18] ss:$28 sps:$4 sm:$0xff]  }
 0x18b   : > { %2274 = vmatpush1.bf16.msra.mxu1 %v7498_v24  ;;  %v7550_v24 = vld [vmem:[%s10381_s5 + $0x4c] ss:$28 sps:$4 sm:$0xff]  }
 0x18c   : > { %2275 = vmatprep.subr.bf16.mxu1 %v7506_v26  ;;  %v7548_v26 = vld [vmem:[%s10381_s5 + $0x48] ss:$28 sps:$4 sm:$0xff]  }
 0x18f   : > { %2276 = vmatpush1.bf16.msra.mxu1 %v7504_v28  ;;  %v7555_v28 = vld [vmem:[%s10381_s5 + $0x84] ss:$28 sps:$4 sm:$0xff]  }
 0x190   : > { %2277 = vmatprep.subr.bf16.mxu1 %v7512_v30  ;;  %v7553_v30 = vld [vmem:[%s10381_s5 + $0x80] ss:$28 sps:$4 sm:$0xff]  }
 0x193   : > { %2278 = vmatpush1.bf16.msra.mxu1 %v7510_v32  ;;  %v7560_v32 = vld [vmem:[%s10381_s5 + $0xbc] ss:$28 sps:$4 sm:$0xff]  }
 0x194   : > { %2279 = vmatprep.subr.bf16.mxu1 %v7518_v34  ;;  %v7558_v34 = vld [vmem:[%s10381_s5 + $0xb8] ss:$28 sps:$4 sm:$0xff]  }
 0x197   : > { %2280 = vmatpush1.bf16.msra.mxu1 %v7516_v36  ;;  %v7565_v36 = vld [vmem:[%s10381_s5 + $0xf4] ss:$28 sps:$4 sm:$0xff]  }
 0x198   : > { %2281 = vmatprep.subr.bf16.mxu1 %v7524_v41  ;;  %v7563_v41 = vld [vmem:[%s10381_s5 + $0xf0] ss:$28 sps:$4 sm:$0xff]  }
 0x19b   : > { %2282 = vmatpush1.bf16.msra.mxu1 %v7522_v43  ;;  %v7570_v43 = vld [vmem:[%s10381_s5 + $0x12c] ss:$28 sps:$4 sm:$0xff]  }
 0x19c   : > { %2283 = vmatprep.subr.bf16.mxu1 %v7530_v45  ;;  %v7568_v45 = vld [vmem:[%s10381_s5 + $0x128] ss:$28 sps:$4 sm:$0xff]  }
 0x19f   : > { %2284 = vmatpush1.bf16.msra.mxu1 %v7528_v47  ;;  %v7575_v47 = vld [vmem:[%s10381_s5 + $0x164] ss:$28 sps:$4 sm:$0xff]  }
 0x1a0   : > { %2285 = vmatprep.subr.bf16.mxu1 %v7536_v51  ;;  %v7580_v51 = vld [vmem:[%s10381_s5 + $0x19c] ss:$28 sps:$4 sm:$0xff]  }
 0x1a3   : > { %2286 = vmatpush1.bf16.msra.mxu1 %v7534_v50  ;;  %v7577_v50 = vld [vmem:[%s10381_s5 + $0x168] ss:$28 sps:$4 sm:$0xff]  }
 0x1a4   : > { %2287 = vmatprep.subr.bf16.mxu1 %v7542_v53  ;;  %v7578_v53 = vld [vmem:[%s10381_s5 + $0x198] ss:$28 sps:$4 sm:$0xff]  }
 0x1a7   : > { %2288 = vmatpush1.bf16.msra.mxu1 %v7540_v55  ;;  %v7585_v55 = vld [vmem:[%s10381_s5 + $0x1d4] ss:$28 sps:$4 sm:$0xff]  }
 0x1a8   : > { %7087 = vmatprep.subr.bf16.mxu1 %v7546_v57  ;;  %v7588_v57 = vld [vmem:[%s10381_s5 + $0x20c] ss:$28 sps:$4 sm:$0xff]  }
 0x1fd   : > { %v1026_v58 = vpop.f32.mrb[0].mxu1 }
 0x1fe   : > { %v1028_v59 = vpop.f32.mrb[1].mxu1 }
 0x1ff   : > { %v1030_v60 = vpop.f32.mrb[2].mxu1 }
 0x200   : > { %v1031_v61 = vpop.f32.mrb[3].mxu1  ;;  %v7589_v60 = vld [vmem:[%s10381_s5 + $0x240] ss:$28 sps:$4 sm:$0xff]  }
 0x201   : > { %v7594_v61 = vld [vmem:[%s10381_s5 + $0x27c] ss:$28 sps:$4 sm:$0xff]  }
 0x202   : > { %v1227_v62 = vpop.f32.mrb[4].mxu0 }
 0x203   : > { %v1228_v63 = vadd.f32 %v1227_v62, %v1026_v58  ;;  %v1229_v0 = vpop.f32.mrb[5].mxu0  ;;  %v7586_v58 = vld [vmem:[%s10381_s5 + $0x208] ss:$28 sps:$4 sm:$0xff]   ;;  %v7592_v62 = vld [vmem:[%s10381_s5 + $0x278] ss:$28 sps:$4 sm:$0xff]  }
 0x204   : > { %v1230_v1 = vadd.f32 %v1229_v0, %v1028_v59  ;;  %v1231_v2 = vpop.f32.mrb[6].mxu0  ;;  %v7591_v59 = vld [vmem:[%s10381_s5 + $0x244] ss:$28 sps:$4 sm:$0xff]   ;;  %v7595_v0 = vld [vmem:[%s10381_s5 + $0x2b0] ss:$28 sps:$4 sm:$0xff]  }
 0x205   : > { %v1232_v3 = vpop.f32.mrb[7].mxu0  ;;  %v7598_v2 = vld [vmem:[%s10381_s5 + $0x2e8] ss:$28 sps:$4 sm:$0xff]  }
 0x206   : > { %v7603_v3 = vld [vmem:[%s10381_s5 + $0x324] ss:$28 sps:$4 sm:$0xff]  }
 0x23d   : > { %v1481_v6 = vpop.f32.mrb[4].mxu1 }
 0x23e   : > { %v1488_v8 = vadd.f32 %v1481_v6, %v1228_v63  ;;  %v1483_v9 = vpop.f32.mrb[5].mxu1  ;;  %v7597_v63 = vld [vmem:[%s10381_s5 + $0x2b4] ss:$28 sps:$4 sm:$0xff]  }
 0x23f   : > { %v1489_v10 = vadd.f32 %v1483_v9, %v1230_v1  ;;  %v1485_v11 = vpop.f32.mrb[6].mxu1  ;;  %v7600_v1 = vld [vmem:[%s10381_s5 + $0x2ec] ss:$28 sps:$4 sm:$0xff]   ;;  %v7604_v6 = vld [vmem:[%s10381_s5 + $0x358] ss:$28 sps:$4 sm:$0xff]  }
 0x240   : > { %v1502_v12 = vadd.f32 %v1495_v5, %v1488_v8  ;;  %v1486_v13 = vpop.f32.mrb[7].mxu1  ;;  %v7606_v5 = vld [vmem:[%s10381_s5 + $0x35c] ss:$28 sps:$4 sm:$0xff]   ;;  %v7610_v9 = vld [vmem:[%s10383_s7 + $0x8] ss:$56 sps:$4 sm:$0xff]  }
 0x241   : > { %v1503_v14 = vadd.f32 %v1499_v7, %v1489_v10  ;;  %v7607_v7 = vld [vmem:[%s10383_s7] ss:$56 sps:$4 sm:$0xff]   ;;  %v7609_v8 = vld [vmem:[%s10383_s7 + $0x4] ss:$56 sps:$4 sm:$0xff]   ;;  %v7615_v11 = vld [vmem:[%s10383_s7 + $0x74] ss:$56 sps:$4 sm:$0xff]  }
 0x242   : > { %v1504_v15 = vmax.f32 %v1502_v12, 0.0  ;;  %v7612_v10 = vld [vmem:[%s10383_s7 + $0xc] ss:$56 sps:$4 sm:$0xff]   ;;  %v7618_v12 = vld [vmem:[%s10383_s7 + $0x7c] ss:$56 sps:$4 sm:$0xff]  }
 0x243   : > { %v1505_v16 = vmax.f32 %v1503_v14, 0.0  ;;  %v7613_v13 = vld [vmem:[%s10383_s7 + $0x70] ss:$56 sps:$4 sm:$0xff]  }
 0x244   : > { %1506 = vst [vmem:[#allocation2 + $0x10] sm:$0x7f] %v1504_v15  ;;  %v7616_v14 = vld [vmem:[%s10383_s7 + $0x78] ss:$56 sps:$4 sm:$0xff]   ;;  %v7621_v15 = vld [vmem:[%s10383_s7 + $0xe4] ss:$56 sps:$4 sm:$0xff]  }
 0x245   : > { %1507 = vst [vmem:[#allocation2 + $0x18] sm:$0x7f] %v1505_v16  ;;  %v7624_v16 = vld [vmem:[%s10383_s7 + $0xec] ss:$56 sps:$4 sm:$0xff]  }
 0x24b   : > { %v1508_v17 = vld [vmem:[#allocation2 + $0x10] sm:$0x7f] }
 0x24c   : > { %v1509_v18 = vld [vmem:[#allocation2 + $0x18] sm:$0x7f]  ;;  %v8871_v23 = vpack.c.bf16 %v1508_v17, %v1508_v17 }
 0x24d   : > { %v1639_v19 = vpack.c.bf16 %v1509_v18, %v1509_v18  ;;  %v7619_v17 = vld [vmem:[%s10383_s7 + $0xe0] ss:$56 sps:$4 sm:$0xff]  }
 0x24e   : > { %v7622_v18 = vld [vmem:[%s10383_s7 + $0xe8] ss:$56 sps:$4 sm:$0xff]  }
 0x24f   : > { %2248 = vmatprep.mubr.bf16.mxu0 %v1639_v19  ;;  %2289 = vmatprep.mubr.bf16.mxu1 %v1639_v19 }
 0x250   : > { %2249 = vmatmul.mubr.bf16.vlgmr.msra.gmra.mrb[8].mxu0 %v8871_v23  ;;  %2290 = vmatmul.mubr.bf16.vlgmr.msra.gmra.mrb[8].mxu1 %v8871_v23 }
 0x251   : > { %2299 = vmatpush1.bf16.msra.mxu0 %v7543_v20  ;;  %7088 = vmatpush3.bf16.msra.mxu1 %v7547_v22  ;;  %v7630_v20 = vld [vmem:[%s10383_s7 + $0x15c] ss:$56 sps:$4 sm:$0xff]   ;;  %v7625_v22 = vld [vmem:[%s10383_s7 + $0x150] ss:$56 sps:$4 sm:$0xff]  }
 0x252   : > { %2330 = vmatprep.mubr.bf16.mxu0 %v1639_v19  ;;  %2371 = vmatprep.mubr.bf16.mxu1 %v1639_v19  ;;  %v7627_v19 = vld [vmem:[%s10383_s7 + $0x154] ss:$56 sps:$4 sm:$0xff]  }
 0x253   : > { %2300 = vmatprep.subr.bf16.mxu0 %v7550_v24  ;;  %7089 = vmatprep.subr.bf16.mxu1 %v7551_v25  ;;  %v7633_v24 = vld [vmem:[%s10383_s7 + $0x1c4] ss:$56 sps:$4 sm:$0xff]  }
 0x254   : > { %v7636_v25 = vld [vmem:[%s10383_s7 + $0x1cc] ss:$56 sps:$4 sm:$0xff]  }
 0x255   : > { %2301 = vmatpush1.bf16.msra.mxu0 %v7548_v26  ;;  %7090 = vmatpush3.bf16.msra.mxu1 %v7552_v27  ;;  %v7631_v26 = vld [vmem:[%s10383_s7 + $0x1c0] ss:$56 sps:$4 sm:$0xff]  }
 0x256   : > { %2302 = vmatprep.subr.bf16.mxu0 %v7555_v28  ;;  %7091 = vmatprep.subr.bf16.mxu1 %v7556_v29  ;;  %v7634_v27 = vld [vmem:[%s10383_s7 + $0x1c8] ss:$56 sps:$4 sm:$0xff]   ;;  %v7639_v28 = vld [vmem:[%s10383_s7 + $0x234] ss:$56 sps:$4 sm:$0xff]  }
 0x257   : > { %v7642_v29 = vld [vmem:[%s10383_s7 + $0x23c] ss:$56 sps:$4 sm:$0xff]  }
 0x259   : > { %2303 = vmatpush1.bf16.msra.mxu0 %v7553_v30  ;;  %7092 = vmatpush3.bf16.msra.mxu1 %v7557_v31  ;;  %v7637_v30 = vld [vmem:[%s10383_s7 + $0x230] ss:$56 sps:$4 sm:$0xff]  }
 0x25a   : > { %2304 = vmatprep.subr.bf16.mxu0 %v7560_v32  ;;  %7093 = vmatprep.subr.bf16.mxu1 %v7561_v33  ;;  %v7640_v31 = vld [vmem:[%s10383_s7 + $0x238] ss:$56 sps:$4 sm:$0xff]   ;;  %v7645_v32 = vld [vmem:[%s10383_s7 + $0x2a4] ss:$56 sps:$4 sm:$0xff]  }
 0x25b   : > { %v7648_v33 = vld [vmem:[%s10383_s7 + $0x2ac] ss:$56 sps:$4 sm:$0xff]  }
 0x25d   : > { %2305 = vmatpush1.bf16.msra.mxu0 %v7558_v34  ;;  %7094 = vmatpush3.bf16.msra.mxu1 %v7562_v35  ;;  %v7643_v34 = vld [vmem:[%s10383_s7 + $0x2a0] ss:$56 sps:$4 sm:$0xff]  }
 0x25e   : > { %2306 = vmatprep.subr.bf16.mxu0 %v7565_v36  ;;  %7095 = vmatprep.subr.bf16.mxu1 %v7566_v40  ;;  %v7646_v35 = vld [vmem:[%s10383_s7 + $0x2a8] ss:$56 sps:$4 sm:$0xff]   ;;  %v7651_v36 = vld [vmem:[%s10383_s7 + $0x314] ss:$56 sps:$4 sm:$0xff]  }
 0x25f   : > { %v7654_v40 = vld [vmem:[%s10383_s7 + $0x31c] ss:$56 sps:$4 sm:$0xff]  }
 0x261   : > { %2307 = vmatpush1.bf16.msra.mxu0 %v7563_v41  ;;  %7096 = vmatpush3.bf16.msra.mxu1 %v7567_v42  ;;  %v7649_v41 = vld [vmem:[%s10383_s7 + $0x310] ss:$56 sps:$4 sm:$0xff]  }
 0x262   : > { %2308 = vmatprep.subr.bf16.mxu0 %v7570_v43  ;;  %7097 = vmatprep.subr.bf16.mxu1 %v7571_v44  ;;  %v7652_v42 = vld [vmem:[%s10383_s7 + $0x318] ss:$56 sps:$4 sm:$0xff]   ;;  %v7657_v43 = vld [vmem:[%s10383_s7 + $0x14] ss:$56 sps:$4 sm:$0xff]  }
 0x263   : > { %v7660_v44 = vld [vmem:[%s10383_s7 + $0x1c] ss:$56 sps:$4 sm:$0xff]  }
 0x265   : > { %2309 = vmatpush1.bf16.msra.mxu0 %v7568_v45  ;;  %7098 = vmatpush3.bf16.msra.mxu1 %v7572_v46  ;;  %v8168_v45 = vmov 0  }
 0x266   : > { %2310 = vmatprep.subr.bf16.mxu0 %v7575_v47  ;;  %7099 = vmatprep.subr.bf16.mxu1 %v7576_v48 }
 0x269   : > { %2311 = vmatpush1.bf16.msra.mxu0 %v7573_v49  ;;  %7100 = vmatpush3.bf16.msra.mxu1 %v7577_v50 }
 0x26a   : > { %2312 = vmatprep.subr.bf16.mxu0 %v7580_v51  ;;  %7101 = vmatprep.subr.bf16.mxu1 %v7581_v52 }
 0x26d   : > { %2313 = vmatpush1.bf16.msra.mxu0 %v7578_v53  ;;  %7102 = vmatpush3.bf16.msra.mxu1 %v7582_v54 }
 0x26e   : > { %2314 = vmatprep.subr.bf16.mxu0 %v7585_v55  ;;  %3153 = vmatprep.subr.bf16.mxu1 %v7609_v8 }
 0x270   : > { %2372 = vmatmul.mubr.bf16.vlgmr.msra.gmra.mrb[12].mxu1 %v8871_v23 }
 0x271   : > { %2315 = vmatpush1.bf16.msra.mxu0 %v7583_v56  ;;  %3154 = vmatpush1.bf16.msra.mxu1 %v7607_v7 }
 0x272   : > { %2316 = vmatprep.subr.bf16.mxu0 %v7588_v57  ;;  %3155 = vmatprep.subr.bf16.mxu1 %v7615_v11 }
 0x273   : > { %3185 = vmatprep.mubr.bf16.mxu1 %v8168_v45 }
 0x275   : > { %2317 = vmatpush1.bf16.msra.mxu0 %v7586_v58  ;;  %3156 = vmatpush1.bf16.msra.mxu1 %v7613_v13 }
 0x276   : > { %2318 = vmatprep.subr.bf16.mxu0 %v7591_v59  ;;  %3157 = vmatprep.subr.bf16.mxu1 %v7621_v15  ;;  %v7658_v15 = vld [vmem:[%s10383_s7 + $0x18] ss:$56 sps:$4 sm:$0xff]  }
 0x279   : > { %2319 = vmatpush1.bf16.msra.mxu0 %v7589_v60  ;;  %3158 = vmatpush1.bf16.msra.mxu1 %v7619_v17  ;;  %v7663_v17 = vld [vmem:[%s10383_s7 + $0x84] ss:$56 sps:$4 sm:$0xff]  }
 0x27a   : > { %2320 = vmatprep.subr.bf16.mxu0 %v7594_v61  ;;  %3159 = vmatprep.subr.bf16.mxu1 %v7627_v19  ;;  %v7661_v19 = vld [vmem:[%s10383_s7 + $0x80] ss:$56 sps:$4 sm:$0xff]  }
 0x27d   : > { %2321 = vmatpush1.bf16.msra.mxu0 %v7592_v62  ;;  %3160 = vmatpush1.bf16.msra.mxu1 %v7625_v22  ;;  %v7669_v22 = vld [vmem:[%s10383_s7 + $0xf4] ss:$56 sps:$4 sm:$0xff]  }
 0x27e   : > { %2322 = vmatprep.subr.bf16.mxu0 %v7597_v63  ;;  %3161 = vmatprep.subr.bf16.mxu1 %v7633_v24  ;;  %v7667_v24 = vld [vmem:[%s10383_s7 + $0xf0] ss:$56 sps:$4 sm:$0xff]  }
 0x281   : > { %2323 = vmatpush1.bf16.msra.mxu0 %v7595_v0  ;;  %3162 = vmatpush1.bf16.msra.mxu1 %v7631_v26  ;;  %v7675_v26 = vld [vmem:[%s10383_s7 + $0x164] ss:$56 sps:$4 sm:$0xff]  }
 0x282   : > { %2324 = vmatprep.subr.bf16.mxu0 %v7600_v1  ;;  %3163 = vmatprep.subr.bf16.mxu1 %v7639_v28  ;;  %v7673_v28 = vld [vmem:[%s10383_s7 + $0x160] ss:$56 sps:$4 sm:$0xff]  }
 0x285   : > { %2325 = vmatpush1.bf16.msra.mxu0 %v7598_v2  ;;  %3164 = vmatpush1.bf16.msra.mxu1 %v7637_v30  ;;  %v7681_v30 = vld [vmem:[%s10383_s7 + $0x1d4] ss:$56 sps:$4 sm:$0xff]  }
 0x286   : > { %2326 = vmatprep.subr.bf16.mxu0 %v7603_v3  ;;  %3165 = vmatprep.subr.bf16.mxu1 %v7645_v32  ;;  %v7679_v32 = vld [vmem:[%s10383_s7 + $0x1d0] ss:$56 sps:$4 sm:$0xff]  }
 0x289   : > { %2327 = vmatpush1.bf16.msra.mxu0 %v7601_v4  ;;  %3166 = vmatpush1.bf16.msra.mxu1 %v7643_v34  ;;  %v7687_v34 = vld [vmem:[%s10383_s7 + $0x244] ss:$56 sps:$4 sm:$0xff]  }
 0x28a   : > { %2328 = vmatprep.subr.bf16.mxu0 %v7606_v5  ;;  %3167 = vmatprep.subr.bf16.mxu1 %v7651_v36  ;;  %v7685_v36 = vld [vmem:[%s10383_s7 + $0x240] ss:$56 sps:$4 sm:$0xff]  }
 0x28d   : > { %2329 = vmatpush1.bf16.msra.mxu0 %v7604_v6  ;;  %3168 = vmatpush1.bf16.msra.mxu1 %v7649_v41  ;;  %v7693_v41 = vld [vmem:[%s10383_s7 + $0x2b4] ss:$56 sps:$4 sm:$0xff]  }
 0x28e   : > { %3194 = vmatprep.subr.bf16.mxu0 %v7612_v10  ;;  %3235 = vmatprep.subr.bf16.mxu1 %v7657_v43  ;;  %v2403_v10 = vld [vmem:[%s10382_s6] sm:$0x1]  ;;  %v7691_v43 = vld [vmem:[%s10383_s7 + $0x2b0] ss:$56 sps:$4 sm:$0xff]  }
 0x290   : > { %2331 = vmatmul.mubr.bf16.vlgmr.msra.gmra.mrb[12].mxu0 %v8871_v23  ;;  %v7628_v23 = vld [vmem:[%s10383_s7 + $0x158] ss:$56 sps:$4 sm:$0xff]  }
 0x291   : > { %3195 = vmatpush1.bf16.msra.mxu0 %v7610_v9  ;;  %3226 = vmatprep.mubr.bf16.mxu0 %v8168_v45 }
 0x292   : > { %3196 = vmatprep.subr.bf16.mxu0 %v7618_v12 }
 0x295   : > { %3197 = vmatpush1.bf16.msra.mxu0 %v7616_v14  ;;  %v7655_v14 = vld [vmem:[%s10383_s7 + $0x10] ss:$56 sps:$4 sm:$0xff]  }
 0x296   : > { %3198 = vmatprep.subr.bf16.mxu0 %v7624_v16 }
 0x299   : > { %3199 = vmatpush1.bf16.msra.mxu0 %v7622_v18  ;;  %v7666_v18 = vld [vmem:[%s10383_s7 + $0x8c] ss:$56 sps:$4 sm:$0xff]  }
 0x29a   : > { %3200 = vmatprep.subr.bf16.mxu0 %v7630_v20  ;;  %v7664_v20 = vld [vmem:[%s10383_s7 + $0x88] ss:$56 sps:$4 sm:$0xff]  }
 0x29d   : > { %3201 = vmatpush1.bf16.msra.mxu0 %v7628_v23  ;;  %v7672_v23 = vld [vmem:[%s10383_s7 + $0xfc] ss:$56 sps:$4 sm:$0xff]  }
 0x29e   : > { %3202 = vmatprep.subr.bf16.mxu0 %v7636_v25  ;;  %v7670_v25 = vld [vmem:[%s10383_s7 + $0xf8] ss:$56 sps:$4 sm:$0xff]  }
 0x2a1   : > { %3203 = vmatpush1.bf16.msra.mxu0 %v7634_v27  ;;  %v7678_v27 = vld [vmem:[%s10383_s7 + $0x16c] ss:$56 sps:$4 sm:$0xff]  }
 0x2a2   : > { %3204 = vmatprep.subr.bf16.mxu0 %v7642_v29  ;;  %v7676_v29 = vld [vmem:[%s10383_s7 + $0x168] ss:$56 sps:$4 sm:$0xff]  }
 0x2a5   : > { %3205 = vmatpush1.bf16.msra.mxu0 %v7640_v31  ;;  %v7684_v31 = vld [vmem:[%s10383_s7 + $0x1dc] ss:$56 sps:$4 sm:$0xff]  }
 0x2a6   : > { %3206 = vmatprep.subr.bf16.mxu0 %v7648_v33  ;;  %v7682_v33 = vld [vmem:[%s10383_s7 + $0x1d8] ss:$56 sps:$4 sm:$0xff]  }
 0x2a9   : > { %3207 = vmatpush1.bf16.msra.mxu0 %v7646_v35  ;;  %v7690_v35 = vld [vmem:[%s10383_s7 + $0x24c] ss:$56 sps:$4 sm:$0xff]  }
 0x2aa   : > { %3208 = vmatprep.subr.bf16.mxu0 %v7654_v40  ;;  %v7688_v40 = vld [vmem:[%s10383_s7 + $0x248] ss:$56 sps:$4 sm:$0xff]  }
 0x2ad   : > { %3209 = vmatpush1.bf16.msra.mxu0 %v7652_v42  ;;  %v7696_v42 = vld [vmem:[%s10383_s7 + $0x2bc] ss:$56 sps:$4 sm:$0xff]  }
 0x2ae   : > { %3276 = vmatprep.subr.bf16.mxu0 %v7660_v44  ;;  %v7694_v44 = vld [vmem:[%s10383_s7 + $0x2b8] ss:$56 sps:$4 sm:$0xff]  }
 0x323   : > { %v2250_v46 = vpop.f32.mrb[8].mxu0  ;;  %v2291_v47 = vpop.f32.mrb[8].mxu1 }
 0x324   : > { %v2252_v48 = vpop.f32.mrb[9].mxu0  ;;  %v2293_v49 = vpop.f32.mrb[9].mxu1  ;;  %v2384_v55 = vrot.slane %v2291_v47, 2  ;;  %v7702_v47 = vld [vmem:[%s10383_s7 + $0x32c] ss:$56 sps:$4 sm:$0xff]  }
 0x325   : > { %v2380_v50 = vrot.slane %v2252_v48, 1  ;;  %v2254_v51 = vpop.f32.mrb[10].mxu0  ;;  %v2295_v52 = vpop.f32.mrb[10].mxu1  ;;  %v2388_v58 = vrot.slane %v2293_v49, 3  ;;  %v7697_v48 = vld [vmem:[%s10383_s7 + $0x320] ss:$56 sps:$4 sm:$0xff]  }
 0x326   : > { %v2255_v53 = vpop.f32.mrb[11].mxu0  ;;  %v2296_v54 = vpop.f32.mrb[11].mxu1  ;;  %v7700_v49 = vld [vmem:[%s10383_s7 + $0x328] ss:$56 sps:$4 sm:$0xff]   ;;  %v7708_v51 = vld [vmem:[%s10383_s7 + $0x2c] ss:$56 sps:$4 sm:$0xff]  }
 0x327   : > { %v2382_v56 = vadd.f32 %v2380_v50, %v2250_v46  ;;  %v7699_v46 = vld [vmem:[%s10383_s7 + $0x324] ss:$56 sps:$4 sm:$0xff]   ;;  %v7703_v52 = vld [vmem:[%s10383_s7 + $0x20] ss:$56 sps:$4 sm:$0xff]   ;;  %v7711_v54 = vld [vmem:[%s10383_s7 + $0x94] ss:$56 sps:$4 sm:$0xff]  }
 0x328   : > { %v7705_v50 = vld [vmem:[%s10383_s7 + $0x24] ss:$56 sps:$4 sm:$0xff]   ;;  %v7706_v53 = vld [vmem:[%s10383_s7 + $0x28] ss:$56 sps:$4 sm:$0xff]  }
 0x329   : > { %v2386_v57 = vadd.f32 %v2384_v55, %v2382_v56  ;;  %v7714_v55 = vld [vmem:[%s10383_s7 + $0x9c] ss:$56 sps:$4 sm:$0xff]   ;;  %v7709_v56 = vld [vmem:[%s10383_s7 + $0x90] ss:$56 sps:$4 sm:$0xff]  }
 0x32b   : > { %v2390_v59 = vadd.f32 %v2388_v58, %v2386_v57  ;;  %v7712_v57 = vld [vmem:[%s10383_s7 + $0x98] ss:$56 sps:$4 sm:$0xff]   ;;  %v7717_v58 = vld [vmem:[%s10383_s7 + $0x104] ss:$56 sps:$4 sm:$0xff]  }
 0x343   : > { %v7103_v60 = vpop.f32.mrb[12].mxu1 }
 0x344   : > { %v7104_v61 = vpop.f32.mrb[13].mxu1 }
 0x345   : > { %v7105_v62 = vadd.f32 %v7104_v61, %v7103_v60  ;;  %v7106_v63 = vpop.f32.mrb[14].mxu1  ;;  %v7715_v60 = vld [vmem:[%s10383_s7 + $0x100] ss:$56 sps:$4 sm:$0xff]  }
 0x346   : > { %v7107_v0 = vpop.f32.mrb[15].mxu1  ;;  %v7718_v61 = vld [vmem:[%s10383_s7 + $0x108] ss:$56 sps:$4 sm:$0xff]   ;;  %v7726_v63 = vld [vmem:[%s10383_s7 + $0x17c] ss:$56 sps:$4 sm:$0xff]  }
 0x347   : > { %v2400_v8 = vrot.slane %v7105_v62, 6  ;;  %v7723_v62 = vld [vmem:[%s10383_s7 + $0x174] ss:$56 sps:$4 sm:$0xff]   ;;  %v7721_v0 = vld [vmem:[%s10383_s7 + $0x170] ss:$56 sps:$4 sm:$0xff]  }
 0x363   : > { %v2332_v1 = vpop.f32.mrb[12].mxu0 }
 0x364   : > { %v2392_v2 = vrot.slane %v2332_v1, 4  ;;  %v2334_v3 = vpop.f32.mrb[13].mxu0  ;;  %v7724_v1 = vld [vmem:[%s10383_s7 + $0x178] ss:$56 sps:$4 sm:$0xff]  }
 0x365   : > { %v2396_v4 = vrot.slane %v2334_v3, 5  ;;  %v2336_v5 = vpop.f32.mrb[14].mxu0  ;;  %v7732_v3 = vld [vmem:[%s10383_s7 + $0x1ec] ss:$56 sps:$4 sm:$0xff]  }
 0x366   : > { %v2394_v6 = vadd.f32 %v2392_v2, %v2390_v59  ;;  %v2337_v7 = vpop.f32.mrb[15].mxu0  ;;  %v7720_v59 = vld [vmem:[%s10383_s7 + $0x10c] ss:$56 sps:$4 sm:$0xff]   ;;  %v7730_v5 = vld [vmem:[%s10383_s7 + $0x1e8] ss:$56 sps:$4 sm:$0xff]  }
 0x367   : > { %v7729_v2 = vld [vmem:[%s10383_s7 + $0x1e4] ss:$56 sps:$4 sm:$0xff]  }
 0x368   : > { %v2398_v9 = vadd.f32 %v2396_v4, %v2394_v6  ;;  %v7727_v4 = vld [vmem:[%s10383_s7 + $0x1e0] ss:$56 sps:$4 sm:$0xff]   ;;  %v7735_v6 = vld [vmem:[%s10383_s7 + $0x254] ss:$56 sps:$4 sm:$0xff]  }
 0x369   : > { %v7738_v7 = vld [vmem:[%s10383_s7 + $0x25c] ss:$56 sps:$4 sm:$0xff]  }
 0x36a   : > { %v2402_v11 = vadd.f32 %v2400_v8, %v2398_v9  ;;  %v7733_v8 = vld [vmem:[%s10383_s7 + $0x250] ss:$56 sps:$4 sm:$0xff]  }
 0x36b   : > { %v7736_v9 = vld [vmem:[%s10383_s7 + $0x258] ss:$56 sps:$4 sm:$0xff]  }
 0x36c   : > { %v2404_v12 = vadd.f32 %v2403_v10, %v2402_v11  ;;  %v7741_v10 = vld [vmem:[%s10383_s7 + $0x2c4] ss:$56 sps:$4 sm:$0xff]  }
 0x36d   : > { %v7744_v11 = vld [vmem:[%s10383_s7 + $0x2cc] ss:$56 sps:$4 sm:$0xff]  }
 0x36e   : > { %v2405_v13 = vmax.f32 %v2404_v12, 0.0  ;;  %v7739_v12 = vld [vmem:[%s10383_s7 + $0x2c0] ss:$56 sps:$4 sm:$0xff]  }
 0x370   : > { %v9122_v16 = vpack.c.bf16 %v2405_v13, %v2405_v13  ;;  %v7742_v13 = vld [vmem:[%s10383_s7 + $0x2c8] ss:$56 sps:$4 sm:$0xff]  }
 0x372   : > { %3186 = vmatmul.mubr.bf16.vlgmr.msra.gmra.mrb[16].mxu1 %v9122_v16  ;;  %3227 = vmatmul.mubr.bf16.vlgmr.msra.gmra.mrb[16].mxu0 %v9122_v16 }
 0x373   : > { %3236 = vmatpush1.bf16.msra.mxu1 %v7655_v14  ;;  %3277 = vmatpush1.bf16.msra.mxu0 %v7658_v15  ;;  %v7747_v14 = vld [vmem:[%s10383_s7 + $0x334] ss:$56 sps:$4 sm:$0xff]  }
 0x374   : > { %3237 = vmatprep.subr.bf16.mxu1 %v7663_v17  ;;  %3278 = vmatprep.subr.bf16.mxu0 %v7666_v18  ;;  %v7750_v15 = vld [vmem:[%s10383_s7 + $0x33c] ss:$56 sps:$4 sm:$0xff]   ;;  %v7745_v17 = vld [vmem:[%s10383_s7 + $0x330] ss:$56 sps:$4 sm:$0xff]  }
 0x375   : > { %3267 = vmatprep.mubr.bf16.mxu1 %v8168_v45  ;;  %3308 = vmatprep.mubr.bf16.mxu0 %v8168_v45  ;;  %v7748_v18 = vld [vmem:[%s10383_s7 + $0x338] ss:$56 sps:$4 sm:$0xff]  }
 0x377   : > { %3238 = vmatpush1.bf16.msra.mxu1 %v7661_v19  ;;  %3279 = vmatpush1.bf16.msra.mxu0 %v7664_v20  ;;  %v7753_v19 = vld [vmem:[%s10383_s7 + $0x34] ss:$56 sps:$4 sm:$0xff]   ;;  %v7751_v20 = vld [vmem:[%s10383_s7 + $0x30] ss:$56 sps:$4 sm:$0xff]  }
 0x378   : > { %3239 = vmatprep.subr.bf16.mxu1 %v7669_v22  ;;  %3280 = vmatprep.subr.bf16.mxu0 %v7672_v23  ;;  %v7756_v22 = vld [vmem:[%s10383_s7 + $0xa4] ss:$56 sps:$4 sm:$0xff]   ;;  %v7754_v23 = vld [vmem:[%s10383_s7 + $0xa0] ss:$56 sps:$4 sm:$0xff]  }
 0x37b   : > { %3240 = vmatpush1.bf16.msra.mxu1 %v7667_v24  ;;  %3281 = vmatpush1.bf16.msra.mxu0 %v7670_v25  ;;  %v7759_v24 = vld [vmem:[%s10383_s7 + $0x114] ss:$56 sps:$4 sm:$0xff]   ;;  %v7757_v25 = vld [vmem:[%s10383_s7 + $0x110] ss:$56 sps:$4 sm:$0xff]  }
 0x37c   : > { %3241 = vmatprep.subr.bf16.mxu1 %v7675_v26  ;;  %3282 = vmatprep.subr.bf16.mxu0 %v7678_v27  ;;  %v7762_v26 = vld [vmem:[%s10383_s7 + $0x184] ss:$56 sps:$4 sm:$0xff]   ;;  %v7765_v27 = vld [vmem:[%s10383_s7 + $0x1f4] ss:$56 sps:$4 sm:$0xff]  }
 0x37f   : > { %3242 = vmatpush1.bf16.msra.mxu1 %v7673_v28  ;;  %3283 = vmatpush1.bf16.msra.mxu0 %v7676_v29  ;;  %v7763_v28 = vld [vmem:[%s10383_s7 + $0x1f0] ss:$56 sps:$4 sm:$0xff]   ;;  %v7768_v29 = vld [vmem:[%s10383_s7 + $0x264] ss:$56 sps:$4 sm:$0xff]  }
 0x380   : > { %3243 = vmatprep.subr.bf16.mxu1 %v7681_v30  ;;  %3284 = vmatprep.subr.bf16.mxu0 %v7684_v31  ;;  %v7766_v30 = vld [vmem:[%s10383_s7 + $0x260] ss:$56 sps:$4 sm:$0xff]   ;;  %v7771_v31 = vld [vmem:[%s10383_s7 + $0x2d4] ss:$56 sps:$4 sm:$0xff]  }
 0x383   : > { %3244 = vmatpush1.bf16.msra.mxu1 %v7679_v32  ;;  %3285 = vmatpush1.bf16.msra.mxu0 %v7682_v33  ;;  %v7769_v32 = vld [vmem:[%s10383_s7 + $0x2d0] ss:$56 sps:$4 sm:$0xff]   ;;  %v7774_v33 = vld [vmem:[%s10383_s7 + $0x344] ss:$56 sps:$4 sm:$0xff]  }
 0x384   : > { %3245 = vmatprep.subr.bf16.mxu1 %v7687_v34  ;;  %3286 = vmatprep.subr.bf16.mxu0 %v7690_v35  ;;  %v7772_v34 = vld [vmem:[%s10383_s7 + $0x340] ss:$56 sps:$4 sm:$0xff]   ;;  %v7777_v35 = vld [vmem:[%s10385_s9 + $0x204] ss:$16 sps:$4 sm:$0xff]  }
 0x387   : > { %3246 = vmatpush1.bf16.msra.mxu1 %v7685_v36  ;;  %3287 = vmatpush1.bf16.msra.mxu0 %v7688_v40  ;;  %v3605_v36 = vld [vmem:[#allocation2 + $0x18] sm:$0x7f]  ;;  %v7775_v40 = vld [vmem:[%s10385_s9 + $0x200] ss:$16 sps:$4 sm:$0xff]  }
 0x388   : > { %3247 = vmatprep.subr.bf16.mxu1 %v7693_v41  ;;  %3288 = vmatprep.subr.bf16.mxu0 %v7696_v42  ;;  %v7780_v41 = vld [vmem:[%s10385_s9 + $0x224] ss:$16 sps:$4 sm:$0xff]   ;;  %v9372_v42 = vpack.c.bf16 %v3605_v36, %v3605_v36  ;;  %v7832_v36 = vld [vmem:[%s10385_s9 + $0x268] ss:$16 sps:$4 sm:$0xff]  }
 0x38b   : > { %3248 = vmatpush1.bf16.msra.mxu1 %v7691_v43  ;;  %3289 = vmatpush1.bf16.msra.mxu0 %v7694_v44  ;;  %v7778_v43 = vld [vmem:[%s10385_s9 + $0x220] ss:$16 sps:$4 sm:$0xff]   ;;  %v7783_v44 = vld [vmem:[%s10385_s9 + $0x244] ss:$16 sps:$4 sm:$0xff]  }
 0x38c   : > { %3249 = vmatprep.subr.bf16.mxu1 %v7699_v46  ;;  %3290 = vmatprep.subr.bf16.mxu0 %v7702_v47  ;;  %v7781_v46 = vld [vmem:[%s10385_s9 + $0x240] ss:$16 sps:$4 sm:$0xff]  }
 0x38d   : > { %v7784_v47 = vld [vmem:[%s10385_s9 + $0x260] ss:$16 sps:$4 sm:$0xff]  }
 0x38f   : > { %3250 = vmatpush1.bf16.msra.mxu1 %v7697_v48  ;;  %3291 = vmatpush1.bf16.msra.mxu0 %v7700_v49  ;;  %v7789_v48 = vld [vmem:[%s10385_s9 + $0x284] ss:$16 sps:$4 sm:$0xff]   ;;  %v7787_v49 = vld [vmem:[%s10385_s9 + $0x280] ss:$16 sps:$4 sm:$0xff]  }
 0x390   : > { %3317 = vmatprep.subr.bf16.mxu1 %v7705_v50  ;;  %3358 = vmatprep.subr.bf16.mxu0 %v7708_v51  ;;  %v7792_v50 = vld [vmem:[%s10385_s9 + $0x2a4] ss:$16 sps:$4 sm:$0xff]   ;;  %v7790_v51 = vld [vmem:[%s10385_s9 + $0x2a0] ss:$16 sps:$4 sm:$0xff]  }
 0x392   : > { %3268 = vmatmul.mubr.bf16.vlgmr.msra.gmra.mrb[20].mxu1 %v9122_v16  ;;  %3309 = vmatmul.mubr.bf16.vlgmr.msra.gmra.mrb[20].mxu0 %v9122_v16 }
 0x393   : > { %3318 = vmatpush1.bf16.msra.mxu1 %v7703_v52  ;;  %3359 = vmatpush1.bf16.msra.mxu0 %v7706_v53  ;;  %v7795_v52 = vld [vmem:[%s10385_s9 + $0x2c4] ss:$16 sps:$4 sm:$0xff]   ;;  %v7793_v53 = vld [vmem:[%s10385_s9 + $0x2c0] ss:$16 sps:$4 sm:$0xff]  }
 0x394   : > { %3319 = vmatprep.subr.bf16.mxu1 %v7711_v54  ;;  %3360 = vmatprep.subr.bf16.mxu0 %v7714_v55  ;;  %v7798_v54 = vld [vmem:[%s10385_s9 + $0x2e4] ss:$16 sps:$4 sm:$0xff]   ;;  %v7796_v55 = vld [vmem:[%s10385_s9 + $0x2e0] ss:$16 sps:$4 sm:$0xff]  }
 0x395   : > { %3349 = vmatprep.mubr.bf16.mxu1 %v8168_v45  ;;  %3390 = vmatprep.mubr.bf16.mxu0 %v8168_v45 }
 0x397   : > { %3320 = vmatpush1.bf16.msra.mxu1 %v7709_v56  ;;  %3361 = vmatpush1.bf16.msra.mxu0 %v7712_v57  ;;  %v7801_v56 = vld [vmem:[%s10385_s9 + $0x304] ss:$16 sps:$4 sm:$0xff]   ;;  %v7799_v57 = vld [vmem:[%s10385_s9 + $0x300] ss:$16 sps:$4 sm:$0xff]  }
 0x398   : > { %3321 = vmatprep.subr.bf16.mxu1 %v7717_v58  ;;  %3362 = vmatprep.subr.bf16.mxu0 %v7720_v59  ;;  %v7804_v58 = vld [vmem:[%s10385_s9 + $0x324] ss:$16 sps:$4 sm:$0xff]   ;;  %v7802_v59 = vld [vmem:[%s10385_s9 + $0x320] ss:$16 sps:$4 sm:$0xff]  }
 0x39b   : > { %3322 = vmatpush1.bf16.msra.mxu1 %v7715_v60  ;;  %3363 = vmatpush1.bf16.msra.mxu0 %v7718_v61  ;;  %v7807_v60 = vld [vmem:[%s10385_s9 + $0x344] ss:$16 sps:$4 sm:$0xff]   ;;  %v7805_v61 = vld [vmem:[%s10385_s9 + $0x340] ss:$16 sps:$4 sm:$0xff]  }
 0x39c   : > { %3323 = vmatprep.subr.bf16.mxu1 %v7723_v62  ;;  %3364 = vmatprep.subr.bf16.mxu0 %v7726_v63  ;;  %v7810_v62 = vld [vmem:[%s10385_s9 + $0x364] ss:$16 sps:$4 sm:$0xff]   ;;  %v7904_v63 = vld [vmem:[%s10385_s9] ss:$16 sps:$4 sm:$0xff]  }
 0x39f   : > { %3324 = vmatpush1.bf16.msra.mxu1 %v7721_v0  ;;  %3365 = vmatpush1.bf16.msra.mxu0 %v7724_v1  ;;  %v7906_v0 = vld [vmem:[%s10385_s9 + $0x4] ss:$16 sps:$4 sm:$0xff]   ;;  %v7808_v1 = vld [vmem:[%s10385_s9 + $0x360] ss:$16 sps:$4 sm:$0xff]  }
 0x3a0   : > { %3325 = vmatprep.subr.bf16.mxu1 %v7729_v2  ;;  %3366 = vmatprep.subr.bf16.mxu0 %v7732_v3  ;;  %v7813_v2 = vld [vmem:[%s10385_s9 + $0x384] ss:$16 sps:$4 sm:$0xff]   ;;  %v7910_v3 = vld [vmem:[%s10385_s9 + $0x20] ss:$16 sps:$4 sm:$0xff]  }
 0x3a3   : > { %3326 = vmatpush1.bf16.msra.mxu1 %v7727_v4  ;;  %3367 = vmatpush1.bf16.msra.mxu0 %v7730_v5  ;;  %v7912_v4 = vld [vmem:[%s10385_s9 + $0x24] ss:$16 sps:$4 sm:$0xff]   ;;  %v7811_v5 = vld [vmem:[%s10385_s9 + $0x380] ss:$16 sps:$4 sm:$0xff]  }
 0x3a4   : > { %3327 = vmatprep.subr.bf16.mxu1 %v7735_v6  ;;  %3368 = vmatprep.subr.bf16.mxu0 %v7738_v7  ;;  %v7816_v6 = vld [vmem:[%s10385_s9 + $0x3a4] ss:$16 sps:$4 sm:$0xff]   ;;  %v7916_v7 = vld [vmem:[%s10385_s9 + $0x40] ss:$16 sps:$4 sm:$0xff]  }
 0x3a7   : > { %3328 = vmatpush1.bf16.msra.mxu1 %v7733_v8  ;;  %3369 = vmatpush1.bf16.msra.mxu0 %v7736_v9  ;;  %v7918_v8 = vld [vmem:[%s10385_s9 + $0x44] ss:$16 sps:$4 sm:$0xff]   ;;  %v7814_v9 = vld [vmem:[%s10385_s9 + $0x3a0] ss:$16 sps:$4 sm:$0xff]  }
 0x3a8   : > { %3329 = vmatprep.subr.bf16.mxu1 %v7741_v10  ;;  %3370 = vmatprep.subr.bf16.mxu0 %v7744_v11  ;;  %v7819_v10 = vld [vmem:[%s10385_s9 + $0x3c4] ss:$16 sps:$4 sm:$0xff]  }
 0x3a9   : > { %v7924_v11 = vld [vmem:[%s10385_s9 + $0x64] ss:$16 sps:$4 sm:$0xff]  }
 0x3ab   : > { %3330 = vmatpush1.bf16.msra.mxu1 %v7739_v12  ;;  %3371 = vmatpush1.bf16.msra.mxu0 %v7742_v13  ;;  %v7922_v12 = vld [vmem:[%s10385_s9 + $0x60] ss:$16 sps:$4 sm:$0xff]  }
 0x3ac   : > { %3331 = vmatprep.subr.bf16.mxu1 %v7747_v14  ;;  %3372 = vmatprep.subr.bf16.mxu0 %v7750_v15  ;;  %v7817_v13 = vld [vmem:[%s10385_s9 + $0x3c0] ss:$16 sps:$4 sm:$0xff]   ;;  %v7822_v14 = vld [vmem:[%s10385_s9 + $0x3e4] ss:$16 sps:$4 sm:$0xff]  }
 0x3ad   : > { %v7930_v15 = vld [vmem:[%s10385_s9 + $0x84] ss:$16 sps:$4 sm:$0xff]  }
 0x3af   : > { %3332 = vmatpush1.bf16.msra.mxu1 %v7745_v17  ;;  %3373 = vmatpush1.bf16.msra.mxu0 %v7748_v18  ;;  %v7928_v17 = vld [vmem:[%s10385_s9 + $0x80] ss:$16 sps:$4 sm:$0xff]  }
 0x3b0   : > { %3399 = vmatprep.subr.bf16.mxu1 %v7753_v19  ;;  %4382 = vmatprep.subr.bf16.mxu0 %v7906_v0  ;;  %v7820_v18 = vld [vmem:[%s10385_s9 + $0x3e0] ss:$16 sps:$4 sm:$0xff]   ;;  %v7825_v19 = vld [vmem:[%s10385_s9 + $0x20c] ss:$16 sps:$4 sm:$0xff]  }
 0x3b1   : > { %v7855_v0 = vld [vmem:[%s10385_s9 + $0x34c] ss:$16 sps:$4 sm:$0xff]  }
 0x3b2   : > { %3350 = vmatmul.mubr.bf16.vlgmr.msra.gmra.mrb[24].mxu1 %v9122_v16  ;;  %3391 = vmatmul.mubr.bf16.vlgmr.msra.gmra.mrb[24].mxu0 %v9122_v16 }
 0x3b3   : > { %3400 = vmatpush1.bf16.msra.mxu1 %v7751_v20  ;;  %3431 = vmatprep.mubr.bf16.mxu1 %v8168_v45  ;;  %v7760_v45 = vld [vmem:[%s10383_s7 + $0x180] ss:$56 sps:$4 sm:$0xff]   ;;  %v3604_v20 = vld [vmem:[#allocation2 + $0x10] sm:$0x7f] }
 0x3b4   : > { %3401 = vmatprep.subr.bf16.mxu1 %v7756_v22  ;;  %4383 = vmatpush1.bf16.msra.mxu0 %v7904_v63  ;;  %v7936_v22 = vld [vmem:[%s10385_s9 + $0xa4] ss:$16 sps:$4 sm:$0xff]   ;;  %v7850_v63 = vld [vmem:[%s10385_s9 + $0x328] ss:$16 sps:$4 sm:$0xff]  }
 0x3b5   : > { %4384 = vmatprep.subr.bf16.mxu0 %v7912_v4  ;;  %v7858_v4 = vld [vmem:[%s10385_s9 + $0x36c] ss:$16 sps:$4 sm:$0xff]  }
 0x3b7   : > { %3402 = vmatpush1.bf16.msra.mxu1 %v7754_v23  ;;  %v7934_v23 = vld [vmem:[%s10385_s9 + $0xa0] ss:$16 sps:$4 sm:$0xff]  }
 0x3b8   : > { %3403 = vmatprep.subr.bf16.mxu1 %v7759_v24  ;;  %4385 = vmatpush1.bf16.msra.mxu0 %v7910_v3  ;;  %v7823_v24 = vld [vmem:[%s10385_s9 + $0x208] ss:$16 sps:$4 sm:$0xff]  }
 0x3b9   : > { %4386 = vmatprep.subr.bf16.mxu0 %v7918_v8  ;;  %v7853_v3 = vld [vmem:[%s10385_s9 + $0x348] ss:$16 sps:$4 sm:$0xff]   ;;  %v3093_v8 = vsub.s32 2, %v8556_v37 }
 0x3bb   : > { %3404 = vmatpush1.bf16.msra.mxu1 %v7757_v25  ;;  %v9505_v25 = vpack.c.bf16 %v3604_v20, %v3604_v20 }
 0x3bc   : > { %3405 = vmatprep.subr.bf16.mxu1 %v7762_v26  ;;  %4387 = vmatpush1.bf16.msra.mxu0 %v7916_v7  ;;  %v7828_v26 = vld [vmem:[%s10385_s9 + $0x22c] ss:$16 sps:$4 sm:$0xff]  }
 0x3bd   : > { %4388 = vmatprep.subr.bf16.mxu0 %v7924_v11  ;;  %v7861_v7 = vld [vmem:[%s10385_s9 + $0x38c] ss:$16 sps:$4 sm:$0xff]   ;;  %v3097_v11 = vsub.s32 3, %v8556_v37 }
 0x3bf   : > { %3406 = vmatpush1.bf16.msra.mxu1 %v7760_v45  ;;  %v7940_v45 = vld [vmem:[%s10385_s9 + $0xc4] ss:$16 sps:$4 sm:$0xff]  }
 0x3c0   : > { %3407 = vmatprep.subr.bf16.mxu1 %v7765_v27  ;;  %4389 = vmatpush1.bf16.msra.mxu0 %v7922_v12  ;;  %v7938_v27 = vld [vmem:[%s10385_s9 + $0xc0] ss:$16 sps:$4 sm:$0xff]   ;;  %v7864_v12 = vld [vmem:[%s10385_s9 + $0x3ac] ss:$16 sps:$4 sm:$0xff]  }
 0x3c1   : > { %4390 = vmatprep.subr.bf16.mxu0 %v7930_v15 }
 0x3c3   : > { %3408 = vmatpush1.bf16.msra.mxu1 %v7763_v28  ;;  %v7826_v28 = vld [vmem:[%s10385_s9 + $0x228] ss:$16 sps:$4 sm:$0xff]  }
 0x3c4   : > { %3409 = vmatprep.subr.bf16.mxu1 %v7768_v29  ;;  %4391 = vmatpush1.bf16.msra.mxu0 %v7928_v17  ;;  %v7831_v29 = vld [vmem:[%s10385_s9 + $0x24c] ss:$16 sps:$4 sm:$0xff]  }
 0x3c5   : > { %4392 = vmatprep.subr.bf16.mxu0 %v7936_v22 }
 0x3c7   : > { %3410 = vmatpush1.bf16.msra.mxu1 %v7766_v30  ;;  %v7945_v30 = vld [vmem:[%s10385_s9 + $0xe4] ss:$16 sps:$4 sm:$0xff]  }
 0x3c8   : > { %3411 = vmatprep.subr.bf16.mxu1 %v7771_v31  ;;  %4393 = vmatpush1.bf16.msra.mxu0 %v7934_v23  ;;  %v7943_v31 = vld [vmem:[%s10385_s9 + $0xe0] ss:$16 sps:$4 sm:$0xff]   ;;  %v7867_v23 = vld [vmem:[%s10385_s9 + $0x3cc] ss:$16 sps:$4 sm:$0xff]  }
 0x3c9   : > { %4394 = vmatprep.subr.bf16.mxu0 %v7940_v45 }
 0x3cb   : > { %3412 = vmatpush1.bf16.msra.mxu1 %v7769_v32  ;;  %v7829_v32 = vld [vmem:[%s10385_s9 + $0x248] ss:$16 sps:$4 sm:$0xff]  }
 0x3cc   : > { %3413 = vmatprep.subr.bf16.mxu1 %v7774_v33  ;;  %4395 = vmatpush1.bf16.msra.mxu0 %v7938_v27  ;;  %v7834_v33 = vld [vmem:[%s10385_s9 + $0x26c] ss:$16 sps:$4 sm:$0xff]  }
 0x3cd   : > { %4396 = vmatprep.subr.bf16.mxu0 %v7945_v30 }
 0x3cf   : > { %3414 = vmatpush1.bf16.msra.mxu1 %v7772_v34  ;;  %v7950_v34 = vld [vmem:[%s10385_s9 + $0x104] ss:$16 sps:$4 sm:$0xff]  }
 0x3d0   : > { %4423 = vmatprep.subr.bf16.mxu1 %v7777_v35  ;;  %4397 = vmatpush1.bf16.msra.mxu0 %v7943_v31  ;;  %v7948_v35 = vld [vmem:[%s10385_s9 + $0x100] ss:$16 sps:$4 sm:$0xff]  }
 0x3d1   : > { %4398 = vmatprep.subr.bf16.mxu0 %v7950_v34 }
 0x3d2   : > { %3432 = vmatmul.mubr.bf16.vlgmr.msra.gmra.mrb[28].mxu1 %v9122_v16  ;;  %v7786_v16 = vld [vmem:[%s10385_s9 + $0x264] ss:$16 sps:$4 sm:$0xff]  }
 0x3d3   : > { %4424 = vmatpush1.bf16.msra.mxu1 %v7775_v40  ;;  %4455 = vmatprep.mubr.bf16.mxu1 %v9372_v42  ;;  %v7837_v40 = vld [vmem:[%s10385_s9 + $0x28c] ss:$16 sps:$4 sm:$0xff]  }
 0x3d4   : > { %4425 = vmatprep.subr.bf16.mxu1 %v7780_v41  ;;  %v7955_v41 = vld [vmem:[%s10385_s9 + $0x124] ss:$16 sps:$4 sm:$0xff]   ;;  %4399 = vmatpush1.bf16.msra.mxu0 %v7948_v35 }
 0x3d5   : > { %4400 = vmatprep.subr.bf16.mxu0 %v7955_v41 }
 0x3d7   : > { %4426 = vmatpush1.bf16.msra.mxu1 %v7778_v43  ;;  %v7835_v43 = vld [vmem:[%s10385_s9 + $0x288] ss:$16 sps:$4 sm:$0xff]  }
 0x3d8   : > { %4427 = vmatprep.subr.bf16.mxu1 %v7783_v44  ;;  %v7840_v44 = vld [vmem:[%s10385_s9 + $0x2ac] ss:$16 sps:$4 sm:$0xff]  }
 0x3db   : > { %4428 = vmatpush1.bf16.msra.mxu1 %v7781_v46  ;;  %v7960_v46 = vld [vmem:[%s10385_s9 + $0x144] ss:$16 sps:$4 sm:$0xff]  }
 0x3dc   : > { %4429 = vmatprep.subr.bf16.mxu1 %v7786_v16  ;;  %v7958_v16 = vld [vmem:[%s10385_s9 + $0x140] ss:$16 sps:$4 sm:$0xff]  }
 0x3df   : > { %4430 = vmatpush1.bf16.msra.mxu1 %v7784_v47  ;;  %v7838_v47 = vld [vmem:[%s10385_s9 + $0x2a8] ss:$16 sps:$4 sm:$0xff]  }
 0x3e0   : > { %4431 = vmatprep.subr.bf16.mxu1 %v7789_v48  ;;  %v7843_v48 = vld [vmem:[%s10385_s9 + $0x2cc] ss:$16 sps:$4 sm:$0xff]  }
 0x3e3   : > { %4432 = vmatpush1.bf16.msra.mxu1 %v7787_v49  ;;  %v7965_v49 = vld [vmem:[%s10385_s9 + $0x164] ss:$16 sps:$4 sm:$0xff]  }
 0x3e4   : > { %4433 = vmatprep.subr.bf16.mxu1 %v7792_v50  ;;  %v7963_v50 = vld [vmem:[%s10385_s9 + $0x160] ss:$16 sps:$4 sm:$0xff]  }
 0x3e7   : > { %4434 = vmatpush1.bf16.msra.mxu1 %v7790_v51  ;;  %v7841_v51 = vld [vmem:[%s10385_s9 + $0x2c8] ss:$16 sps:$4 sm:$0xff]  }
 0x3e8   : > { %4435 = vmatprep.subr.bf16.mxu1 %v7795_v52  ;;  %v7846_v52 = vld [vmem:[%s10385_s9 + $0x2ec] ss:$16 sps:$4 sm:$0xff]  }
 0x3eb   : > { %4436 = vmatpush1.bf16.msra.mxu1 %v7793_v53  ;;  %v7970_v53 = vld [vmem:[%s10385_s9 + $0x184] ss:$16 sps:$4 sm:$0xff]  }
 0x3ec   : > { %4437 = vmatprep.subr.bf16.mxu1 %v7798_v54  ;;  %v7968_v54 = vld [vmem:[%s10385_s9 + $0x180] ss:$16 sps:$4 sm:$0xff]  }
 0x3ef   : > { %4438 = vmatpush1.bf16.msra.mxu1 %v7796_v55  ;;  %v7844_v55 = vld [vmem:[%s10385_s9 + $0x2e8] ss:$16 sps:$4 sm:$0xff]  }
 0x3f0   : > { %4439 = vmatprep.subr.bf16.mxu1 %v7801_v56  ;;  %v7849_v56 = vld [vmem:[%s10385_s9 + $0x30c] ss:$16 sps:$4 sm:$0xff]  }
 0x3f3   : > { %4440 = vmatpush1.bf16.msra.mxu1 %v7799_v57  ;;  %v7975_v57 = vld [vmem:[%s10385_s9 + $0x1a4] ss:$16 sps:$4 sm:$0xff]  }
 0x3f4   : > { %4441 = vmatprep.subr.bf16.mxu1 %v7804_v58  ;;  %v7973_v58 = vld [vmem:[%s10385_s9 + $0x1a0] ss:$16 sps:$4 sm:$0xff]  }
 0x3f7   : > { %4442 = vmatpush1.bf16.msra.mxu1 %v7802_v59  ;;  %v7847_v59 = vld [vmem:[%s10385_s9 + $0x308] ss:$16 sps:$4 sm:$0xff]  }
 0x3f8   : > { %4443 = vmatprep.subr.bf16.mxu1 %v7807_v60  ;;  %v7852_v60 = vld [vmem:[%s10385_s9 + $0x32c] ss:$16 sps:$4 sm:$0xff]  }
 0x3fb   : > { %4444 = vmatpush1.bf16.msra.mxu1 %v7805_v61  ;;  %v7980_v61 = vld [vmem:[%s10385_s9 + $0x1c4] ss:$16 sps:$4 sm:$0xff]  }
 0x3fc   : > { %4445 = vmatprep.subr.bf16.mxu1 %v7810_v62  ;;  %v7978_v62 = vld [vmem:[%s10385_s9 + $0x1c0] ss:$16 sps:$4 sm:$0xff]  }
 0x3ff   : > { %4446 = vmatpush1.bf16.msra.mxu1 %v7808_v1  ;;  %v7985_v1 = vld [vmem:[%s10385_s9 + $0x1e4] ss:$16 sps:$4 sm:$0xff]  }
 0x400   : > { %4447 = vmatprep.subr.bf16.mxu1 %v7813_v2  ;;  %v7983_v2 = vld [vmem:[%s10385_s9 + $0x1e0] ss:$16 sps:$4 sm:$0xff]  }
 0x403   : > { %4448 = vmatpush1.bf16.msra.mxu1 %v7811_v5  ;;  %v7990_v5 = vld [vmem:[%s10385_s9 + $0xc] ss:$16 sps:$4 sm:$0xff]  }
 0x404   : > { %4449 = vmatprep.subr.bf16.mxu1 %v7816_v6  ;;  %v7856_v6 = vld [vmem:[%s10385_s9 + $0x368] ss:$16 sps:$4 sm:$0xff]  }
 0x407   : > { %4450 = vmatpush1.bf16.msra.mxu1 %v7814_v9  ;;  %v7859_v9 = vld [vmem:[%s10385_s9 + $0x388] ss:$16 sps:$4 sm:$0xff]  }
 0x408   : > { %4451 = vmatprep.subr.bf16.mxu1 %v7819_v10  ;;  %v9648_v10 = vld [vmem:[%s10384_s8] sm:$0xff] }
 0x409   : > { %v3086_v15 = vrot.slane %v9648_v10, %v8559_v38  ;;  %v3094_v17 = vrot.slane %v9648_v10, %v3093_v8  ;;  %v3090_v20 = vrot.slane %v9648_v10, %v8562_v39  ;;  %v3098_v22 = vrot.slane %v9648_v10, %v3097_v11 }
 0x40b   : > { %4452 = vmatpush1.bf16.msra.mxu1 %v7817_v13  ;;  %v8169_v13 = vmov 1966171168  }
 0x40c   : > { %4453 = vmatprep.subr.bf16.mxu1 %v7822_v14  ;;  %v3458_v14 = vunpack.c.l.s4 %v8169_v13 }
 0x40f   : > { %4454 = vmatpush1.bf16.msra.mxu1 %v7820_v18  ;;  %v3609_v18 = vld [vmem:[#allocation2 + $0x18] sm:$0xfe] }
 0x410   : > { %4505 = vmatprep.subr.bf16.mxu1 %v7825_v19  ;;  %v7862_v19 = vld [vmem:[%s10385_s9 + $0x3a8] ss:$16 sps:$4 sm:$0xff]   ;;  %v4629_v27 = vpack.c.bf16 %v3609_v18, %v3609_v18  ;;  %v7891_v18 = vld [vmem:[%s10386_s10 + $0x164] ss:$8 sps:$4 sm:$0xff]  }
 0x412   : > { %4456 = vmatmul.mubr.bf16.vlgmr.msra.gmra.mrb[32].mxu1 %v9505_v25 }
 0x413   : > { %4506 = vmatpush1.bf16.msra.mxu1 %v7823_v24  ;;  %4537 = vmatprep.mubr.bf16.mxu1 %v9372_v42  ;;  %v7953_v42 = vld [vmem:[%s10385_s9 + $0x120] ss:$16 sps:$4 sm:$0xff]   ;;  %v3459_v24 = vunpack.c.0.s8 %v3458_v14 }
 0x414   : > { %4507 = vmatprep.subr.bf16.mxu1 %v7828_v26  ;;  %4401 = vmatpush1.bf16.msra.mxu0 %v7953_v42 }
 0x415   : > { %4402 = vmatprep.subr.bf16.mxu0 %v7960_v46  ;;  %v9677_v46 = vsub.s32 %v3459_v24, %v8556_v37 }
 0x417   : > { %4508 = vmatpush1.bf16.msra.mxu1 %v7826_v28 }
 0x418   : > { %4509 = vmatprep.subr.bf16.mxu1 %v7831_v29  ;;  %4403 = vmatpush1.bf16.msra.mxu0 %v7958_v16 }
 0x419   : > { %4404 = vmatprep.subr.bf16.mxu0 %v7965_v49 }
 0x41b   : > { %4510 = vmatpush1.bf16.msra.mxu1 %v7829_v32 }
 0x41c   : > { %4511 = vmatprep.subr.bf16.mxu1 %v7834_v33  ;;  %4405 = vmatpush1.bf16.msra.mxu0 %v7963_v50 }
 0x41d   : > { %4406 = vmatprep.subr.bf16.mxu0 %v7970_v53 }
 0x41f   : > { %4512 = vmatpush1.bf16.msra.mxu1 %v7832_v36  ;;  %v7865_v36 = vld [vmem:[%s10385_s9 + $0x3c8] ss:$16 sps:$4 sm:$0xff]  }
 0x420   : > { %4513 = vmatprep.subr.bf16.mxu1 %v7837_v40  ;;  %4407 = vmatpush1.bf16.msra.mxu0 %v7968_v54 }
 0x421   : > { %4408 = vmatprep.subr.bf16.mxu0 %v7975_v57 }
 0x423   : > { %4514 = vmatpush1.bf16.msra.mxu1 %v7835_v43 }
 0x424   : > { %4515 = vmatprep.subr.bf16.mxu1 %v7840_v44  ;;  %4409 = vmatpush1.bf16.msra.mxu0 %v7973_v58  ;;  %v7870_v44 = vld [vmem:[%s10385_s9 + $0x3ec] ss:$16 sps:$4 sm:$0xff]  }
 0x425   : > { %4410 = vmatprep.subr.bf16.mxu0 %v7980_v61  ;;  %v7876_v61 = vld [vmem:[%s10386_s10 + $0x114] ss:$8 sps:$4 sm:$0xff]  }
 0x427   : > { %4516 = vmatpush1.bf16.msra.mxu1 %v7838_v47 }
 0x428   : > { %4517 = vmatprep.subr.bf16.mxu1 %v7843_v48  ;;  %4411 = vmatpush1.bf16.msra.mxu0 %v7978_v62  ;;  %v4654_v48 = vshll.u32 %v4629_v27, 16  ;;  %v7874_v62 = vld [vmem:[%s10386_s10 + $0x110] ss:$8 sps:$4 sm:$0xff]  }
 0x429   : > { %4412 = vmatprep.subr.bf16.mxu0 %v7985_v1  ;;  %v7880_v1 = vld [vmem:[%s10386_s10 + $0x130] ss:$8 sps:$4 sm:$0xff]  }
 0x42b   : > { %4518 = vmatpush1.bf16.msra.mxu1 %v7841_v51  ;;  %v7868_v51 = vld [vmem:[%s10385_s9 + $0x3e8] ss:$16 sps:$4 sm:$0xff]  }
 0x42c   : > { %4519 = vmatprep.subr.bf16.mxu1 %v7846_v52  ;;  %4413 = vmatpush1.bf16.msra.mxu0 %v7983_v2  ;;  %v7873_v52 = vld [vmem:[%s10386_s10 + $0x104] ss:$8 sps:$4 sm:$0xff]  }
 0x42d   : > { %4464 = vmatprep.subr.bf16.mxu0 %v7990_v5  ;;  %v7885_v2 = vld [vmem:[%s10386_s10 + $0x144] ss:$8 sps:$4 sm:$0xff]   ;;  %v7883_v5 = vld [vmem:[%s10386_s10 + $0x140] ss:$8 sps:$4 sm:$0xff]  }
 0x42f   : > { %4520 = vmatpush1.bf16.msra.mxu1 %v7844_v55  ;;  %v4656_v55 = vrot.slane %v4654_v48, 1 }
 0x430   : > { %4521 = vmatprep.subr.bf16.mxu1 %v7849_v56 }
 0x433   : > { %4522 = vmatpush1.bf16.msra.mxu1 %v7847_v59  ;;  %v7871_v59 = vld [vmem:[%s10386_s10 + $0x100] ss:$8 sps:$4 sm:$0xff]  }
 0x434   : > { %4523 = vmatprep.subr.bf16.mxu1 %v7852_v60  ;;  %v4652_v60 = vshrl.u32 %v4629_v27, 16 }
 0x436   : > { %v4657_v21 = vor.u32 %v4656_v55, %v4652_v60  ;;  %v7907_v55 = vld [vmem:[%s10386_s10 + $0x1b0] ss:$8 sps:$4 sm:$0xff]   ;;  %v7921_v60 = vld [vmem:[%s10386_s10 + $0x1d4] ss:$8 sps:$4 sm:$0xff]  }
 0x437   : > { %4524 = vmatpush1.bf16.msra.mxu1 %v7850_v63  ;;  %v7879_v63 = vld [vmem:[%s10386_s10 + $0x124] ss:$8 sps:$4 sm:$0xff]  }
 0x438   : > { %4525 = vmatprep.subr.bf16.mxu1 %v7855_v0  ;;  %v7877_v0 = vld [vmem:[%s10386_s10 + $0x120] ss:$8 sps:$4 sm:$0xff]  }
 0x43b   : > { %4526 = vmatpush1.bf16.msra.mxu1 %v7853_v3  ;;  %v3101_v3 = vsub.s32 4, %v8556_v37 }
 0x43c   : > { %4527 = vmatprep.subr.bf16.mxu1 %v7858_v4  ;;  %v3109_v4 = vsub.s32 6, %v8556_v37 }
 0x43e   : > { %v3110_v13 = vrot.slane %v9648_v10, %v3109_v4  ;;  %v7927_v4 = vld [vmem:[%s10386_s10 + $0x1e4] ss:$8 sps:$4 sm:$0xff]  }
 0x43f   : > { %4528 = vmatpush1.bf16.msra.mxu1 %v7856_v6  ;;  %v3105_v6 = vsub.s32 5, %v8556_v37 }
 0x440   : > { %4529 = vmatprep.subr.bf16.mxu1 %v7861_v7  ;;  %v3113_v7 = vsub.s32 7, %v8556_v37  ;;  %v7971_v37 = vld [vmem:[%s10388_s12 + $0x1b0] sm:$0xff]  }
 0x441   : > { %v3106_v14 = vrot.slane %v9648_v10, %v3105_v6 }
 0x443   : > { %4530 = vmatpush1.bf16.msra.mxu1 %v7859_v9  ;;  %v7888_v9 = vld [vmem:[%s10386_s10 + $0x154] ss:$8 sps:$4 sm:$0xff]  }
 0x444   : > { %4531 = vmatprep.subr.bf16.mxu1 %v7864_v12  ;;  %v3102_v12 = vrot.slane %v9648_v10, %v3101_v3 }
 0x445   : > { %v3187_v26 = vpop.f32.mrb[16].mxu1  ;;  %v3228_v45 = vpop.f32.mrb[16].mxu0 }
 0x446   : > { %v3188_v28 = vadd.f32 %v3187_v26, %v3086_v15  ;;  %v3229_v29 = vadd.f32 %v3228_v45, %v3094_v17  ;;  %v3189_v30 = vpop.f32.mrb[17].mxu1  ;;  %v3230_v31 = vpop.f32.mrb[17].mxu0  ;;  %v3114_v15 = vrot.slane %v9648_v10, %v3113_v7  ;;  %v7886_v17 = vld [vmem:[%s10386_s10 + $0x150] ss:$8 sps:$4 sm:$0xff]   ;;  %v7889_v10 = vld [vmem:[%s10386_s10 + $0x160] ss:$8 sps:$4 sm:$0xff]  }
 0x447   : > { %v3190_v32 = vadd.f32 %v3189_v30, %v3090_v20  ;;  %v3231_v33 = vadd.f32 %v3230_v31, %v3098_v22  ;;  %4532 = vmatpush1.bf16.msra.mxu1 %v7862_v19  ;;  %v3191_v34 = vpop.f32.mrb[18].mxu1  ;;  %v3232_v35 = vpop.f32.mrb[18].mxu0 }
 0x448   : > { %v3440_v40 = vmax.f32 %v3188_v28, 0.0  ;;  %v3442_v41 = vmax.f32 %v3229_v29, 0.0  ;;  %v3192_v42 = vpop.f32.mrb[19].mxu1  ;;  %v3233_v43 = vpop.f32.mrb[19].mxu0  ;;  %4533 = vmatprep.subr.bf16.mxu1 %v7867_v23  ;;  %v7894_v34 = vld [vmem:[%s10386_s10 + $0x174] ss:$8 sps:$4 sm:$0xff]  }
 0x449   : > { %v3441_v16 = vmax.f32 %v3190_v32, 0.0  ;;  %v3443_v47 = vmax.f32 %v3231_v33, 0.0  ;;  %v7892_v42 = vld [vmem:[%s10386_s10 + $0x170] ss:$8 sps:$4 sm:$0xff]   ;;  %v7897_v43 = vld [vmem:[%s10386_s10 + $0x184] ss:$8 sps:$4 sm:$0xff]  }
 0x44b   : > { %v3456_v49 = vcombine.low %v3440_v40, %v3441_v16  ;;  %v3478_v50 = vcombine.low %v3442_v41, %v3443_v47  ;;  %4534 = vmatpush1.bf16.msra.mxu1 %v7865_v36 }
 0x44c   : > { %4535 = vmatprep.subr.bf16.mxu1 %v7870_v44 }
 0x44d   : > { %v3463_v53 = vrot.slane %v3456_v49, %v9677_v46  ;;  %v3485_v54 = vrot.slane %v3478_v50, %v9677_v46  ;;  %v7895_v49 = vld [vmem:[%s10386_s10 + $0x180] ss:$8 sps:$4 sm:$0xff]   ;;  %v7900_v50 = vld [vmem:[%s10386_s10 + $0x194] ss:$8 sps:$4 sm:$0xff]  }
 0x44f   : > { %v3470_v57 = vrot.slane %v3463_v53, %v9677_v46  ;;  %v3492_v58 = vrot.slane %v3485_v54, %v9677_v46  ;;  %4536 = vmatpush1.bf16.msra.mxu1 %v7868_v51  ;;  %v7898_v51 = vld [vmem:[%s10386_s10 + $0x190] ss:$8 sps:$4 sm:$0xff]   ;;  %v7901_v53 = vld [vmem:[%s10386_s10 + $0x1a0] ss:$8 sps:$4 sm:$0xff]   ;;  %v7909_v54 = vld [vmem:[%s10386_s10 + $0x1b4] ss:$8 sps:$4 sm:$0xff]  }
 0x450   : > { %5023 = vmatprep.subr.bf16.mxu1 %v7873_v52  ;;  %v7903_v52 = vld [vmem:[%s10386_s10 + $0x1a4] ss:$8 sps:$4 sm:$0xff]  }
 0x451   : > { %3474 = vst.msk [vmem:[#allocation2] ss:$8 sm:$0x3] %vm9688_vm2, %v3470_v57  ;;  %3495 = vst.msk [vmem:[#allocation2 + $0x1] ss:$8 sm:$0x3] %vm9688_vm2, %v3492_v58 }
 0x452   : > { %4538 = vmatmul.mubr.bf16.vlgmr.msra.gmra.mrb[36].mxu1 %v9505_v25  ;;  %v7882_v25 = vld [vmem:[%s10386_s10 + $0x134] ss:$8 sps:$4 sm:$0xff]   ;;  %v7915_v57 = vld [vmem:[%s10386_s10 + $0x1c4] ss:$8 sps:$4 sm:$0xff]   ;;  %v7913_v58 = vld [vmem:[%s10386_s10 + $0x1c0] ss:$8 sps:$4 sm:$0xff]  }
 0x453   : > { %5024 = vmatpush1.bf16.msra.mxu1 %v7871_v59  ;;  %5055 = vmatprep.mubr.bf16.mxu1 %v4657_v21  ;;  %v9797_v59 = vld [vmem:[%s10384_s8 + $0x8] sm:$0x3f] }
 0x454   : > { %5025 = vmatprep.subr.bf16.mxu1 %v7876_v61  ;;  %v3608_v61 = vld [vmem:[#allocation2 + $0x10] sm:$0xfe]  ;;  %v3118_v21 = vrot.slane %v9797_v59, %v8559_v38 }
 0x457   : > { %5026 = vmatpush1.bf16.msra.mxu1 %v7874_v62  ;;  %v3126_v62 = vrot.slane %v9797_v59, %v3093_v8 }
 0x458   : > { %5027 = vmatprep.subr.bf16.mxu1 %v7879_v63  ;;  %v5155_v63 = vld [vmem:[#allocation4 + $0x18] sm:$0xfe] }
 0x459   : > { %v5224_v7 = vpack.c.bf16 %v5155_v63, %v5155_v63 }
 0x45b   : > { %5028 = vmatpush1.bf16.msra.mxu1 %v7877_v0  ;;  %v3122_v0 = vrot.slane %v9797_v59, %v8562_v39 }
 0x45c   : > { %5029 = vmatprep.subr.bf16.mxu1 %v7882_v25  ;;  %v3130_v25 = vrot.slane %v9797_v59, %v3097_v11 }
 0x45f   : > { %5030 = vmatpush1.bf16.msra.mxu1 %v7880_v1  ;;  %v7919_v1 = vld [vmem:[%s10386_s10 + $0x1d0] ss:$8 sps:$4 sm:$0xff]  }
 0x460   : > { %5031 = vmatprep.subr.bf16.mxu1 %v7885_v2  ;;  %v4628_v2 = vpack.c.bf16 %v3608_v61, %v3608_v61  ;;  %v3138_v61 = vrot.slane %v9797_v59, %v3105_v6 }
 0x463   : > { %5032 = vmatpush1.bf16.msra.mxu1 %v7883_v5 }
 0x464   : > { %5033 = vmatprep.subr.bf16.mxu1 %v7888_v9 }
 0x465   : > { %v3269_v19 = vpop.f32.mrb[20].mxu1  ;;  %v3310_v20 = vpop.f32.mrb[20].mxu0 }
 0x466   : > { %v3270_v22 = vadd.f32 %v3269_v19, %v3102_v12  ;;  %v3311_v23 = vadd.f32 %v3310_v20, %v3110_v13  ;;  %v3271_v24 = vpop.f32.mrb[21].mxu1  ;;  %v3312_v26 = vpop.f32.mrb[21].mxu0  ;;  %v7925_v19 = vld [vmem:[%s10386_s10 + $0x1e0] ss:$8 sps:$4 sm:$0xff]   ;;  %v4647_v20 = vshll.u32 %v4628_v2, 16 }
 0x467   : > { %v3272_v45 = vadd.f32 %v3271_v24, %v3106_v14  ;;  %v3313_v27 = vadd.f32 %v3312_v26, %v3114_v15  ;;  %v3273_v28 = vpop.f32.mrb[22].mxu1  ;;  %v3314_v29 = vpop.f32.mrb[22].mxu0  ;;  %5034 = vmatpush1.bf16.msra.mxu1 %v7886_v17 }
 0x468   : > { %v3444_v30 = vmax.f32 %v3270_v22, 0.0  ;;  %v3446_v31 = vmax.f32 %v3311_v23, 0.0  ;;  %v3274_v32 = vpop.f32.mrb[23].mxu1  ;;  %v3315_v33 = vpop.f32.mrb[23].mxu0  ;;  %5035 = vmatprep.subr.bf16.mxu1 %v7891_v18  ;;  %v5249_v29 = vshll.u32 %v5224_v7, 16 }
 0x469   : > { %v3445_v35 = vmax.f32 %v3272_v45, 0.0  ;;  %v3447_v36 = vmax.f32 %v3313_v27, 0.0  ;;  %v7933_v45 = vld [vmem:[%s10386_s10 + $0x1f4] ss:$8 sps:$4 sm:$0xff]   ;;  %v4649_v32 = vrot.slane %v4647_v20, 1  ;;  %v7937_v33 = vld [vmem:[%s10388_s12 + $0x1c0] sm:$0xff]  }
 0x46a   : > { %v7982_v20 = vld [vmem:[%s10388_s12 + $0xc8] sm:$0xff]  }
 0x46b   : > { %v3499_v40 = vcombine.low %v3444_v30, %v3445_v35  ;;  %v3520_v41 = vcombine.low %v3446_v31, %v3447_v36  ;;  %5036 = vmatpush1.bf16.msra.mxu1 %v7889_v10  ;;  %v7931_v31 = vld [vmem:[%s10386_s10 + $0x1f0] ss:$8 sps:$4 sm:$0xff]   ;;  %v5251_v36 = vrot.slane %v5249_v29, 1 }
 0x46c   : > { %5037 = vmatprep.subr.bf16.mxu1 %v7894_v34 }
 0x46d   : > { %v3506_v44 = vrot.slane %v3499_v40, %v9677_v46  ;;  %v3527_v16 = vrot.slane %v3520_v41, %v9677_v46  ;;  %v4645_v40 = vshrl.u32 %v4628_v2, 16 }
 0x46f   : > { %v3513_v47 = vrot.slane %v3506_v44, %v9677_v46  ;;  %v3534_v48 = vrot.slane %v3527_v16, %v9677_v46  ;;  %5038 = vmatpush1.bf16.msra.mxu1 %v7892_v42  ;;  %v5247_v44 = vshrl.u32 %v5224_v7, 16  ;;  %v4650_v16 = vor.u32 %v4649_v32, %v4645_v40  ;;  %v7993_v32 = vld [vmem:[%s10385_s9 + $0x28] ss:$16 sps:$4 sm:$0xff]   ;;  %v8005_v40 = vld [vmem:[%s10385_s9 + $0x6c] ss:$16 sps:$4 sm:$0xff]  }
 0x470   : > { %5039 = vmatprep.subr.bf16.mxu1 %v7897_v43  ;;  %v7941_v43 = vld [vmem:[%s10388_s12 + $0x180] sm:$0xff]  }
 0x471   : > { %3516 = vst.msk [vmem:[#allocation2 + $0x2] ss:$8 sm:$0x3] %vm9688_vm2, %v3513_v47  ;;  %3537 = vst.msk [vmem:[#allocation2 + $0x3] ss:$8 sm:$0x3] %vm9688_vm2, %v3534_v48  ;;  %v5252_v48 = vor.u32 %v5251_v36, %v5247_v44 }
 0x472   : > { %v7942_v47 = vld [vmem:[%s10388_s12 + $0x1c8] sm:$0xff]  }
 0x473   : > { %5040 = vmatpush1.bf16.msra.mxu1 %v7895_v49  ;;  %v7946_v49 = vld [vmem:[%s10388_s12 + $0x188] sm:$0xff]  }
 0x474   : > { %5041 = vmatprep.subr.bf16.mxu1 %v7900_v50  ;;  %v7947_v50 = vld [vmem:[%s10388_s12 + $0x1d0] sm:$0xff]   ;;  %v7998_v36 = vld [vmem:[%s10385_s9 + $0x48] ss:$16 sps:$4 sm:$0xff]  }
 0x475   : > { %v8003_v44 = vld [vmem:[%s10385_s9 + $0x68] ss:$16 sps:$4 sm:$0xff]  }
 0x477   : > { %5042 = vmatpush1.bf16.msra.mxu1 %v7898_v51  ;;  %v7951_v51 = vld [vmem:[%s10388_s12 + $0x190] sm:$0xff]  }
 0x478   : > { %5043 = vmatprep.subr.bf16.mxu1 %v7903_v52  ;;  %v7952_v52 = vld [vmem:[%s10388_s12 + $0x1d8] sm:$0xff]  }
 0x47b   : > { %5044 = vmatpush1.bf16.msra.mxu1 %v7901_v53  ;;  %v7956_v53 = vld [vmem:[%s10388_s12 + $0x198] sm:$0xff]  }
 0x47c   : > { %5045 = vmatprep.subr.bf16.mxu1 %v7909_v54  ;;  %v7957_v54 = vld [vmem:[%s10388_s12 + $0x1e0] sm:$0xff]  }
 0x47f   : > { %5046 = vmatpush1.bf16.msra.mxu1 %v7907_v55  ;;  %v7961_v55 = vld [vmem:[%s10388_s12 + $0x1a0] sm:$0xff]  }
 0x480   : > { %5047 = vmatprep.subr.bf16.mxu1 %v7915_v57  ;;  %v7962_v57 = vld [vmem:[%s10388_s12 + $0x1e8] sm:$0xff]  }
 0x483   : > { %5048 = vmatpush1.bf16.msra.mxu1 %v7913_v58  ;;  %v5154_v58 = vld [vmem:[#allocation4 + $0x10] sm:$0xfe] }
 0x484   : > { %5049 = vmatprep.subr.bf16.mxu1 %v7921_v60  ;;  %v3134_v60 = vrot.slane %v9797_v59, %v3101_v3  ;;  %v5223_v63 = vpack.c.bf16 %v5154_v58, %v5154_v58 }
 0x485   : > { %v3351_v8 = vpop.f32.mrb[24].mxu1  ;;  %v3392_v5 = vpop.f32.mrb[24].mxu0 }
 0x486   : > { %v3352_v9 = vadd.f32 %v3351_v8, %v3118_v21  ;;  %v3393_v12 = vadd.f32 %v3392_v5, %v3126_v62  ;;  %v3353_v13 = vpop.f32.mrb[25].mxu1  ;;  %v3394_v14 = vpop.f32.mrb[25].mxu0  ;;  %v7966_v21 = vld [vmem:[%s10388_s12 + $0x1a8] sm:$0xff]   ;;  %v7967_v62 = vld [vmem:[%s10388_s12 + $0x1f0] sm:$0xff]   ;;  %v5242_v8 = vshll.u32 %v5223_v63, 16 }
 0x487   : > { %v3354_v15 = vadd.f32 %v3353_v13, %v3122_v0  ;;  %v3395_v17 = vadd.f32 %v3394_v14, %v3130_v25  ;;  %v3355_v11 = vpop.f32.mrb[26].mxu1  ;;  %v3396_v18 = vpop.f32.mrb[26].mxu0  ;;  %5050 = vmatpush1.bf16.msra.mxu1 %v7919_v1  ;;  %v7977_v13 = vld [vmem:[%s10388_s12 + $0xc0] sm:$0xff]  }
 0x488   : > { %v3448_v22 = vmax.f32 %v3352_v9, 0.0  ;;  %v3450_v23 = vmax.f32 %v3393_v12, 0.0  ;;  %v3356_v24 = vpop.f32.mrb[27].mxu1  ;;  %v3397_v26 = vpop.f32.mrb[27].mxu0  ;;  %5051 = vmatprep.subr.bf16.mxu1 %v7927_v4  ;;  %v7972_v4 = vld [vmem:[%s10388_s12 + $0x1f8] sm:$0xff]   ;;  %v5244_v12 = vrot.slane %v5242_v8, 1 }
 0x489   : > { %v3449_v27 = vmax.f32 %v3354_v15, 0.0  ;;  %v3451_v28 = vmax.f32 %v3395_v17, 0.0  ;;  %v7976_v9 = vld [vmem:[%s10388_s12 + $0x1b8] sm:$0xff]   ;;  %v5240_v15 = vshrl.u32 %v5223_v63, 16  ;;  %v7981_v18 = vld [vmem:[%s10388_s12 + $0x80] sm:$0xff]   ;;  %v7991_v24 = vld [vmem:[%s10388_s12 + $0x90] sm:$0xff]  }
 0x48a   : > { %v5083_v17 = vld [vmem:[#allocation3 + $0x18] sm:$0x7f]  ;;  %v8022_v63 = vld [vmem:[%s10388_s12 + $0x2c8] sm:$0xff]  }
 0x48b   : > { %v3541_v10 = vcombine.low %v3448_v22, %v3449_v27  ;;  %v3562_v30 = vcombine.low %v3450_v23, %v3451_v28  ;;  %5052 = vmatpush1.bf16.msra.mxu1 %v7925_v19  ;;  %v5245_v19 = vor.u32 %v5244_v12, %v5240_v15  ;;  %v5151_v22 = vpack.c.bf16 %v5083_v17, %v5083_v17  ;;  %v7987_v23 = vld [vmem:[%s10388_s12 + $0xd0] sm:$0xff]   ;;  %v7988_v28 = vld [vmem:[%s10385_s9 + $0x8] ss:$16 sps:$4 sm:$0xff]  }
 0x48c   : > { %5053 = vmatprep.subr.bf16.mxu1 %v7933_v45  ;;  %v7992_v45 = vld [vmem:[%s10388_s12 + $0xd8] sm:$0xff]   ;;  %v8042_v15 = vld [vmem:[%s10388_s12 + $0x2e8] sm:$0xff]  }
 0x48d   : > { %v3548_v34 = vrot.slane %v3541_v10, %v9677_v46  ;;  %v3569_v35 = vrot.slane %v3562_v30, %v9677_v46  ;;  %v7995_v10 = vld [vmem:[%s10385_s9 + $0x2c] ss:$16 sps:$4 sm:$0xff]   ;;  %v8028_v8 = vld [vmem:[%s10385_s9 + $0x108] ss:$16 sps:$4 sm:$0xff]  }
 0x48e   : > { %v7996_v30 = vld [vmem:[%s10388_s12 + $0x98] sm:$0xff]  }
 0x48f   : > { %v3555_v41 = vrot.slane %v3548_v34, %v9677_v46  ;;  %v3576_v42 = vrot.slane %v3569_v35, %v9677_v46  ;;  %5054 = vmatpush1.bf16.msra.mxu1 %v7931_v31  ;;  %v7997_v31 = vld [vmem:[%s10388_s12 + $0xe0] sm:$0xff]   ;;  %v8002_v35 = vld [vmem:[%s10388_s12 + $0xe8] sm:$0xff]  }
 0x490   : > { %7131 = vmatprep.subr.bf16.mxu1 %v7937_v33  ;;  %v8000_v33 = vld [vmem:[%s10385_s9 + $0x4c] ss:$16 sps:$4 sm:$0xff]   ;;  %v8001_v34 = vld [vmem:[%s10388_s12 + $0xa0] sm:$0xff]   ;;  %v8033_v12 = vld [vmem:[%s10385_s9 + $0x128] ss:$16 sps:$4 sm:$0xff]  }
 0x491   : > { %3558 = vst.msk [vmem:[#allocation2 + $0x4] ss:$8 sm:$0x3] %vm9688_vm2, %v3555_v41  ;;  %3579 = vst.msk [vmem:[#allocation2 + $0x5] ss:$8 sm:$0x3] %vm9688_vm2, %v3576_v42 }
 0x492   : > { %5056 = vmatmul.mubr.bf16.vlgmr.msra.gmra.mrb[40].mxu1 %v4650_v16  ;;  %v5804_v41 = vld [vmem:[#allocation3 + $0x18] sm:$0xfe]  ;;  %v8006_v42 = vld [vmem:[%s10388_s12 + $0xa8] sm:$0xff]  }
 0x493   : > { %7132 = vmatpush3.bf16.msra.mxu1 %v7941_v43  ;;  %5521 = vmatprep.mubr.bf16.mxu1 %v5252_v48  ;;  %v8007_v43 = vld [vmem:[%s10388_s12 + $0xf0] sm:$0xff]   ;;  %v5873_v16 = vpack.c.bf16 %v5804_v41, %v5804_v41  ;;  %v8038_v17 = vld [vmem:[%s10385_s9 + $0x148] ss:$16 sps:$4 sm:$0xff]  }
 0x494   : > { %7133 = vmatprep.subr.bf16.mxu1 %v7942_v47  ;;  %v8010_v47 = vld [vmem:[%s10385_s9 + $0x8c] ss:$16 sps:$4 sm:$0xff]   ;;  %v8011_v48 = vld [vmem:[%s10388_s12 + $0xb0] sm:$0xff]  }
 0x497   : > { %7134 = vmatpush3.bf16.msra.mxu1 %v7946_v49  ;;  %v8012_v49 = vld [vmem:[%s10388_s12 + $0xf8] sm:$0xff]  }
 0x498   : > { %7135 = vmatprep.subr.bf16.mxu1 %v7947_v50  ;;  %v8008_v50 = vld [vmem:[%s10385_s9 + $0x88] ss:$16 sps:$4 sm:$0xff]  }
 0x49b   : > { %7136 = vmatpush3.bf16.msra.mxu1 %v7951_v51  ;;  %v5898_v51 = vshll.u32 %v5873_v16, 16 }
 0x49c   : > { %7137 = vmatprep.subr.bf16.mxu1 %v7952_v52  ;;  %v8015_v52 = vld [vmem:[%s10385_s9 + $0xac] ss:$16 sps:$4 sm:$0xff]  }
 0x49d   : > { %v5900_v58 = vrot.slane %v5898_v51, 1 }
 0x49f   : > { %7138 = vmatpush3.bf16.msra.mxu1 %v7956_v53  ;;  %v8016_v53 = vld [vmem:[%s10388_s12 + $0xb8] sm:$0xff]  }
 0x4a0   : > { %7139 = vmatprep.subr.bf16.mxu1 %v7957_v54  ;;  %v8017_v54 = vld [vmem:[%s10388_s12 + $0x2c0] sm:$0xff]  }
 0x4a3   : > { %7140 = vmatpush3.bf16.msra.mxu1 %v7961_v55  ;;  %v8013_v55 = vld [vmem:[%s10385_s9 + $0xa8] ss:$16 sps:$4 sm:$0xff]  }
 0x4a4   : > { %7141 = vmatprep.subr.bf16.mxu1 %v7962_v57  ;;  %v5082_v57 = vld [vmem:[#allocation3 + $0x10] sm:$0x7f] }
 0x4a5   : > { %v3433_v0 = vpop.f32.mrb[28].mxu1 }
 0x4a6   : > { %v3434_v25 = vadd.f32 %v3433_v0, %v3134_v60  ;;  %v3435_v1 = vpop.f32.mrb[29].mxu1  ;;  %v8020_v60 = vld [vmem:[%s10385_s9 + $0xcc] ss:$16 sps:$4 sm:$0xff]   ;;  %v8018_v0 = vld [vmem:[%s10385_s9 + $0xc8] ss:$16 sps:$4 sm:$0xff]  }
 0x4a7   : > { %v3436_v2 = vadd.f32 %v3435_v1, %v3138_v61  ;;  %v3437_v3 = vpop.f32.mrb[30].mxu1  ;;  %7142 = vmatpush3.bf16.msra.mxu1 %v7966_v21  ;;  %v8021_v61 = vld [vmem:[%s10388_s12 + $0x280] sm:$0xff]   ;;  %v5896_v21 = vshrl.u32 %v5873_v16, 16  ;;  %v8025_v1 = vld [vmem:[%s10385_s9 + $0xec] ss:$16 sps:$4 sm:$0xff]  }
 0x4a8   : > { %v3452_v6 = vmax.f32 %v3434_v25, 0.0  ;;  %v3438_v59 = vpop.f32.mrb[31].mxu1  ;;  %7143 = vmatprep.subr.bf16.mxu1 %v7967_v62  ;;  %v5150_v62 = vpack.c.bf16 %v5082_v57, %v5082_v57  ;;  %v8027_v3 = vld [vmem:[%s10388_s12 + $0x2d0] sm:$0xff]   ;;  %v8069_v57 = vld [vmem:[%s10386_s10 + $0x20] ss:$8 sps:$4 sm:$0xff]  }
 0x4a9   : > { %v3453_v5 = vmax.f32 %v3436_v2, 0.0  ;;  %v5901_v25 = vor.u32 %v5900_v58, %v5896_v21  ;;  %v8026_v2 = vld [vmem:[%s10388_s12 + $0x288] sm:$0xff]   ;;  %v8031_v59 = vld [vmem:[%s10388_s12 + $0x290] sm:$0xff]  }
 0x4aa   : > { %v8072_v58 = vld [vmem:[%s10386_s10 + $0x30] ss:$8 sps:$4 sm:$0xff]   ;;  %v8080_v21 = vld [vmem:[%s10386_s10 + $0x54] ss:$8 sps:$4 sm:$0xff]  }
 0x4ab   : > { %v3583_v7 = vcombine.low %v3452_v6, %v3453_v5  ;;  %7144 = vmatpush3.bf16.msra.mxu1 %v7971_v37  ;;  %v8023_v37 = vld [vmem:[%s10385_s9 + $0xe8] ss:$16 sps:$4 sm:$0xff]   ;;  %v8030_v6 = vld [vmem:[%s10385_s9 + $0x10c] ss:$16 sps:$4 sm:$0xff]  }
 0x4ac   : > { %7145 = vmatprep.subr.bf16.mxu1 %v7972_v4  ;;  %v8032_v4 = vld [vmem:[%s10388_s12 + $0x2d8] sm:$0xff]  }
 0x4ad   : > { %v3590_v14 = vrot.slane %v3583_v7, %v9677_v46  ;;  %v8035_v5 = vld [vmem:[%s10385_s9 + $0x12c] ss:$16 sps:$4 sm:$0xff]  }
 0x4ae   : > { %v8036_v7 = vld [vmem:[%s10388_s12 + $0x298] sm:$0xff]  }
 0x4af   : > { %v3597_v11 = vrot.slane %v3590_v14, %v9677_v46  ;;  %7146 = vmatpush3.bf16.msra.mxu1 %v7976_v9  ;;  %v7986_v46 = vld [vmem:[%s10388_s12 + $0x88] sm:$0xff]   ;;  %v8037_v9 = vld [vmem:[%s10388_s12 + $0x2e0] sm:$0xff]  }
 0x4b0   : > { %7175 = vmatprep.subr.bf16.mxu1 %v7977_v13  ;;  %v8040_v13 = vld [vmem:[%s10385_s9 + $0x14c] ss:$16 sps:$4 sm:$0xff]   ;;  %v8041_v14 = vld [vmem:[%s10388_s12 + $0x2a0] sm:$0xff]  }
 0x4b1   : > { %3600 = vst.msk [vmem:[#allocation2 + $0x6] ss:$8 sm:$0x3] %vm9688_vm2, %v3597_v11  ;;  %v5803_v11 = vld [vmem:[#allocation3 + $0x10] sm:$0xfe] }
 0x4b2   : > { %5522 = vmatmul.mubr.bf16.vlgmr.msra.gmra.mrb[44].mxu1 %v5245_v19  ;;  %v8046_v19 = vld [vmem:[%s10388_s12 + $0x2a8] sm:$0xff]  }
 0x4b3   : > { %7176 = vmatpush3.bf16.msra.mxu1 %v7981_v18  ;;  %5793 = vmatprep.mubr.bf16.mxu1 %v5151_v22  ;;  %v8045_v18 = vld [vmem:[%s10385_s9 + $0x16c] ss:$16 sps:$4 sm:$0xff]   ;;  %v5872_v22 = vpack.c.bf16 %v5803_v11, %v5803_v11 }
 0x4b4   : > { %7177 = vmatprep.subr.bf16.mxu1 %v7982_v20  ;;  %v8047_v20 = vld [vmem:[%s10388_s12 + $0x2f0] sm:$0xff]  }
 0x4b7   : > { %7178 = vmatpush3.bf16.msra.mxu1 %v7986_v46 }
 0x4b8   : > { %7179 = vmatprep.subr.bf16.mxu1 %v7987_v23  ;;  %v3603_v56 = vld [vmem:[#allocation2 + $0x8] sm:$0x7f]  ;;  %v3602_v26 = vld [vmem:[#allocation2] sm:$0x7f] }
 0x4b9   : > { %v3739_v27 = vpack.c.bf16 %v3603_v56, %v3603_v56  ;;  %v9917_v29 = vpack.c.bf16 %v3602_v26, %v3602_v26  ;;  %v8043_v23 = vld [vmem:[%s10385_s9 + $0x168] ss:$16 sps:$4 sm:$0xff]   ;;  %v8050_v56 = vld [vmem:[%s10385_s9 + $0x18c] ss:$16 sps:$4 sm:$0xff]   ;;  %v3606_v11 = vld [vmem:[#allocation2] sm:$0xfe] }
 0x4bb   : > { %4414 = vmatprep.mubr.bf16.mxu0 %v3739_v27  ;;  %7180 = vmatpush3.bf16.msra.mxu1 %v7991_v24 }
 0x4bc   : > { %4415 = vmatmul.mubr.bf16.vlgmr.msra.gmra.mrb[28].mxu0 %v9917_v29  ;;  %7181 = vmatprep.subr.bf16.mxu1 %v7992_v45  ;;  %v8051_v45 = vld [vmem:[%s10388_s12 + $0x2b0] sm:$0xff]  }
 0x4bd   : > { %4465 = vmatpush1.bf16.msra.mxu0 %v7988_v28  ;;  %4496 = vmatprep.mubr.bf16.mxu0 %v3739_v27  ;;  %v8052_v28 = vld [vmem:[%s10388_s12 + $0x2f8] sm:$0xff]  }
 0x4be   : > { %4466 = vmatprep.subr.bf16.mxu0 %v7995_v10  ;;  %v5891_v10 = vshll.u32 %v5872_v22, 16 }
 0x4bf   : > { %7182 = vmatpush3.bf16.msra.mxu1 %v7996_v30  ;;  %v8048_v30 = vld [vmem:[%s10385_s9 + $0x188] ss:$16 sps:$4 sm:$0xff]  }
 0x4c0   : > { %7183 = vmatprep.subr.bf16.mxu1 %v7997_v31  ;;  %v8055_v31 = vld [vmem:[%s10385_s9 + $0x1ac] ss:$16 sps:$4 sm:$0xff]  }
 0x4c1   : > { %4467 = vmatpush1.bf16.msra.mxu0 %v7993_v32  ;;  %v8056_v32 = vld [vmem:[%s10388_s12 + $0x2b8] sm:$0xff]  }
 0x4c2   : > { %4468 = vmatprep.subr.bf16.mxu0 %v8000_v33  ;;  %v5893_v33 = vrot.slane %v5891_v10, 1  ;;  %v8111_v10 = vld [vmem:[%s10388_s12 + $0x140] sm:$0xff]  }
 0x4c3   : > { %7184 = vmatpush3.bf16.msra.mxu1 %v8001_v34  ;;  %v3607_v34 = vld [vmem:[#allocation2 + $0x8] sm:$0xfe] }
 0x4c4   : > { %7185 = vmatprep.subr.bf16.mxu1 %v8002_v35  ;;  %v8053_v35 = vld [vmem:[%s10385_s9 + $0x1a8] ss:$16 sps:$4 sm:$0xff]   ;;  %v4627_v41 = vpack.c.bf16 %v3607_v34, %v3607_v34 }
 0x4c5   : > { %4469 = vmatpush1.bf16.msra.mxu0 %v7998_v36  ;;  %v5889_v36 = vshrl.u32 %v5872_v22, 16  ;;  %v8105_v22 = vld [vmem:[%s10386_s10 + $0xe0] ss:$8 sps:$4 sm:$0xff]  }
 0x4c6   : > { %4470 = vmatprep.subr.bf16.mxu0 %v8005_v40  ;;  %v8059_v40 = vld [vmem:[%s10385_s9 + $0x1cc] ss:$16 sps:$4 sm:$0xff]   ;;  %v4640_v16 = vshll.u32 %v4627_v41, 16  ;;  %v4638_v51 = vshrl.u32 %v4627_v41, 16 }
 0x4c7   : > { %7186 = vmatpush3.bf16.msra.mxu1 %v8006_v42  ;;  %v5894_v42 = vor.u32 %v5893_v33, %v5889_v36 }
 0x4c8   : > { %7187 = vmatprep.subr.bf16.mxu1 %v8007_v43  ;;  %v8057_v43 = vld [vmem:[%s10385_s9 + $0x1c8] ss:$16 sps:$4 sm:$0xff]  }
 0x4c9   : > { %4471 = vmatpush1.bf16.msra.mxu0 %v8003_v44  ;;  %v8062_v44 = vld [vmem:[%s10385_s9 + $0x1ec] ss:$16 sps:$4 sm:$0xff]  }
 0x4ca   : > { %4472 = vmatprep.subr.bf16.mxu0 %v8010_v47  ;;  %v8060_v47 = vld [vmem:[%s10385_s9 + $0x1e8] ss:$16 sps:$4 sm:$0xff]  }
 0x4cb   : > { %7188 = vmatpush3.bf16.msra.mxu1 %v8011_v48  ;;  %v8065_v48 = vld [vmem:[%s10386_s10 + $0x4] ss:$8 sps:$4 sm:$0xff]  }
 0x4cc   : > { %7189 = vmatprep.subr.bf16.mxu1 %v8012_v49  ;;  %v4642_v49 = vrot.slane %v4640_v16, 1  ;;  %v8113_v16 = vld [vmem:[%s10388_s12 + $0x148] sm:$0xff]  }
 0x4cd   : > { %4473 = vmatpush1.bf16.msra.mxu0 %v8008_v50  ;;  %v8063_v50 = vld [vmem:[%s10386_s10] ss:$8 sps:$4 sm:$0xff]  }
 0x4ce   : > { %4474 = vmatprep.subr.bf16.mxu0 %v8015_v52  ;;  %v8068_v52 = vld [vmem:[%s10386_s10 + $0x14] ss:$8 sps:$4 sm:$0xff]  }
 0x4cf   : > { %7190 = vmatpush3.bf16.msra.mxu1 %v8016_v53  ;;  %v4643_v53 = vor.u32 %v4642_v49, %v4638_v51  ;;  %v8114_v49 = vld [vmem:[%s10388_s12 + $0x108] sm:$0xff]  }
 0x4d0   : > { %7219 = vmatprep.subr.bf16.mxu1 %v8017_v54  ;;  %v8066_v54 = vld [vmem:[%s10386_s10 + $0x10] ss:$8 sps:$4 sm:$0xff]  }
 0x4d1   : > { %4475 = vmatpush1.bf16.msra.mxu0 %v8013_v55  ;;  %v8071_v55 = vld [vmem:[%s10386_s10 + $0x24] ss:$8 sps:$4 sm:$0xff]  }
 0x4d2   : > { %5794 = vmatmul.mubr.bf16.vlgmr.msra.gmra.mrb[48].mxu1 %v5150_v62  ;;  %4476 = vmatprep.subr.bf16.mxu0 %v8020_v60  ;;  %v8077_v60 = vld [vmem:[%s10386_s10 + $0x44] ss:$8 sps:$4 sm:$0xff]   ;;  %v8078_v62 = vld [vmem:[%s10386_s10 + $0x50] ss:$8 sps:$4 sm:$0xff]  }
 0x4d3   : > { %7220 = vmatpush3.bf16.msra.mxu1 %v8021_v61  ;;  %6170 = vmatprep.mubr.bf16.mxu1 %v5901_v25  ;;  %v8075_v61 = vld [vmem:[%s10386_s10 + $0x40] ss:$8 sps:$4 sm:$0xff]   ;;  %v8086_v25 = vld [vmem:[%s10386_s10 + $0x74] ss:$8 sps:$4 sm:$0xff]  }
 0x4d4   : > { %7221 = vmatprep.subr.bf16.mxu1 %v8022_v63  ;;  %v8083_v63 = vld [vmem:[%s10386_s10 + $0x64] ss:$8 sps:$4 sm:$0xff]  }
 0x4d5   : > { %4477 = vmatpush1.bf16.msra.mxu0 %v8018_v0  ;;  %v8081_v0 = vld [vmem:[%s10386_s10 + $0x60] ss:$8 sps:$4 sm:$0xff]  }
 0x4d6   : > { %4478 = vmatprep.subr.bf16.mxu0 %v8025_v1  ;;  %v8084_v1 = vld [vmem:[%s10386_s10 + $0x70] ss:$8 sps:$4 sm:$0xff]  }
 0x4d7   : > { %7222 = vmatpush3.bf16.msra.mxu1 %v8026_v2  ;;  %v8089_v2 = vld [vmem:[%s10386_s10 + $0x84] ss:$8 sps:$4 sm:$0xff]  }
 0x4d8   : > { %7223 = vmatprep.subr.bf16.mxu1 %v8027_v3  ;;  %v8087_v3 = vld [vmem:[%s10386_s10 + $0x80] ss:$8 sps:$4 sm:$0xff]  }
 0x4d9   : > { %4479 = vmatpush1.bf16.msra.mxu0 %v8023_v37  ;;  %v8092_v37 = vld [vmem:[%s10386_s10 + $0x94] ss:$8 sps:$4 sm:$0xff]  }
 0x4da   : > { %4480 = vmatprep.subr.bf16.mxu0 %v8030_v6  ;;  %v8090_v6 = vld [vmem:[%s10386_s10 + $0x90] ss:$8 sps:$4 sm:$0xff]  }
 0x4db   : > { %7224 = vmatpush3.bf16.msra.mxu1 %v8031_v59  ;;  %v8095_v59 = vld [vmem:[%s10386_s10 + $0xa4] ss:$8 sps:$4 sm:$0xff]  }
 0x4dc   : > { %7225 = vmatprep.subr.bf16.mxu1 %v8032_v4  ;;  %v8093_v4 = vld [vmem:[%s10386_s10 + $0xa0] ss:$8 sps:$4 sm:$0xff]  }
 0x4dd   : > { %4481 = vmatpush1.bf16.msra.mxu0 %v8028_v8  ;;  %v8098_v8 = vld [vmem:[%s10386_s10 + $0xb4] ss:$8 sps:$4 sm:$0xff]  }
 0x4de   : > { %4482 = vmatprep.subr.bf16.mxu0 %v8035_v5 }
 0x4df   : > { %7226 = vmatpush3.bf16.msra.mxu1 %v8036_v7  ;;  %v8096_v7 = vld [vmem:[%s10386_s10 + $0xb0] ss:$8 sps:$4 sm:$0xff]  }
 0x4e0   : > { %7227 = vmatprep.subr.bf16.mxu1 %v8037_v9 }
 0x4e1   : > { %4483 = vmatpush1.bf16.msra.mxu0 %v8033_v12  ;;  %v8101_v12 = vld [vmem:[%s10386_s10 + $0xc4] ss:$8 sps:$4 sm:$0xff]  }
 0x4e2   : > { %4484 = vmatprep.subr.bf16.mxu0 %v8040_v13 }
 0x4e3   : > { %7228 = vmatpush3.bf16.msra.mxu1 %v8041_v14 }
 0x4e4   : > { %7229 = vmatprep.subr.bf16.mxu1 %v8042_v15  ;;  %v8099_v15 = vld [vmem:[%s10386_s10 + $0xc0] ss:$8 sps:$4 sm:$0xff]  }
 0x4e5   : > { %4485 = vmatpush1.bf16.msra.mxu0 %v8038_v17  ;;  %v10049_v46 = vpop.f32.mrb[32].mxu1  ;;  %v8104_v17 = vld [vmem:[%s10386_s10 + $0xd4] ss:$8 sps:$4 sm:$0xff]  }
 0x4e6   : > { %v10054_v24 = vpop.f32.mrb[33].mxu1  ;;  %4486 = vmatprep.subr.bf16.mxu0 %v8045_v18  ;;  %v8102_v18 = vld [vmem:[%s10386_s10 + $0xd0] ss:$8 sps:$4 sm:$0xff]  }
 0x4e7   : > { %v4461_v26 = vpop.f32.mrb[34].mxu1  ;;  %7230 = vmatpush3.bf16.msra.mxu1 %v8046_v19  ;;  %v8107_v19 = vld [vmem:[%s10386_s10 + $0xe4] ss:$8 sps:$4 sm:$0xff]  }
 0x4e8   : > { %v4462_v27 = vpop.f32.mrb[35].mxu1  ;;  %7231 = vmatprep.subr.bf16.mxu1 %v8047_v20  ;;  %v4626_v20 = vpack.c.bf16 %v3606_v11, %v3606_v11  ;;  %v8108_v26 = vld [vmem:[%s10386_s10 + $0xf0] ss:$8 sps:$4 sm:$0xff]  }
 0x4e9   : > { %4487 = vmatpush1.bf16.msra.mxu0 %v8043_v23  ;;  %v8110_v23 = vld [vmem:[%s10386_s10 + $0xf4] ss:$8 sps:$4 sm:$0xff]  }
 0x4ea   : > { %4488 = vmatprep.subr.bf16.mxu0 %v8050_v56  ;;  %v4633_v56 = vshll.u32 %v4626_v20, 16  ;;  %v4631_v27 = vshrl.u32 %v4626_v20, 16 }
 0x4eb   : > { %7232 = vmatpush3.bf16.msra.mxu1 %v8051_v45 }
 0x4ec   : > { %7233 = vmatprep.subr.bf16.mxu1 %v8052_v28  ;;  %v4635_v45 = vrot.slane %v4633_v56, 1 }
 0x4ed   : > { %4489 = vmatpush1.bf16.msra.mxu0 %v8048_v30  ;;  %v8112_v30 = vld [vmem:[%s10388_s12 + $0x100] sm:$0xff]  }
 0x4ee   : > { %4490 = vmatprep.subr.bf16.mxu0 %v8055_v31  ;;  %v4636_v28 = vor.u32 %v4635_v45, %v4631_v27 }
 0x4ef   : > { %7234 = vmatpush3.bf16.msra.mxu1 %v8056_v32 }
 0x4f1   : > { %4491 = vmatpush1.bf16.msra.mxu0 %v8053_v35 }
 0x4f2   : > { %6171 = vmatmul.mubr.bf16.vlgmr.msra.gmra.mrb[52].mxu1 %v5894_v42  ;;  %4492 = vmatprep.subr.bf16.mxu0 %v8059_v40 }
 0x4f5   : > { %4493 = vmatpush1.bf16.msra.mxu0 %v8057_v43  ;;  %v4546_v43 = vld [vmem:[%s10387_s11] sm:$0x3] }
 0x4f6   : > { %4494 = vmatprep.subr.bf16.mxu0 %v8062_v44  ;;  %v10206_v44 = vrot.slane %v4546_v43, %v8559_v38 }
 0x4f9   : > { %4495 = vmatpush1.bf16.msra.mxu0 %v8060_v47 }
 0x4fa   : > { %4982 = vmatprep.subr.bf16.mxu0 %v8065_v48  ;;  %v10212_v48 = vrot.slane %v4546_v43, %v8562_v39  ;;  %v8115_v39 = vld [vmem:[%s10388_s12 + $0x150] sm:$0xff]  }
 0x4fc   : > { %4497 = vmatmul.mubr.bf16.vlgmr.msra.gmra.mrb[32].mxu0 %v9917_v29  ;;  %v8074_v29 = vld [vmem:[%s10386_s10 + $0x34] ss:$8 sps:$4 sm:$0xff]  }
 0x4fd   : > { %4983 = vmatpush1.bf16.msra.mxu0 %v8063_v50  ;;  %5014 = vmatprep.mubr.bf16.mxu0 %v4643_v53 }
 0x4fe   : > { %4984 = vmatprep.subr.bf16.mxu0 %v8068_v52 }
 0x501   : > { %4985 = vmatpush1.bf16.msra.mxu0 %v8066_v54 }
 0x502   : > { %4986 = vmatprep.subr.bf16.mxu0 %v8071_v55 }
 0x505   : > { %4987 = vmatpush1.bf16.msra.mxu0 %v8069_v57  ;;  %v8116_v57 = vld [vmem:[%s10388_s12 + $0x110] sm:$0xff]  }
 0x506   : > { %4988 = vmatprep.subr.bf16.mxu0 %v8074_v29 }
 0x509   : > { %4989 = vmatpush1.bf16.msra.mxu0 %v8072_v58  ;;  %v8118_v58 = vld [vmem:[%s10388_s12 + $0x118] sm:$0xff]  }
 0x50a   : > { %4990 = vmatprep.subr.bf16.mxu0 %v8077_v60  ;;  %v8119_v60 = vld [vmem:[%s10388_s12 + $0x160] sm:$0xff]  }
 0x50d   : > { %4991 = vmatpush1.bf16.msra.mxu0 %v8075_v61  ;;  %v8120_v61 = vld [vmem:[%s10388_s12 + $0x120] sm:$0xff]  }
 0x50e   : > { %4992 = vmatprep.subr.bf16.mxu0 %v8080_v21  ;;  %v8121_v21 = vld [vmem:[%s10388_s12 + $0x168] sm:$0xff]  }
 0x511   : > { %4993 = vmatpush1.bf16.msra.mxu0 %v8078_v62  ;;  %v8122_v62 = vld [vmem:[%s10388_s12 + $0x128] sm:$0xff]  }
 0x512   : > { %4994 = vmatprep.subr.bf16.mxu0 %v8083_v63  ;;  %v8123_v63 = vld [vmem:[%s10388_s12 + $0x170] sm:$0xff]  }
 0x515   : > { %4995 = vmatpush1.bf16.msra.mxu0 %v8081_v0  ;;  %v8124_v0 = vld [vmem:[%s10388_s12 + $0x130] sm:$0xff]  }
 0x516   : > { %4996 = vmatprep.subr.bf16.mxu0 %v8086_v25  ;;  %v8125_v25 = vld [vmem:[%s10388_s12 + $0x178] sm:$0xff]  }
 0x519   : > { %4997 = vmatpush1.bf16.msra.mxu0 %v8084_v1 }
 0x51a   : > { %4998 = vmatprep.subr.bf16.mxu0 %v8089_v2  ;;  %v8126_v2 = vld [vmem:[%s10388_s12 + $0x138] sm:$0xff]  }
 0x51d   : > { %4999 = vmatpush1.bf16.msra.mxu0 %v8087_v3 }
 0x51e   : > { %5000 = vmatprep.subr.bf16.mxu0 %v8092_v37 }
 0x521   : > { %5001 = vmatpush1.bf16.msra.mxu0 %v8090_v6 }
 0x522   : > { %5002 = vmatprep.subr.bf16.mxu0 %v8095_v59 }
 0x525   : > { %5003 = vmatpush1.bf16.msra.mxu0 %v8093_v4  ;;  %v10159_v5 = vpop.f32.mrb[36].mxu1  ;;  %v8127_v4 = vld [vmem:[%s10388_s12 + $0x40] sm:$0xff]  }
 0x526   : > { %v10164_v9 = vpop.f32.mrb[37].mxu1  ;;  %5004 = vmatprep.subr.bf16.mxu0 %v8098_v8 }
 0x527   : > { %v4543_v13 = vpop.f32.mrb[38].mxu1 }
 0x528   : > { %v4544_v14 = vpop.f32.mrb[39].mxu1 }
 0x529   : > { %5005 = vmatpush1.bf16.msra.mxu0 %v8096_v7 }
 0x52a   : > { %5006 = vmatprep.subr.bf16.mxu0 %v8101_v12 }
 0x52d   : > { %5007 = vmatpush1.bf16.msra.mxu0 %v8099_v15 }
 0x52e   : > { %5008 = vmatprep.subr.bf16.mxu0 %v8104_v17 }
 0x531   : > { %5009 = vmatpush1.bf16.msra.mxu0 %v8102_v18 }
 0x532   : > { %5010 = vmatprep.subr.bf16.mxu0 %v8107_v19 }
 0x535   : > { %5011 = vmatpush1.bf16.msra.mxu0 %v8105_v22 }
 0x536   : > { %5012 = vmatprep.subr.bf16.mxu0 %v8110_v23 }
 0x539   : > { %5013 = vmatpush1.bf16.msra.mxu0 %v8108_v26 }
 0x53a   : > { %7109 = vmatprep.subr.bf16.mxu0 %v8111_v10 }
 0x53c   : > { %5015 = vmatmul.mubr.bf16.vlgmr.msra.gmra.mrb[36].mxu0 %v4636_v28 }
 0x53d   : > { %7110 = vmatpush3.bf16.msra.mxu0 %v8112_v30 }
 0x53e   : > { %7111 = vmatprep.subr.bf16.mxu0 %v8113_v16 }
 0x541   : > { %7112 = vmatpush3.bf16.msra.mxu0 %v8114_v49 }
 0x542   : > { %7113 = vmatprep.subr.bf16.mxu0 %v8115_v39  ;;  %v8131_v39 = vld [vmem:[%s10388_s12 + $0x50] sm:$0xff]  }
 0x545   : > { %7114 = vmatpush3.bf16.msra.mxu0 %v8116_v57  ;;  %v8133_v57 = vld [vmem:[%s10388_s12 + $0x58] sm:$0xff]  }
 0x565   : > { %v10196_v31 = vpop.f32.mrb[40].mxu1 }
 0x566   : > { %v10198_v32 = vpop.f32.mrb[41].mxu1 }
 0x567   : > { %v5061_v33 = vpop.f32.mrb[42].mxu1 }
 0x568   : > { %v5062_v34 = vpop.f32.mrb[43].mxu1 }
 0x585   : > { %v7147_v35 = vpop.f32.mrb[44].mxu1 }
 0x586   : > { %v7148_v36 = vpop.f32.mrb[45].mxu1 }
 0x587   : > { %v10200_v40 = vadd.f32 %v7148_v36, %v7147_v35  ;;  %v7150_v41 = vpop.f32.mrb[46].mxu1 }
 0x588   : > { %v7151_v42 = vpop.f32.mrb[47].mxu1 }
 0x58f   : > { %v4416_v47 = vpop.f32.mrb[28].mxu0 }
 0x590   : > { %v4458_v50 = vadd.f32 %v10049_v46, %v4416_v47  ;;  %v4418_v51 = vpop.f32.mrb[29].mxu0 }
 0x591   : > { %v4460_v52 = vadd.f32 %v10054_v24, %v4418_v51  ;;  %v4420_v38 = vpop.f32.mrb[30].mxu0  ;;  %v8117_v24 = vld [vmem:[%s10388_s12 + $0x158] sm:$0xff]  }
 0x592   : > { %v4558_v53 = vadd.f32 %v10206_v44, %v4458_v50  ;;  %v4421_v54 = vpop.f32.mrb[31].mxu0  ;;  %7115 = vmatprep.subr.bf16.mxu0 %v8117_v24  ;;  %v8129_v38 = vld [vmem:[%s10388_s12 + $0x48] sm:$0xff]   ;;  %v8136_v24 = vld [vmem:[%s10388_s12 + $0x20] sm:$0xff]  }
 0x593   : > { %v4559_v55 = vadd.f32 %v10212_v48, %v4460_v52  ;;  %7116 = vmatpush3.bf16.msra.mxu0 %v8118_v58  ;;  %v8130_v54 = vld [vmem:[%s10388_s12 + $0x8] sm:$0xff]  }
 0x594   : > { %v4560_v46 = vmax.f32 %v4558_v53, 0.0  ;;  %7117 = vmatprep.subr.bf16.mxu0 %v8119_v60  ;;  %v8137_v58 = vld [vmem:[%s10388_s12 + $0x68] sm:$0xff]  }
 0x595   : > { %v4561_v29 = vmax.f32 %v4559_v55, 0.0  ;;  %v8132_v55 = vld [vmem:[%s10388_s12 + $0x10] sm:$0xff]  }
 0x596   : > { %5070 = vst [vmem:[#allocation3] sm:$0x7f] %v4560_v46  ;;  %v8134_v46 = vld [vmem:[%s10388_s12 + $0x18] sm:$0xff]  }
 0x597   : > { %5071 = vst [vmem:[#allocation3 + $0x8] sm:$0x7f] %v4561_v29  ;;  %7118 = vmatpush3.bf16.msra.mxu0 %v8120_v61  ;;  %v8135_v29 = vld [vmem:[%s10388_s12 + $0x60] sm:$0xff]   ;;  %v8138_v61 = vld [vmem:[%s10388_s12 + $0x28] sm:$0xff]  }
 0x598   : > { %7119 = vmatprep.subr.bf16.mxu0 %v8121_v21  ;;  %v8139_v21 = vld [vmem:[%s10388_s12 + $0x70] sm:$0xff]  }
 0x59b   : > { %7120 = vmatpush3.bf16.msra.mxu0 %v8122_v62 }
 0x59c   : > { %7121 = vmatprep.subr.bf16.mxu0 %v8123_v63  ;;  %v8140_v63 = vld [vmem:[%s10388_s12 + $0x30] sm:$0xff]  }
 0x59e   : > { %v5081_v51 = vld [vmem:[#allocation3 + $0x8] sm:$0x7f] }
 0x59f   : > { %7122 = vmatpush3.bf16.msra.mxu0 %v8124_v0  ;;  %v5149_v53 = vpack.c.bf16 %v5081_v51, %v5081_v51  ;;  %v5802_v60 = vld [vmem:[#allocation3 + $0x8] sm:$0xfe]  ;;  %v8141_v0 = vld [vmem:[%s10388_s12 + $0x78] sm:$0xff]  }
 0x5a0   : > { %7123 = vmatprep.subr.bf16.mxu0 %v8125_v25  ;;  %v5871_v62 = vpack.c.bf16 %v5802_v60, %v5802_v60 }
 0x5a2   : > { %v5884_v25 = vshll.u32 %v5871_v62, 16 }
 0x5a3   : > { %7124 = vmatpush3.bf16.msra.mxu0 %v8126_v2  ;;  %v8143_v2 = vld [vmem:[%s10388_s12 + $0x240] sm:$0xff]  }
 0x5a4   : > { %7153 = vmatprep.subr.bf16.mxu0 %v8127_v4  ;;  %v5882_v4 = vshrl.u32 %v5871_v62, 16 }
 0x5a5   : > { %v7191_v1 = vpop.f32.mrb[48].mxu1 }
 0x5a6   : > { %v7192_v3 = vpop.f32.mrb[49].mxu1 }
 0x5a7   : > { %v10257_v37 = vadd.f32 %v7192_v3, %v7191_v1  ;;  %v7194_v6 = vpop.f32.mrb[50].mxu1  ;;  %v8142_v1 = vld [vmem:[%s10388_s12 + $0x38] sm:$0xff]   ;;  %v5080_v3 = vld [vmem:[#allocation3] sm:$0x7f] }
 0x5a8   : > { %v7195_v59 = vpop.f32.mrb[51].mxu1  ;;  %v5886_v6 = vrot.slane %v5884_v25, 1 }
 0x5a9   : > { %v8144_v59 = vld [vmem:[%s10388_s12 + $0x200] sm:$0xff]  }
 0x5c5   : > { %v7235_v8 = vpop.f32.mrb[52].mxu1 }
 0x5c6   : > { %v7236_v7 = vpop.f32.mrb[53].mxu1 }
 0x5c7   : > { %v10262_v12 = vadd.f32 %v7236_v7, %v7235_v8  ;;  %v7238_v13 = vpop.f32.mrb[54].mxu1  ;;  %v5148_v8 = vpack.c.bf16 %v5080_v3, %v5080_v3  ;;  %v8145_v7 = vld [vmem:[%s10388_s12 + $0x248] sm:$0xff]  }
 0x5c8   : > { %v7239_v14 = vpop.f32.mrb[55].mxu1  ;;  %v5887_v13 = vor.u32 %v5886_v6, %v5882_v4 }
 0x5c9   : > { %v8146_v14 = vld [vmem:[%s10388_s12 + $0x208] sm:$0xff]  }
 0x5cf   : > { %v4498_v15 = vpop.f32.mrb[32].mxu0 }
 0x5d0   : > { %v4540_v17 = vadd.f32 %v10159_v5, %v4498_v15  ;;  %v4500_v11 = vpop.f32.mrb[33].mxu0  ;;  %v8147_v15 = vld [vmem:[%s10388_s12 + $0x250] sm:$0xff]  }
 0x5d1   : > { %v4542_v18 = vadd.f32 %v10164_v9, %v4500_v11  ;;  %v4502_v19 = vpop.f32.mrb[34].mxu0  ;;  %v8149_v11 = vld [vmem:[%s10388_s12 + $0x258] sm:$0xff]  }
 0x5d2   : > { %v4503_v20 = vpop.f32.mrb[35].mxu0  ;;  %v8151_v19 = vld [vmem:[%s10388_s12 + $0x260] sm:$0xff]  }
 0x5d3   : > { %v8152_v20 = vld [vmem:[%s10388_s12 + $0x220] sm:$0xff]  }
 0x60f   : > { %v5016_v22 = vpop.f32.mrb[36].mxu0 }
 0x610   : > { %v5058_v23 = vadd.f32 %v10196_v31, %v5016_v22  ;;  %v5018_v56 = vpop.f32.mrb[37].mxu0  ;;  %v8153_v22 = vld [vmem:[%s10388_s12 + $0x268] sm:$0xff]  }
 0x611   : > { %v5060_v26 = vadd.f32 %v10198_v32, %v5018_v56  ;;  %v5020_v45 = vpop.f32.mrb[38].mxu0  ;;  %v8154_v56 = vld [vmem:[%s10388_s12 + $0x228] sm:$0xff]  }
 0x612   : > { %v5064_v27 = vadd.f32 %v5058_v23, %v4540_v17  ;;  %v5021_v28 = vpop.f32.mrb[39].mxu0  ;;  %v8148_v17 = vld [vmem:[%s10388_s12 + $0x210] sm:$0xff]   ;;  %v5801_v23 = vld [vmem:[#allocation3] sm:$0xfe] }
 0x613   : > { %v5065_v10 = vadd.f32 %v5060_v26, %v4542_v18  ;;  %v8150_v18 = vld [vmem:[%s10388_s12 + $0x218] sm:$0xff]   ;;  %v8155_v26 = vld [vmem:[%s10388_s12 + $0x270] sm:$0xff]   ;;  %v5870_v45 = vpack.c.bf16 %v5801_v23, %v5801_v23 }
 0x614   : > { %v5066_v30 = vadd.f32 %v5064_v27, %v10206_v44  ;;  %v8156_v27 = vld [vmem:[%s10388_s12 + $0x230] sm:$0xff]   ;;  %v8157_v28 = vld [vmem:[%s10388_s12 + $0x278] sm:$0xff]  }
 0x615   : > { %v5067_v33 = vadd.f32 %v5065_v10, %v10212_v48  ;;  %v8128_v48 = vld [vmem:[%s10388_s12] sm:$0xff]   ;;  %v5877_v10 = vshll.u32 %v5870_v45, 16 }
 0x616   : > { %v5068_v5 = vmax.f32 %v5066_v30, 0.0  ;;  %v8158_v30 = vld [vmem:[%s10388_s12 + $0x238] sm:$0xff]  }
 0x617   : > { %v5069_v34 = vmax.f32 %v5067_v33, 0.0  ;;  %v5879_v33 = vrot.slane %v5877_v10, 1 }
 0x618   : > { %v5074_v35 = vrot.slane %v5068_v5, 7  ;;  %v5875_v5 = vshrl.u32 %v5870_v45, 16 }
 0x619   : > { %v5075_v9 = vrot.slane %v5069_v34, 7 }
 0x61a   : > { %5078 = vst [vmem:[#allocation4] sm:$0xfe] %v5074_v35  ;;  %v5880_v34 = vor.u32 %v5879_v33, %v5875_v5 }
 0x61b   : > { %5079 = vst [vmem:[#allocation4 + $0x8] sm:$0xfe] %v5075_v9 }
 0x621   : > { %v5152_v36 = vld [vmem:[#allocation4] sm:$0xfe] }
 0x622   : > { %v5153_v41 = vld [vmem:[#allocation4 + $0x8] sm:$0xfe]  ;;  %v5221_v31 = vpack.c.bf16 %v5152_v36, %v5152_v36 }
 0x623   : > { %v5222_v42 = vpack.c.bf16 %v5153_v41, %v5153_v41 }
 0x624   : > { %v5228_v43 = vshll.u32 %v5221_v31, 16  ;;  %v5226_v50 = vshrl.u32 %v5221_v31, 16 }
 0x625   : > { %v5235_v32 = vshll.u32 %v5222_v42, 16  ;;  %v5233_v47 = vshrl.u32 %v5222_v42, 16 }
 0x626   : > { %v5230_v16 = vrot.slane %v5228_v43, 1 }
 0x627   : > { %v5237_v49 = vrot.slane %v5235_v32, 1 }
 0x628   : > { %v5231_v52 = vor.u32 %v5230_v16, %v5226_v50 }
 0x629   : > { %v5238_v44 = vor.u32 %v5237_v49, %v5233_v47 }
 0x62b   : > { %5481 = vmatprep.mubr.bf16.mxu0 %v5238_v44 }
 0x62c   : > { %5482 = vmatmul.mubr.bf16.vlgmr.msra.gmra.mrb[40].mxu0 %v5231_v52 }
 0x62d   : > { %7154 = vmatpush3.bf16.msra.mxu0 %v8128_v48  ;;  %5753 = vmatprep.mubr.bf16.mxu0 %v5149_v53 }
 0x62e   : > { %7155 = vmatprep.subr.bf16.mxu0 %v8129_v38 }
 0x631   : > { %7156 = vmatpush3.bf16.msra.mxu0 %v8130_v54 }
 0x632   : > { %7157 = vmatprep.subr.bf16.mxu0 %v8131_v39 }
 0x635   : > { %7158 = vmatpush3.bf16.msra.mxu0 %v8132_v55 }
 0x636   : > { %7159 = vmatprep.subr.bf16.mxu0 %v8133_v57 }
 0x639   : > { %7160 = vmatpush3.bf16.msra.mxu0 %v8134_v46 }
 0x63a   : > { %7161 = vmatprep.subr.bf16.mxu0 %v8135_v29 }
 0x63d   : > { %7162 = vmatpush3.bf16.msra.mxu0 %v8136_v24 }
 0x63e   : > { %7163 = vmatprep.subr.bf16.mxu0 %v8137_v58 }
 0x641   : > { %7164 = vmatpush3.bf16.msra.mxu0 %v8138_v61 }
 0x642   : > { %7165 = vmatprep.subr.bf16.mxu0 %v8139_v21 }
 0x645   : > { %7166 = vmatpush3.bf16.msra.mxu0 %v8140_v63 }
 0x646   : > { %7167 = vmatprep.subr.bf16.mxu0 %v8141_v0 }
 0x649   : > { %7168 = vmatpush3.bf16.msra.mxu0 %v8142_v1 }
 0x64a   : > { %7197 = vmatprep.subr.bf16.mxu0 %v8143_v2 }
 0x64c   : > { %5754 = vmatmul.mubr.bf16.vlgmr.msra.gmra.mrb[44].mxu0 %v5148_v8 }
 0x64d   : > { %7198 = vmatpush3.bf16.msra.mxu0 %v8144_v59  ;;  %6130 = vmatprep.mubr.bf16.mxu0 %v5887_v13 }
 0x64e   : > { %7199 = vmatprep.subr.bf16.mxu0 %v8145_v7 }
 0x651   : > { %7200 = vmatpush3.bf16.msra.mxu0 %v8146_v14 }
 0x652   : > { %7201 = vmatprep.subr.bf16.mxu0 %v8147_v15 }
 0x655   : > { %7202 = vmatpush3.bf16.msra.mxu0 %v8148_v17 }
 0x656   : > { %7203 = vmatprep.subr.bf16.mxu0 %v8149_v11 }
 0x659   : > { %7204 = vmatpush3.bf16.msra.mxu0 %v8150_v18 }
 0x65a   : > { %7205 = vmatprep.subr.bf16.mxu0 %v8151_v19 }
 0x65d   : > { %7206 = vmatpush3.bf16.msra.mxu0 %v8152_v20 }
 0x65e   : > { %7207 = vmatprep.subr.bf16.mxu0 %v8153_v22 }
 0x661   : > { %7208 = vmatpush3.bf16.msra.mxu0 %v8154_v56 }
 0x662   : > { %7209 = vmatprep.subr.bf16.mxu0 %v8155_v26 }
 0x665   : > { %7210 = vmatpush3.bf16.msra.mxu0 %v8156_v27 }
 0x666   : > { %7211 = vmatprep.subr.bf16.mxu0 %v8157_v28 }
 0x669   : > { %7212 = vmatpush3.bf16.msra.mxu0 %v8158_v30 }
 0x66c   : > { %6131 = vmatmul.mubr.bf16.vlgmr.msra.gmra.mrb[48].mxu0 %v5880_v34 }
 0x6ff   : > { %v7125_v35 = vpop.f32.mrb[40].mxu0 }
 0x700   : > { %v7126_v9 = vpop.f32.mrb[41].mxu0 }
 0x701   : > { %v7127_v36 = vadd.f32 %v7126_v9, %v7125_v35  ;;  %v7128_v41 = vpop.f32.mrb[42].mxu0 }
 0x702   : > { %v7129_v31 = vpop.f32.mrb[43].mxu0 }
 0x703   : > { %v5524_v42 = vadd.f32 %v10200_v40, %v7127_v36  ;;  %v7083_v40 = vld [vmem:[%s10389_s13] ss:$0 sm:$0xff] }
 0x71f   : > { %v7169_v43 = vpop.f32.mrb[44].mxu0 }
 0x720   : > { %v7170_v32 = vpop.f32.mrb[45].mxu0 }
 0x721   : > { %v7171_v16 = vadd.f32 %v7170_v32, %v7169_v43  ;;  %v7172_v47 = vpop.f32.mrb[46].mxu0 }
 0x722   : > { %v7173_v49 = vpop.f32.mrb[47].mxu0 }
 0x723   : > { %v5756_v50 = vadd.f32 %v7171_v16, %v5524_v42 }
 0x725   : > { %v5796_v51 = vadd.f32 %v10257_v37, %v5756_v50 }
 0x73f   : > { %v7213_v44 = vpop.f32.mrb[48].mxu0 }
 0x740   : > { %v7214_v48 = vpop.f32.mrb[49].mxu0 }
 0x741   : > { %v7215_v52 = vadd.f32 %v7214_v48, %v7213_v44  ;;  %v7216_v38 = vpop.f32.mrb[50].mxu0 }
 0x742   : > { %v7217_v53 = vpop.f32.mrb[51].mxu0 }
 0x743   : > { %v6173_v54 = vadd.f32 %v10262_v12, %v7215_v52 }
 0x745   : > { %v6178_v39 = vadd.f32 %v6173_v54, %v5796_v51 }
 0x747   : > { %v6186_v55 = vadd.f32 %v7083_v40, %v6178_v39 }
 0x749   : > { %6187 = vst [vmem:[%s465_s20] sm:$0x7f] %v6186_v55 }
 0x74a PF: > { %s24_s29 = sadd.s32 1, %s8165_s29  }
 0x74b   : > { %p21_p4 = scmp.ge.s32.totalorder %s24_s29, 4  }
 0x74d   :  { %23 = sbr.rel (!%p21_p4) target bundleno = 1 (0x1), region = 118 }

</bundles_post_ra>
